<compile_context>
chip_gen: v7x
topology: tpu7x:2x2x1
jax: 0.10.0
libtpu: 0.0.40
codegen_flags: <defaults>
</compile_context>

<pallas_src>
import functools

import jax
import jax.numpy as jnp
from jax.experimental import pallas as pl
from jax.experimental.pallas import tpu as pltpu

# ----------------------------------------------------------------------------
# Model sizes (TPU-tile friendly; OBS_DIM = 4096 is fixed by the module)
# ----------------------------------------------------------------------------
BATCH = 8
STOCH = 32            # stoch_size
DETER = 128           # deter_size
EMBED = 128           # embed_size
OBS_DIM = 4096        # obs_embed_dense input width (hard-coded in the module)
MIN_STDDEV = 1e-4
HEAD = 3 * DETER + 2 * STOCH      # fused head width: [gru_ih | mean | std] = 448


def _softplus(x):
    # numerically-stable softplus (used identically by kernel and reference)
    return jnp.where(x > 20.0, x, jnp.log1p(jnp.exp(jnp.minimum(x, 20.0))))


def _relu(x):
    return jnp.maximum(x, 0.0)


def _bdot(x, w):
    # bf16 operands on the MXU, f32 accumulation; element-wise math stays f32.
    return jnp.dot(x.astype(jnp.bfloat16), w, preferred_element_type=jnp.float32)


def _nbytes(x):
    n = 1
    for d in x.shape:
        n *= int(d)
    return n * jnp.dtype(x.dtype).itemsize


# ----------------------------------------------------------------------------
# Kernel (time loop lives on the grid; state carried in VMEM scratch)
# ----------------------------------------------------------------------------
def _build_kernel(use_observation: bool):

    def gru_update(gi, h_prev, gru_wh, gru_bh):
        # PyTorch GRUCell semantics, gate order [r, z, n]; gi already has b_ih.
        gh = _bdot(h_prev, gru_wh[...]) + gru_bh[...]
        r = jax.nn.sigmoid(gi[:, :DETER] + gh[:, :DETER])
        z = jax.nn.sigmoid(gi[:, DETER:2 * DETER] + gh[:, DETER:2 * DETER])
        n = jnp.tanh(gi[:, 2 * DETER:] + r * gh[:, 2 * DETER:])
        return (1.0 - z) * n + z * h_prev

    def kernel(*refs):
        if use_observation:
            (prev_sample_ref, prev_det_ref, context_ref, obs_ref,
             nz_pr_ref, nz_po_ref,
             pr_h1_ws, pr_h1_wc, pr_h1_b, pr_h2_w, pr_h2_b,
             pr_head_w, pr_head_b,
             obs_w, obs_b,
             po_h1_wd, po_h1_we, po_h1_b, po_h2_w, po_h2_b,
             po_head_w, po_head_b,
             gru_wh, gru_bh,
             pr_small_o, pr_det_o, po_small_o, po_det_o,
             sample_sc, det_sc) = refs
        else:
            (prev_sample_ref, prev_det_ref, context_ref, nz_pr_ref,
             pr_h1_ws, pr_h1_wc, pr_h1_b, pr_h2_w, pr_h2_b,
             pr_head_w, pr_head_b,
             gru_wh, gru_bh,
             pr_small_o, pr_det_o,
             sample_sc, det_sc) = refs

        t = pl.program_id(0)

        @pl.when(t == 0)
        def _():
            sample_sc[...] = prev_sample_ref[...]
            det_sc[...] = prev_det_ref[...]

        prev_sample = sample_sc[...]
        prev_det = det_sc[...]
        context = context_ref[0]                       # (B, DETER)

        # ------------------------------ prior ------------------------------
        # cat([sample, context]) @ W  ==  sample @ W_s + context @ W_c
        h = _relu(_bdot(prev_sample, pr_h1_ws[...])
                  + _bdot(context, pr_h1_wc[...]) + pr_h1_b[...])
        h = _relu(_bdot(h, pr_h2_w[...]) + pr_h2_b[...])
        # fused head: [gru_ih | mean | stddev] in one MXU push
        head = _bdot(h, pr_head_w[...]) + pr_head_b[...]          # (B, 448)
        gi = head[:, :3 * DETER]
        pr_mean = head[:, 3 * DETER:3 * DETER + STOCH]
        pr_std = _softplus(head[:, 3 * DETER + STOCH:] + 0.54) + MIN_STDDEV
        pr_samp = pr_mean + pr_std * nz_pr_ref[0]
        pr_det = gru_update(gi, prev_det, gru_wh, gru_bh)

        pr_small_o[0] = jnp.concatenate([pr_mean, pr_std, pr_samp], axis=-1)
        pr_det_o[0] = pr_det

        if use_observation:
            # ---------------------------- posterior ------------------------
            emb = _relu(_bdot(obs_ref[0], obs_w[...]) + obs_b[...])
            # cat([prior_det_out, embedded_obs]) @ W == det @ W_d + emb @ W_e
            h2 = _relu(_bdot(pr_det, po_h1_wd[...])
                       + _bdot(emb, po_h1_we[...]) + po_h1_b[...])
            h2 = _relu(_bdot(h2, po_h2_w[...]) + po_h2_b[...])
            head2 = _bdot(h2, po_head_w[...]) + po_head_b[...]
            gi2 = head2[:, :3 * DETER]
            po_mean = head2[:, 3 * DETER:3 * DETER + STOCH]
            po_std = _softplus(head2[:, 3 * DETER + STOCH:] + 0.54) + MIN_STDDEV
            po_samp = po_mean + po_std * nz_po_ref[0]
            po_det = gru_update(gi2, pr_det, gru_wh, gru_bh)   # hidden = prior det

            po_small_o[0] = jnp.concatenate([po_mean, po_std, po_samp], axis=-1)
            po_det_o[0] = po_det
            new_sample, new_det = po_samp, po_det
        else:
            # forward(): posterior = prior when observations are not used
            new_sample, new_det = pr_samp, pr_det

        # carry the new state (posterior state) to the next timestep
        sample_sc[...] = new_sample
        det_sc[...] = new_det

    return kernel


# ----------------------------------------------------------------------------
# Parameters (bf16 matmul weights, f32 biases, fused per-branch heads)
# ----------------------------------------------------------------------------
def make_params(key):
    keys = jax.random.split(key, 12)
    k = iter(keys)
    bf16 = jnp.bfloat16

    def lin(kk, n_in, n_out):
        scale = (2.0 / n_in) ** 0.5
        w = scale * jax.random.normal(kk, (n_in, n_out), jnp.float32)
        b = jnp.zeros((1, n_out), jnp.float32)
        return w, b

    # prior_h1_dense: Linear(stoch + deter, embed) -> split [stoch | deter]
    w, b = lin(next(k), STOCH + DETER, EMBED)
    pr_h1_ws, pr_h1_wc, pr_h1_b = w[:STOCH], w[STOCH:], b
    pr_h2_w, pr_h2_b = lin(next(k), EMBED, EMBED)
    pr_mean_w, pr_mean_b = lin(next(k), EMBED, STOCH)
    pr_std_w, pr_std_b = lin(next(k), EMBED, STOCH)
    # obs_embed_dense: Linear(4096, embed)
    obs_w, obs_b = lin(next(k), OBS_DIM, EMBED)
    # posterior_h1_dense: Linear(deter + embed, embed) -> split [deter | embed]
    w, b = lin(next(k), DETER + EMBED, EMBED)
    po_h1_wd, po_h1_we, po_h1_b = w[:DETER], w[DETER:], b
    po_h2_w, po_h2_b = lin(next(k), EMBED, EMBED)
    po_mean_w, po_mean_b = lin(next(k), EMBED, STOCH)
    po_std_w, po_std_b = lin(next(k), EMBED, STOCH)
    # shared GRUCell(embed -> deter); weights as (in, 3*hidden), gates [r|z|n]
    gru_wi, _ = lin(next(k), EMBED, 3 * DETER)
    gru_wh, _ = lin(next(k), DETER, 3 * DETER)
    gru_bi = jnp.zeros((1, 3 * DETER), jnp.float32)
    gru_bh = jnp.zeros((1, 3 * DETER), jnp.float32)

    # fused per-branch heads: one (EMBED, 3*DETER + 2*STOCH) weight each
    pr_head_w = jnp.concatenate([gru_wi, pr_mean_w, pr_std_w], axis=1)
    pr_head_b = jnp.concatenate([gru_bi, pr_mean_b, pr_std_b], axis=1)
    po_head_w = jnp.concatenate([gru_wi, po_mean_w, po_std_w], axis=1)
    po_head_b = jnp.concatenate([gru_bi, po_mean_b, po_std_b], axis=1)

    return {
        "pr_h1_ws": pr_h1_ws.astype(bf16), "pr_h1_wc": pr_h1_wc.astype(bf16),
        "pr_h1_b": pr_h1_b,
        "pr_h2_w": pr_h2_w.astype(bf16), "pr_h2_b": pr_h2_b,
        "pr_head_w": pr_head_w.astype(bf16), "pr_head_b": pr_head_b,
        "obs_w": obs_w.astype(bf16), "obs_b": obs_b,
        "po_h1_wd": po_h1_wd.astype(bf16), "po_h1_we": po_h1_we.astype(bf16),
        "po_h1_b": po_h1_b,
        "po_h2_w": po_h2_w.astype(bf16), "po_h2_b": po_h2_b,
        "po_head_w": po_head_w.astype(bf16), "po_head_b": po_head_b,
        "gru_wh": gru_wh.astype(bf16), "gru_bh": gru_bh,
    }


FULL_PARAMS = ["pr_h1_ws", "pr_h1_wc", "pr_h1_b", "pr_h2_w", "pr_h2_b",
               "pr_head_w", "pr_head_b", "obs_w", "obs_b",
               "po_h1_wd", "po_h1_we", "po_h1_b", "po_h2_w", "po_h2_b",
               "po_head_w", "po_head_b", "gru_wh", "gru_bh"]
PRIOR_PARAMS = ["pr_h1_ws", "pr_h1_wc", "pr_h1_b", "pr_h2_w", "pr_h2_b",
                "pr_head_w", "pr_head_b", "gru_wh", "gru_bh"]


# ----------------------------------------------------------------------------
# Wrapper: one pallas_call per rollout; weights resident, per-step streams
# ----------------------------------------------------------------------------
@functools.partial(jax.jit, static_argnames=("use_observation",))
def rssm_rollout(params, init_state, obs_seq, context_seq,
                 noise_prior_seq, noise_post_seq, use_observation=True):
    # context may arrive with a singleton dim per step, like the PyTorch code
    if context_seq.ndim == 4 and context_seq.shape[2] == 1:
        context_seq = context_seq[:, :, 0, :]
    T, B = int(context_seq.shape[0]), int(context_seq.shape[1])

    step_map = lambda t: (t, 0, 0)       # streamed once per timestep
    res_map = lambda t: (0, 0)           # resident: same block every step

    def full_spec(x):
        return pl.BlockSpec(x.shape, res_map)

    def step_spec(x):
        return pl.BlockSpec((1,) + x.shape[1:], step_map)

    if use_observation:
        names = FULL_PARAMS
        data = [init_state["sample"], init_state["det_state"],
                context_seq, obs_seq, noise_prior_seq, noise_post_seq]
        data_specs = [full_spec(data[0]), full_spec(data[1]),
                      step_spec(context_seq), step_spec(obs_seq),
                      step_spec(noise_prior_seq), step_spec(noise_post_seq)]
        out_shape = (
            jax.ShapeDtypeStruct((T, B, 3 * STOCH), jnp.float32),  # prior m|s|samp
            jax.ShapeDtypeStruct((T, B, DETER), jnp.float32),      # prior det
            jax.ShapeDtypeStruct((T, B, 3 * STOCH), jnp.float32),  # post m|s|samp
            jax.ShapeDtypeStruct((T, B, DETER), jnp.float32),      # post det
        )
    else:
        names = PRIOR_PARAMS
        data = [init_state["sample"], init_state["det_state"],
                context_seq, noise_prior_seq]
        data_specs = [full_spec(data[0]), full_spec(data[1]),
                      step_spec(context_seq), step_spec(noise_prior_seq)]
        out_shape = (
            jax.ShapeDtypeStruct((T, B, 3 * STOCH), jnp.float32),
            jax.ShapeDtypeStruct((T, B, DETER), jnp.float32),
        )

    param_vals = [params[n] for n in names]
    inputs = data + param_vals
    in_specs = data_specs + [full_spec(p) for p in param_vals]
    out_specs = tuple(pl.BlockSpec((1,) + s.shape[1:], step_map)
                      for s in out_shape)

    # Advisory cost estimate so XLA overlaps this small, DMA-bound call.
    flops_prior = 2 * B * ((STOCH + DETER) * EMBED + EMBED * EMBED
                           + EMBED * HEAD + DETER * 3 * DETER)
    flops_post = 2 * B * (OBS_DIM * EMBED + (DETER + EMBED) * EMBED
                          + EMBED * EMBED + EMBED * HEAD + DETER * 3 * DETER)
    n_branches = 2 if use_observation else 1
    flops = T * (flops_prior + (flops_post if use_observation else 0))
    transcend = T * B * n_branches * (3 * DETER + 2 * STOCH)
    bytes_acc = (sum(_nbytes(x) for x in inputs)
                 + sum(_nbytes(s) for s in out_shape))

    # TODO(synk): if several independent rollouts are batched, add a leading
    # "parallel" grid axis so v7x's second TensorCore takes half of them.
    outs = pl.pallas_call(
        _build_kernel(use_observation),
        out_shape=out_shape,
        grid_spec=pltpu.PrefetchScalarGridSpec(
            num_scalar_prefetch=0,
            grid=(T,),
            in_specs=in_specs,
            out_specs=out_specs,
            scratch_shapes=[pltpu.VMEM((B, STOCH), jnp.float32),
                            pltpu.VMEM((B, DETER), jnp.float32)],
        ),
        compiler_params=pltpu.CompilerParams(
            dimension_semantics=("arbitrary",)),   # sequential recurrence
        cost_estimate=pl.CostEstimate(
            flops=flops, transcendentals=transcend, bytes_accessed=bytes_acc),
    )(*inputs)

    def unpack(small, det):
        mean = small[..., :STOCH]
        std = small[..., STOCH:2 * STOCH]
        samp = small[..., 2 * STOCH:]
        return {"mean": mean, "stddev": std, "sample": samp,
                "det_out": det, "det_state": det,
                "output": jnp.concatenate([samp, det], axis=-1)}

    prior = unpack(outs[0], outs[1])
    posterior = unpack(outs[2], outs[3]) if use_observation else prior
    state = {"sample": posterior["sample"][-1],
             "det_state": posterior["det_state"][-1]}
    return {"out": [prior, posterior], "state": state}


def rssm_cell_forward(params, prev_out, inputs, use_observation,
                      noise_prior, noise_post):
    """Single-step interface mirroring RSSMCell.forward (T = 1 rollout)."""
    prev_state = prev_out["state"]
    obs, context = inputs[0], inputs[1]
    if context.ndim == 3 and context.shape[1] == 1:
        context = context[:, 0, :]
    seq = rssm_rollout(params, prev_state, obs[None], context[None],
                       noise_prior[None], noise_post[None],
                       use_observation=use_observation)
    prior, posterior = seq["out"]
    prior = jax.tree_util.tree_map(lambda x: x[0], prior)
    posterior = jax.tree_util.tree_map(lambda x: x[0], posterior)
    return {"out": [prior, posterior], "state": posterior}


# ----------------------------------------------------------------------------
# Pure-JAX reference (same bf16 weights / math) for verification
# ----------------------------------------------------------------------------
def reference_rollout(p, init_state, obs_seq, ctx_seq, nz_pr_seq, nz_po_seq,
                      use_observation=True):
    def gru(gi, h):
        gh = _bdot(h, p["gru_wh"]) + p["gru_bh"]
        r = jax.nn.sigmoid(gi[:, :DETER] + gh[:, :DETER])
        z = jax.nn.sigmoid(gi[:, DETER:2 * DETER] + gh[:, DETER:2 * DETER])
        n = jnp.tanh(gi[:, 2 * DETER:] + r * gh[:, 2 * DETER:])
        return (1.0 - z) * n + z * h

    sample, det = init_state["sample"], init_state["det_state"]
    outs = []
    for t in range(ctx_seq.shape[0]):
        h = _relu(_bdot(sample, p["pr_h1_ws"]) + _bdot(ctx_seq[t], p["pr_h1_wc"])
                  + p["pr_h1_b"])
        h = _relu(_bdot(h, p["pr_h2_w"]) + p["pr_h2_b"])
        head = _bdot(h, p["pr_head_w"]) + p["pr_head_b"]
        gi = head[:, :3 * DETER]
        pr_mean = head[:, 3 * DETER:3 * DETER + STOCH]
        pr_std = _softplus(head[:, 3 * DETER + STOCH:] + 0.54) + MIN_STDDEV
        pr_samp = pr_mean + pr_std * nz_pr_seq[t]
        pr_det = gru(gi, det)
        if use_observation:
            emb = _relu(_bdot(obs_seq[t], p["obs_w"]) + p["obs_b"])
            h2 = _relu(_bdot(pr_det, p["po_h1_wd"]) + _bdot(emb, p["po_h1_we"])
                       + p["po_h1_b"])
            h2 = _relu(_bdot(h2, p["po_h2_w"]) + p["po_h2_b"])
            head2 = _bdot(h2, p["po_head_w"]) + p["po_head_b"]
            gi2 = head2[:, :3 * DETER]
            po_mean = head2[:, 3 * DETER:3 * DETER + STOCH]
            po_std = _softplus(head2[:, 3 * DETER + STOCH:] + 0.54) + MIN_STDDEV
            po_samp = po_mean + po_std * nz_po_seq[t]
            po_det = gru(gi2, pr_det)
        else:
            po_mean, po_std, po_samp, po_det = pr_mean, pr_std, pr_samp, pr_det
        outs.append((pr_mean, pr_std, pr_samp, pr_det,
                     po_mean, po_std, po_samp, po_det))
        sample, det = po_samp, po_det
    return [jnp.stack(x) for x in zip(*outs)]


# ----------------------------------------------------------------------------
if __name__ == "__main__":
    key = jax.random.PRNGKey(0)
    kp, ks, kd, ko, kc, k1, k2 = jax.random.split(key, 7)
    T = 4

    params = make_params(kp)
    init_state = {
        "sample": jax.random.normal(ks, (BATCH, STOCH), jnp.float32),
        "det_state": jax.random.normal(kd, (BATCH, DETER), jnp.float32),
    }
    obs_seq = jax.random.normal(ko, (T, BATCH, OBS_DIM), jnp.float32)
    # context carries a singleton dim that gets squeezed, like the PyTorch code
    context_seq = jax.random.normal(kc, (T, BATCH, 1, DETER), jnp.float32)
    nz_pr = jax.random.normal(k1, (T, BATCH, STOCH), jnp.float32)
    nz_po = jax.random.normal(k2, (T, BATCH, STOCH), jnp.float32)

    # full (prior + posterior) rollout
    out = rssm_rollout(params, init_state, obs_seq, context_seq, nz_pr, nz_po,
                       use_observation=True)
    jax.block_until_ready(out)

    # verify against the pure-JAX reference (same bf16 weights; loose tolerance
    # only covers bf16 operand-rounding / accumulation-order differences)
    ref = reference_rollout(params, init_state, obs_seq,
                            context_seq[:, :, 0, :], nz_pr, nz_po,
                            use_observation=True)
    prior, posterior = out["out"]
    got = (prior["mean"], prior["stddev"], prior["sample"],
           prior["det_state"], posterior["mean"], posterior["stddev"],
           posterior["sample"], posterior["det_state"])
    for g, r in zip(got, ref):
        assert jnp.allclose(g, r, atol=1e-2, rtol=1e-2), "mismatch vs reference"

    # prior-only path: no obs / posterior work (or DMA) at all
    out_pr = rssm_rollout(params, init_state, obs_seq, context_seq, nz_pr,
                          nz_po, use_observation=False)
    jax.block_until_ready(out_pr)
    ref_pr = reference_rollout(params, init_state, obs_seq,
                               context_seq[:, :, 0, :], nz_pr, nz_po,
                               use_observation=False)
    prior2 = out_pr["out"][0]
    got2 = (prior2["mean"], prior2["stddev"], prior2["sample"],
            prior2["det_state"])
    for g, r in zip(got2, ref_pr[:4]):
        assert jnp.allclose(g, r, atol=1e-2, rtol=1e-2), "mismatch (prior-only)"

    # single-step interface mirroring RSSMCell.forward
    step = rssm_cell_forward(params, {"state": init_state},
                             [obs_seq[0], context_seq[0]], True,
                             nz_pr[0], nz_po[0])
    jax.block_until_ready(step)
    assert jnp.allclose(step["out"][0]["mean"], ref[0][0],
                        atol=1e-2, rtol=1e-2), "mismatch (single step)"

    print("KERNEL_OK")
</pallas_src>

<mosaic_0001>
module attributes {stable_mosaic.version = 11 : i64} {
  func.func @kernel(%arg0: i32, %arg1: memref<8x32xf32, #tpu.memory_space<vmem>>, %arg2: memref<8x128xf32, #tpu.memory_space<vmem>>, %arg3: memref<1x8x128xf32, #tpu.memory_space<vmem>>, %arg4: memref<1x8x4096xf32, #tpu.memory_space<vmem>>, %arg5: memref<1x8x32xf32, #tpu.memory_space<vmem>>, %arg6: memref<1x8x32xf32, #tpu.memory_space<vmem>>, %arg7: memref<32x128xbf16, #tpu.memory_space<vmem>>, %arg8: memref<128x128xbf16, #tpu.memory_space<vmem>>, %arg9: memref<1x128xf32, #tpu.memory_space<vmem>>, %arg10: memref<128x128xbf16, #tpu.memory_space<vmem>>, %arg11: memref<1x128xf32, #tpu.memory_space<vmem>>, %arg12: memref<128x448xbf16, #tpu.memory_space<vmem>>, %arg13: memref<1x448xf32, #tpu.memory_space<vmem>>, %arg14: memref<4096x128xbf16, #tpu.memory_space<vmem>>, %arg15: memref<1x128xf32, #tpu.memory_space<vmem>>, %arg16: memref<128x128xbf16, #tpu.memory_space<vmem>>, %arg17: memref<128x128xbf16, #tpu.memory_space<vmem>>, %arg18: memref<1x128xf32, #tpu.memory_space<vmem>>, %arg19: memref<128x128xbf16, #tpu.memory_space<vmem>>, %arg20: memref<1x128xf32, #tpu.memory_space<vmem>>, %arg21: memref<128x448xbf16, #tpu.memory_space<vmem>>, %arg22: memref<1x448xf32, #tpu.memory_space<vmem>>, %arg23: memref<128x384xbf16, #tpu.memory_space<vmem>>, %arg24: memref<1x384xf32, #tpu.memory_space<vmem>>, %arg25: memref<1x8x96xf32, #tpu.memory_space<vmem>>, %arg26: memref<1x8x128xf32, #tpu.memory_space<vmem>>, %arg27: memref<1x8x96xf32, #tpu.memory_space<vmem>>, %arg28: memref<1x8x128xf32, #tpu.memory_space<vmem>>, %arg29: memref<8x32xf32, #tpu.memory_space<vmem>>, %arg30: memref<8x128xf32, #tpu.memory_space<vmem>>) attributes {dimension_semantics = [#tpu.dimension_semantics<arbitrary>], iteration_bounds = array<i64: 4>, scalar_prefetch = 0 : i64, scratch_operands = 2 : i64, tpu.core_type = #tpu.core_type<tc>, window_params = [{pipeline_mode = #tpu.pipeline_mode<synchronous>, transform_indices = @transform_0, window_bounds = array<i64: 8, 32>}, {pipeline_mode = #tpu.pipeline_mode<synchronous>, transform_indices = @transform_1, window_bounds = array<i64: 8, 128>}, {transform_indices = @transform_2, window_bounds = array<i64: 1, 8, 128>}, {transform_indices = @transform_3, window_bounds = array<i64: 1, 8, 4096>}, {transform_indices = @transform_4, window_bounds = array<i64: 1, 8, 32>}, {transform_indices = @transform_5, window_bounds = array<i64: 1, 8, 32>}, {pipeline_mode = #tpu.pipeline_mode<synchronous>, transform_indices = @transform_6, window_bounds = array<i64: 32, 128>}, {pipeline_mode = #tpu.pipeline_mode<synchronous>, transform_indices = @transform_7, window_bounds = array<i64: 128, 128>}, {pipeline_mode = #tpu.pipeline_mode<synchronous>, transform_indices = @transform_8, window_bounds = array<i64: 1, 128>}, {pipeline_mode = #tpu.pipeline_mode<synchronous>, transform_indices = @transform_9, window_bounds = array<i64: 128, 128>}, {pipeline_mode = #tpu.pipeline_mode<synchronous>, transform_indices = @transform_10, window_bounds = array<i64: 1, 128>}, {pipeline_mode = #tpu.pipeline_mode<synchronous>, transform_indices = @transform_11, window_bounds = array<i64: 128, 448>}, {pipeline_mode = #tpu.pipeline_mode<synchronous>, transform_indices = @transform_12, window_bounds = array<i64: 1, 448>}, {pipeline_mode = #tpu.pipeline_mode<synchronous>, transform_indices = @transform_13, window_bounds = array<i64: 4096, 128>}, {pipeline_mode = #tpu.pipeline_mode<synchronous>, transform_indices = @transform_14, window_bounds = array<i64: 1, 128>}, {pipeline_mode = #tpu.pipeline_mode<synchronous>, transform_indices = @transform_15, window_bounds = array<i64: 128, 128>}, {pipeline_mode = #tpu.pipeline_mode<synchronous>, transform_indices = @transform_16, window_bounds = array<i64: 128, 128>}, {pipeline_mode = #tpu.pipeline_mode<synchronous>, transform_indices = @transform_17, window_bounds = array<i64: 1, 128>}, {pipeline_mode = #tpu.pipeline_mode<synchronous>, transform_indices = @transform_18, window_bounds = array<i64: 128, 128>}, {pipeline_mode = #tpu.pipeline_mode<synchronous>, transform_indices = @transform_19, window_bounds = array<i64: 1, 128>}, {pipeline_mode = #tpu.pipeline_mode<synchronous>, transform_indices = @transform_20, window_bounds = array<i64: 128, 448>}, {pipeline_mode = #tpu.pipeline_mode<synchronous>, transform_indices = @transform_21, window_bounds = array<i64: 1, 448>}, {pipeline_mode = #tpu.pipeline_mode<synchronous>, transform_indices = @transform_22, window_bounds = array<i64: 128, 384>}, {pipeline_mode = #tpu.pipeline_mode<synchronous>, transform_indices = @transform_23, window_bounds = array<i64: 1, 384>}, {transform_indices = @transform_24, window_bounds = array<i64: 1, 8, 96>}, {transform_indices = @transform_25, window_bounds = array<i64: 1, 8, 128>}, {transform_indices = @transform_26, window_bounds = array<i64: 1, 8, 96>}, {transform_indices = @transform_27, window_bounds = array<i64: 1, 8, 128>}]} {
    %c0_i32 = arith.constant 0 : i32
    %0 = arith.cmpi eq, %arg0, %c0_i32 : i32
    %1 = arith.extui %0 : i1 to i32
    %c0_i32_0 = arith.constant 0 : i32
    %2 = arith.cmpi ne, %1, %c0_i32_0 : i32
    scf.if %2 {
      %c0_101 = arith.constant 0 : index
      %c0_102 = arith.constant 0 : index
      %185 = vector.load %arg1[%c0_101, %c0_102] : memref<8x32xf32, #tpu.memory_space<vmem>>, vector<8x32xf32>
      %c0_103 = arith.constant 0 : index
      %c0_104 = arith.constant 0 : index
      %186 = vector.load %arg29[%c0_103, %c0_104] : memref<8x32xf32, #tpu.memory_space<vmem>>, vector<8x32xf32>
      tpu.vector_store %arg29[%c0_103, %c0_104], %185 {strides = array<i32>} : memref<8x32xf32, #tpu.memory_space<vmem>>, vector<8x32xf32>,
      %c0_105 = arith.constant 0 : index
      %c0_106 = arith.constant 0 : index
      %187 = vector.load %arg2[%c0_105, %c0_106] : memref<8x128xf32, #tpu.memory_space<vmem>>, vector<8x128xf32>
      %c0_107 = arith.constant 0 : index
      %c0_108 = arith.constant 0 : index
      %188 = vector.load %arg30[%c0_107, %c0_108] : memref<8x128xf32, #tpu.memory_space<vmem>>, vector<8x128xf32>
      tpu.vector_store %arg30[%c0_107, %c0_108], %187 {strides = array<i32>} : memref<8x128xf32, #tpu.memory_space<vmem>>, vector<8x128xf32>,
    } else {
    }
    %c0 = arith.constant 0 : index
    %c0_1 = arith.constant 0 : index
    %3 = vector.load %arg29[%c0, %c0_1] : memref<8x32xf32, #tpu.memory_space<vmem>>, vector<8x32xf32>
    %c0_2 = arith.constant 0 : index
    %c0_3 = arith.constant 0 : index
    %4 = vector.load %arg30[%c0_2, %c0_3] : memref<8x128xf32, #tpu.memory_space<vmem>>, vector<8x128xf32>
    %c0_4 = arith.constant 0 : index
    %c0_5 = arith.constant 0 : index
    %c0_6 = arith.constant 0 : index
    %5 = vector.load %arg3[%c0_4, %c0_5, %c0_6] : memref<1x8x128xf32, #tpu.memory_space<vmem>>, vector<1x8x128xf32>
    %6 = vector.shape_cast %5 : vector<1x8x128xf32> to vector<8x128xf32>
    %c0_7 = arith.constant 0 : index
    %c0_8 = arith.constant 0 : index
    %7 = vector.load %arg7[%c0_7, %c0_8] : memref<32x128xbf16, #tpu.memory_space<vmem>>, vector<32x128xbf16>
    %8 = arith.truncf %3 : vector<8x32xf32> to vector<8x32xbf16>
    %cst = arith.constant dense<0.000000e+00> : vector<8x128xf32>
    %9 = tpu.matmul %8, %7, %cst {dimension_numbers = #tpu.dot_dimension_numbers<[1], [0], [0], [1], [0, 0, 1, 1], [], []>} : vector<8x32xbf16>, vector<32x128xbf16>, vector<8x128xf32> -> vector<8x128xf32>
    %c0_9 = arith.constant 0 : index
    %c0_10 = arith.constant 0 : index
    %10 = vector.load %arg8[%c0_9, %c0_10] : memref<128x128xbf16, #tpu.memory_space<vmem>>, vector<128x128xbf16>
    %11 = arith.truncf %6 : vector<8x128xf32> to vector<8x128xbf16>
    %cst_11 = arith.constant dense<0.000000e+00> : vector<8x128xf32>
    %12 = tpu.matmul %11, %10, %cst_11 {dimension_numbers = #tpu.dot_dimension_numbers<[1], [0], [0], [1], [0, 0, 1, 1], [], []>} : vector<8x128xbf16>, vector<128x128xbf16>, vector<8x128xf32> -> vector<8x128xf32>
    %13 = arith.addf %9, %12 : vector<8x128xf32>
    %c0_12 = arith.constant 0 : index
    %c0_13 = arith.constant 0 : index
    %14 = vector.load %arg9[%c0_12, %c0_13] : memref<1x128xf32, #tpu.memory_space<vmem>>, vector<1x128xf32>
    %15 = vector.broadcast %14 : vector<1x128xf32> to vector<8x128xf32>
    %16 = arith.addf %13, %15 : vector<8x128xf32>
    %cst_14 = arith.constant 0.000000e+00 : f32
    %17 = vector.broadcast %cst_14 : f32 to vector<8x128xf32>
    %18 = arith.maximumf %16, %17 : vector<8x128xf32>
    %c0_15 = arith.constant 0 : index
    %c0_16 = arith.constant 0 : index
    %19 = vector.load %arg10[%c0_15, %c0_16] : memref<128x128xbf16, #tpu.memory_space<vmem>>, vector<128x128xbf16>
    %20 = arith.truncf %18 : vector<8x128xf32> to vector<8x128xbf16>
    %cst_17 = arith.constant dense<0.000000e+00> : vector<8x128xf32>
    %21 = tpu.matmul %20, %19, %cst_17 {dimension_numbers = #tpu.dot_dimension_numbers<[1], [0], [0], [1], [0, 0, 1, 1], [], []>} : vector<8x128xbf16>, vector<128x128xbf16>, vector<8x128xf32> -> vector<8x128xf32>
    %c0_18 = arith.constant 0 : index
    %c0_19 = arith.constant 0 : index
    %22 = vector.load %arg11[%c0_18, %c0_19] : memref<1x128xf32, #tpu.memory_space<vmem>>, vector<1x128xf32>
    %23 = vector.broadcast %22 : vector<1x128xf32> to vector<8x128xf32>
    %24 = arith.addf %21, %23 : vector<8x128xf32>
    %cst_20 = arith.constant 0.000000e+00 : f32
    %25 = vector.broadcast %cst_20 : f32 to vector<8x128xf32>
    %26 = arith.maximumf %24, %25 : vector<8x128xf32>
    %c0_21 = arith.constant 0 : index
    %c0_22 = arith.constant 0 : index
    %27 = vector.load %arg12[%c0_21, %c0_22] : memref<128x448xbf16, #tpu.memory_space<vmem>>, vector<128x448xbf16>
    %28 = arith.truncf %26 : vector<8x128xf32> to vector<8x128xbf16>
    %cst_23 = arith.constant dense<0.000000e+00> : vector<8x448xf32>
    %29 = tpu.matmul %28, %27, %cst_23 {dimension_numbers = #tpu.dot_dimension_numbers<[1], [0], [0], [1], [0, 0, 1, 1], [], []>} : vector<8x128xbf16>, vector<128x448xbf16>, vector<8x448xf32> -> vector<8x448xf32>
    %c0_24 = arith.constant 0 : index
    %c0_25 = arith.constant 0 : index
    %30 = vector.load %arg13[%c0_24, %c0_25] : memref<1x448xf32, #tpu.memory_space<vmem>>, vector<1x448xf32>
    %31 = vector.broadcast %30 : vector<1x448xf32> to vector<8x448xf32>
    %32 = arith.addf %29, %31 : vector<8x448xf32>
    %33 = vector.extract_strided_slice %32 {offsets = [0, 0], sizes = [8, 384], strides = [1, 1]} : vector<8x448xf32> to vector<8x384xf32>
    %34 = vector.extract_strided_slice %32 {offsets = [0, 384], sizes = [8, 32], strides = [1, 1]} : vector<8x448xf32> to vector<8x32xf32>
    %35 = vector.extract_strided_slice %32 {offsets = [0, 416], sizes = [8, 32], strides = [1, 1]} : vector<8x448xf32> to vector<8x32xf32>
    %cst_26 = arith.constant 5.400000e-01 : f32
    %36 = vector.broadcast %cst_26 : f32 to vector<8x32xf32>
    %37 = arith.addf %35, %36 : vector<8x32xf32>
    %cst_27 = arith.constant 2.000000e+01 : f32
    %38 = vector.broadcast %cst_27 : f32 to vector<8x32xf32>
    %39 = arith.cmpf ogt, %37, %38 : vector<8x32xf32>
    %cst_28 = arith.constant 2.000000e+01 : f32
    %40 = vector.broadcast %cst_28 : f32 to vector<8x32xf32>
    %41 = arith.minimumf %37, %40 : vector<8x32xf32>
    %42 = math.exp %41 : vector<8x32xf32>
    %43 = math.log1p %42 : vector<8x32xf32>
    %44 = arith.select %39, %37, %43 : vector<8x32xi1>, vector<8x32xf32>
    %cst_29 = arith.constant 9.99999974E-5 : f32
    %45 = vector.broadcast %cst_29 : f32 to vector<8x32xf32>
    %46 = arith.addf %44, %45 : vector<8x32xf32>
    %c0_30 = arith.constant 0 : index
    %c0_31 = arith.constant 0 : index
    %c0_32 = arith.constant 0 : index
    %47 = vector.load %arg5[%c0_30, %c0_31, %c0_32] : memref<1x8x32xf32, #tpu.memory_space<vmem>>, vector<1x8x32xf32>
    %48 = vector.shape_cast %47 : vector<1x8x32xf32> to vector<8x32xf32>
    %49 = arith.mulf %46, %48 : vector<8x32xf32>
    %50 = arith.addf %34, %49 : vector<8x32xf32>
    %c0_33 = arith.constant 0 : index
    %c0_34 = arith.constant 0 : index
    %51 = vector.load %arg23[%c0_33, %c0_34] : memref<128x384xbf16, #tpu.memory_space<vmem>>, vector<128x384xbf16>
    %52 = arith.truncf %4 : vector<8x128xf32> to vector<8x128xbf16>
    %cst_35 = arith.constant dense<0.000000e+00> : vector<8x384xf32>
    %53 = tpu.matmul %52, %51, %cst_35 {dimension_numbers = #tpu.dot_dimension_numbers<[1], [0], [0], [1], [0, 0, 1, 1], [], []>} : vector<8x128xbf16>, vector<128x384xbf16>, vector<8x384xf32> -> vector<8x384xf32>
    %c0_36 = arith.constant 0 : index
    %c0_37 = arith.constant 0 : index
    %54 = vector.load %arg24[%c0_36, %c0_37] : memref<1x384xf32, #tpu.memory_space<vmem>>, vector<1x384xf32>
    %55 = vector.broadcast %54 : vector<1x384xf32> to vector<8x384xf32>
    %56 = arith.addf %53, %55 : vector<8x384xf32>
    %57 = vector.extract_strided_slice %33 {offsets = [0, 0], sizes = [8, 128], strides = [1, 1]} : vector<8x384xf32> to vector<8x128xf32>
    %58 = vector.extract_strided_slice %56 {offsets = [0, 0], sizes = [8, 128], strides = [1, 1]} : vector<8x384xf32> to vector<8x128xf32>
    %59 = arith.addf %57, %58 : vector<8x128xf32>
    %60 = arith.negf %59 : vector<8x128xf32>
    %61 = math.exp %60 : vector<8x128xf32>
    %cst_38 = arith.constant 1.000000e+00 : f32
    %62 = vector.broadcast %cst_38 : f32 to vector<8x128xf32>
    %63 = arith.addf %62, %61 : vector<8x128xf32>
    %64 = arith.divf %62, %63 : vector<8x128xf32>
    %65 = vector.extract_strided_slice %33 {offsets = [0, 128], sizes = [8, 128], strides = [1, 1]} : vector<8x384xf32> to vector<8x128xf32>
    %66 = vector.extract_strided_slice %56 {offsets = [0, 128], sizes = [8, 128], strides = [1, 1]} : vector<8x384xf32> to vector<8x128xf32>
    %67 = arith.addf %65, %66 : vector<8x128xf32>
    %68 = arith.negf %67 : vector<8x128xf32>
    %69 = math.exp %68 : vector<8x128xf32>
    %cst_39 = arith.constant 1.000000e+00 : f32
    %70 = vector.broadcast %cst_39 : f32 to vector<8x128xf32>
    %71 = arith.addf %70, %69 : vector<8x128xf32>
    %72 = arith.divf %70, %71 : vector<8x128xf32>
    %73 = vector.extract_strided_slice %33 {offsets = [0, 256], sizes = [8, 128], strides = [1, 1]} : vector<8x384xf32> to vector<8x128xf32>
    %74 = vector.extract_strided_slice %56 {offsets = [0, 256], sizes = [8, 128], strides = [1, 1]} : vector<8x384xf32> to vector<8x128xf32>
    %75 = arith.mulf %64, %74 : vector<8x128xf32>
    %76 = arith.addf %73, %75 : vector<8x128xf32>
    %77 = math.tanh %76 : vector<8x128xf32>
    %cst_40 = arith.constant 1.000000e+00 : f32
    %78 = vector.broadcast %cst_40 : f32 to vector<8x128xf32>
    %79 = arith.subf %78, %72 : vector<8x128xf32>
    %80 = arith.mulf %79, %77 : vector<8x128xf32>
    %81 = arith.mulf %72, %4 : vector<8x128xf32>
    %82 = arith.addf %80, %81 : vector<8x128xf32>
    %83 = tpu.concatenate %34, %46, %50 in 1 : vector<8x32xf32>, vector<8x32xf32>, vector<8x32xf32> -> vector<8x96xf32>
    %c0_41 = arith.constant 0 : index
    %c0_42 = arith.constant 0 : index
    %c0_43 = arith.constant 0 : index
    %84 = vector.load %arg25[%c0_41, %c0_42, %c0_43] : memref<1x8x96xf32, #tpu.memory_space<vmem>>, vector<1x8x96xf32>
    %85 = vector.shape_cast %84 : vector<1x8x96xf32> to vector<8x96xf32>
    %86 = vector.shape_cast %83 : vector<8x96xf32> to vector<1x8x96xf32>
    tpu.vector_store %arg25[%c0_41, %c0_42, %c0_43], %86 {strides = array<i32>} : memref<1x8x96xf32, #tpu.memory_space<vmem>>, vector<1x8x96xf32>,
    %c0_44 = arith.constant 0 : index
    %c0_45 = arith.constant 0 : index
    %c0_46 = arith.constant 0 : index
    %87 = vector.load %arg26[%c0_44, %c0_45, %c0_46] : memref<1x8x128xf32, #tpu.memory_space<vmem>>, vector<1x8x128xf32>
    %88 = vector.shape_cast %87 : vector<1x8x128xf32> to vector<8x128xf32>
    %89 = vector.shape_cast %82 : vector<8x128xf32> to vector<1x8x128xf32>
    tpu.vector_store %arg26[%c0_44, %c0_45, %c0_46], %89 {strides = array<i32>} : memref<1x8x128xf32, #tpu.memory_space<vmem>>, vector<1x8x128xf32>,
    %c0_47 = arith.constant 0 : index
    %c0_48 = arith.constant 0 : index
    %c0_49 = arith.constant 0 : index
    %90 = vector.load %arg4[%c0_47, %c0_48, %c0_49] : memref<1x8x4096xf32, #tpu.memory_space<vmem>>, vector<1x8x4096xf32>
    %91 = vector.shape_cast %90 : vector<1x8x4096xf32> to vector<8x4096xf32>
    %c0_50 = arith.constant 0 : index
    %c0_51 = arith.constant 0 : index
    %92 = vector.load %arg14[%c0_50, %c0_51] : memref<4096x128xbf16, #tpu.memory_space<vmem>>, vector<4096x128xbf16>
    %93 = arith.truncf %91 : vector<8x4096xf32> to vector<8x4096xbf16>
    %cst_52 = arith.constant dense<0.000000e+00> : vector<8x128xf32>
    %94 = tpu.matmul %93, %92, %cst_52 {dimension_numbers = #tpu.dot_dimension_numbers<[1], [0], [0], [1], [0, 0, 1, 1], [], []>} : vector<8x4096xbf16>, vector<4096x128xbf16>, vector<8x128xf32> -> vector<8x128xf32>
    %c0_53 = arith.constant 0 : index
    %c0_54 = arith.constant 0 : index
    %95 = vector.load %arg15[%c0_53, %c0_54] : memref<1x128xf32, #tpu.memory_space<vmem>>, vector<1x128xf32>
    %96 = vector.broadcast %95 : vector<1x128xf32> to vector<8x128xf32>
    %97 = arith.addf %94, %96 : vector<8x128xf32>
    %cst_55 = arith.constant 0.000000e+00 : f32
    %98 = vector.broadcast %cst_55 : f32 to vector<8x128xf32>
    %99 = arith.maximumf %97, %98 : vector<8x128xf32>
    %c0_56 = arith.constant 0 : index
    %c0_57 = arith.constant 0 : index
    %100 = vector.load %arg16[%c0_56, %c0_57] : memref<128x128xbf16, #tpu.memory_space<vmem>>, vector<128x128xbf16>
    %101 = arith.truncf %82 : vector<8x128xf32> to vector<8x128xbf16>
    %cst_58 = arith.constant dense<0.000000e+00> : vector<8x128xf32>
    %102 = tpu.matmul %101, %100, %cst_58 {dimension_numbers = #tpu.dot_dimension_numbers<[1], [0], [0], [1], [0, 0, 1, 1], [], []>} : vector<8x128xbf16>, vector<128x128xbf16>, vector<8x128xf32> -> vector<8x128xf32>
    %c0_59 = arith.constant 0 : index
    %c0_60 = arith.constant 0 : index
    %103 = vector.load %arg17[%c0_59, %c0_60] : memref<128x128xbf16, #tpu.memory_space<vmem>>, vector<128x128xbf16>
    %104 = arith.truncf %99 : vector<8x128xf32> to vector<8x128xbf16>
    %cst_61 = arith.constant dense<0.000000e+00> : vector<8x128xf32>
    %105 = tpu.matmul %104, %103, %cst_61 {dimension_numbers = #tpu.dot_dimension_numbers<[1], [0], [0], [1], [0, 0, 1, 1], [], []>} : vector<8x128xbf16>, vector<128x128xbf16>, vector<8x128xf32> -> vector<8x128xf32>
    %106 = arith.addf %102, %105 : vector<8x128xf32>
    %c0_62 = arith.constant 0 : index
    %c0_63 = arith.constant 0 : index
    %107 = vector.load %arg18[%c0_62, %c0_63] : memref<1x128xf32, #tpu.memory_space<vmem>>, vector<1x128xf32>
    %108 = vector.broadcast %107 : vector<1x128xf32> to vector<8x128xf32>
    %109 = arith.addf %106, %108 : vector<8x128xf32>
    %cst_64 = arith.constant 0.000000e+00 : f32
    %110 = vector.broadcast %cst_64 : f32 to vector<8x128xf32>
    %111 = arith.maximumf %109, %110 : vector<8x128xf32>
    %c0_65 = arith.constant 0 : index
    %c0_66 = arith.constant 0 : index
    %112 = vector.load %arg19[%c0_65, %c0_66] : memref<128x128xbf16, #tpu.memory_space<vmem>>, vector<128x128xbf16>
    %113 = arith.truncf %111 : vector<8x128xf32> to vector<8x128xbf16>
    %cst_67 = arith.constant dense<0.000000e+00> : vector<8x128xf32>
    %114 = tpu.matmul %113, %112, %cst_67 {dimension_numbers = #tpu.dot_dimension_numbers<[1], [0], [0], [1], [0, 0, 1, 1], [], []>} : vector<8x128xbf16>, vector<128x128xbf16>, vector<8x128xf32> -> vector<8x128xf32>
    %c0_68 = arith.constant 0 : index
    %c0_69 = arith.constant 0 : index
    %115 = vector.load %arg20[%c0_68, %c0_69] : memref<1x128xf32, #tpu.memory_space<vmem>>, vector<1x128xf32>
    %116 = vector.broadcast %115 : vector<1x128xf32> to vector<8x128xf32>
    %117 = arith.addf %114, %116 : vector<8x128xf32>
    %cst_70 = arith.constant 0.000000e+00 : f32
    %118 = vector.broadcast %cst_70 : f32 to vector<8x128xf32>
    %119 = arith.maximumf %117, %118 : vector<8x128xf32>
    %c0_71 = arith.constant 0 : index
    %c0_72 = arith.constant 0 : index
    %120 = vector.load %arg21[%c0_71, %c0_72] : memref<128x448xbf16, #tpu.memory_space<vmem>>, vector<128x448xbf16>
    %121 = arith.truncf %119 : vector<8x128xf32> to vector<8x128xbf16>
    %cst_73 = arith.constant dense<0.000000e+00> : vector<8x448xf32>
    %122 = tpu.matmul %121, %120, %cst_73 {dimension_numbers = #tpu.dot_dimension_numbers<[1], [0], [0], [1], [0, 0, 1, 1], [], []>} : vector<8x128xbf16>, vector<128x448xbf16>, vector<8x448xf32> -> vector<8x448xf32>
    %c0_74 = arith.constant 0 : index
    %c0_75 = arith.constant 0 : index
    %123 = vector.load %arg22[%c0_74, %c0_75] : memref<1x448xf32, #tpu.memory_space<vmem>>, vector<1x448xf32>
    %124 = vector.broadcast %123 : vector<1x448xf32> to vector<8x448xf32>
    %125 = arith.addf %122, %124 : vector<8x448xf32>
    %126 = vector.extract_strided_slice %125 {offsets = [0, 0], sizes = [8, 384], strides = [1, 1]} : vector<8x448xf32> to vector<8x384xf32>
    %127 = vector.extract_strided_slice %125 {offsets = [0, 384], sizes = [8, 32], strides = [1, 1]} : vector<8x448xf32> to vector<8x32xf32>
    %128 = vector.extract_strided_slice %125 {offsets = [0, 416], sizes = [8, 32], strides = [1, 1]} : vector<8x448xf32> to vector<8x32xf32>
    %cst_76 = arith.constant 5.400000e-01 : f32
    %129 = vector.broadcast %cst_76 : f32 to vector<8x32xf32>
    %130 = arith.addf %128, %129 : vector<8x32xf32>
    %cst_77 = arith.constant 2.000000e+01 : f32
    %131 = vector.broadcast %cst_77 : f32 to vector<8x32xf32>
    %132 = arith.cmpf ogt, %130, %131 : vector<8x32xf32>
    %cst_78 = arith.constant 2.000000e+01 : f32
    %133 = vector.broadcast %cst_78 : f32 to vector<8x32xf32>
    %134 = arith.minimumf %130, %133 : vector<8x32xf32>
    %135 = math.exp %134 : vector<8x32xf32>
    %136 = math.log1p %135 : vector<8x32xf32>
    %137 = arith.select %132, %130, %136 : vector<8x32xi1>, vector<8x32xf32>
    %cst_79 = arith.constant 9.99999974E-5 : f32
    %138 = vector.broadcast %cst_79 : f32 to vector<8x32xf32>
    %139 = arith.addf %137, %138 : vector<8x32xf32>
    %c0_80 = arith.constant 0 : index
    %c0_81 = arith.constant 0 : index
    %c0_82 = arith.constant 0 : index
    %140 = vector.load %arg6[%c0_80, %c0_81, %c0_82] : memref<1x8x32xf32, #tpu.memory_space<vmem>>, vector<1x8x32xf32>
    %141 = vector.shape_cast %140 : vector<1x8x32xf32> to vector<8x32xf32>
    %142 = arith.mulf %139, %141 : vector<8x32xf32>
    %143 = arith.addf %127, %142 : vector<8x32xf32>
    %c0_83 = arith.constant 0 : index
    %c0_84 = arith.constant 0 : index
    %144 = vector.load %arg23[%c0_83, %c0_84] : memref<128x384xbf16, #tpu.memory_space<vmem>>, vector<128x384xbf16>
    %145 = arith.truncf %82 : vector<8x128xf32> to vector<8x128xbf16>
    %cst_85 = arith.constant dense<0.000000e+00> : vector<8x384xf32>
    %146 = tpu.matmul %145, %144, %cst_85 {dimension_numbers = #tpu.dot_dimension_numbers<[1], [0], [0], [1], [0, 0, 1, 1], [], []>} : vector<8x128xbf16>, vector<128x384xbf16>, vector<8x384xf32> -> vector<8x384xf32>
    %c0_86 = arith.constant 0 : index
    %c0_87 = arith.constant 0 : index
    %147 = vector.load %arg24[%c0_86, %c0_87] : memref<1x384xf32, #tpu.memory_space<vmem>>, vector<1x384xf32>
    %148 = vector.broadcast %147 : vector<1x384xf32> to vector<8x384xf32>
    %149 = arith.addf %146, %148 : vector<8x384xf32>
    %150 = vector.extract_strided_slice %126 {offsets = [0, 0], sizes = [8, 128], strides = [1, 1]} : vector<8x384xf32> to vector<8x128xf32>
    %151 = vector.extract_strided_slice %149 {offsets = [0, 0], sizes = [8, 128], strides = [1, 1]} : vector<8x384xf32> to vector<8x128xf32>
    %152 = arith.addf %150, %151 : vector<8x128xf32>
    %153 = arith.negf %152 : vector<8x128xf32>
    %154 = math.exp %153 : vector<8x128xf32>
    %cst_88 = arith.constant 1.000000e+00 : f32
    %155 = vector.broadcast %cst_88 : f32 to vector<8x128xf32>
    %156 = arith.addf %155, %154 : vector<8x128xf32>
    %157 = arith.divf %155, %156 : vector<8x128xf32>
    %158 = vector.extract_strided_slice %126 {offsets = [0, 128], sizes = [8, 128], strides = [1, 1]} : vector<8x384xf32> to vector<8x128xf32>
    %159 = vector.extract_strided_slice %149 {offsets = [0, 128], sizes = [8, 128], strides = [1, 1]} : vector<8x384xf32> to vector<8x128xf32>
    %160 = arith.addf %158, %159 : vector<8x128xf32>
    %161 = arith.negf %160 : vector<8x128xf32>
    %162 = math.exp %161 : vector<8x128xf32>
    %cst_89 = arith.constant 1.000000e+00 : f32
    %163 = vector.broadcast %cst_89 : f32 to vector<8x128xf32>
    %164 = arith.addf %163, %162 : vector<8x128xf32>
    %165 = arith.divf %163, %164 : vector<8x128xf32>
    %166 = vector.extract_strided_slice %126 {offsets = [0, 256], sizes = [8, 128], strides = [1, 1]} : vector<8x384xf32> to vector<8x128xf32>
    %167 = vector.extract_strided_slice %149 {offsets = [0, 256], sizes = [8, 128], strides = [1, 1]} : vector<8x384xf32> to vector<8x128xf32>
    %168 = arith.mulf %157, %167 : vector<8x128xf32>
    %169 = arith.addf %166, %168 : vector<8x128xf32>
    %170 = math.tanh %169 : vector<8x128xf32>
    %cst_90 = arith.constant 1.000000e+00 : f32
    %171 = vector.broadcast %cst_90 : f32 to vector<8x128xf32>
    %172 = arith.subf %171, %165 : vector<8x128xf32>
    %173 = arith.mulf %172, %170 : vector<8x128xf32>
    %174 = arith.mulf %165, %82 : vector<8x128xf32>
    %175 = arith.addf %173, %174 : vector<8x128xf32>
    %176 = tpu.concatenate %127, %139, %143 in 1 : vector<8x32xf32>, vector<8x32xf32>, vector<8x32xf32> -> vector<8x96xf32>
    %c0_91 = arith.constant 0 : index
    %c0_92 = arith.constant 0 : index
    %c0_93 = arith.constant 0 : index
    %177 = vector.load %arg27[%c0_91, %c0_92, %c0_93] : memref<1x8x96xf32, #tpu.memory_space<vmem>>, vector<1x8x96xf32>
    %178 = vector.shape_cast %177 : vector<1x8x96xf32> to vector<8x96xf32>
    %179 = vector.shape_cast %176 : vector<8x96xf32> to vector<1x8x96xf32>
    tpu.vector_store %arg27[%c0_91, %c0_92, %c0_93], %179 {strides = array<i32>} : memref<1x8x96xf32, #tpu.memory_space<vmem>>, vector<1x8x96xf32>,
    %c0_94 = arith.constant 0 : index
    %c0_95 = arith.constant 0 : index
    %c0_96 = arith.constant 0 : index
    %180 = vector.load %arg28[%c0_94, %c0_95, %c0_96] : memref<1x8x128xf32, #tpu.memory_space<vmem>>, vector<1x8x128xf32>
    %181 = vector.shape_cast %180 : vector<1x8x128xf32> to vector<8x128xf32>
    %182 = vector.shape_cast %175 : vector<8x128xf32> to vector<1x8x128xf32>
    tpu.vector_store %arg28[%c0_94, %c0_95, %c0_96], %182 {strides = array<i32>} : memref<1x8x128xf32, #tpu.memory_space<vmem>>, vector<1x8x128xf32>,
    %c0_97 = arith.constant 0 : index
    %c0_98 = arith.constant 0 : index
    %183 = vector.load %arg29[%c0_97, %c0_98] : memref<8x32xf32, #tpu.memory_space<vmem>>, vector<8x32xf32>
    tpu.vector_store %arg29[%c0_97, %c0_98], %143 {strides = array<i32>} : memref<8x32xf32, #tpu.memory_space<vmem>>, vector<8x32xf32>,
    %c0_99 = arith.constant 0 : index
    %c0_100 = arith.constant 0 : index
    %184 = vector.load %arg30[%c0_99, %c0_100] : memref<8x128xf32, #tpu.memory_space<vmem>>, vector<8x128xf32>
    tpu.vector_store %arg30[%c0_99, %c0_100], %175 {strides = array<i32>} : memref<8x128xf32, #tpu.memory_space<vmem>>, vector<8x128xf32>,
    return
  }
  func.func @transform_0(%arg0: i32) -> (i32, i32) {
    %c0_i32 = arith.constant 0 : i32
    %c0_i32_0 = arith.constant 0 : i32
    %c0_i32_1 = arith.constant 0 : i32
    return %c0_i32, %c0_i32_0 : i32, i32
  }
  func.func @transform_1(%arg0: i32) -> (i32, i32) {
    %c0_i32 = arith.constant 0 : i32
    %c0_i32_0 = arith.constant 0 : i32
    %c0_i32_1 = arith.constant 0 : i32
    return %c0_i32, %c0_i32_0 : i32, i32
  }
  func.func @transform_2(%arg0: i32) -> (i32, i32, i32) {
    %c0_i32 = arith.constant 0 : i32
    %c0_i32_0 = arith.constant 0 : i32
    %c0_i32_1 = arith.constant 0 : i32
    return %arg0, %c0_i32, %c0_i32_0 : i32, i32, i32
  }
  func.func @transform_3(%arg0: i32) -> (i32, i32, i32) {
    %c0_i32 = arith.constant 0 : i32
    %c0_i32_0 = arith.constant 0 : i32
    %c0_i32_1 = arith.constant 0 : i32
    return %arg0, %c0_i32, %c0_i32_0 : i32, i32, i32
  }
  func.func @transform_4(%arg0: i32) -> (i32, i32, i32) {
    %c0_i32 = arith.constant 0 : i32
    %c0_i32_0 = arith.constant 0 : i32
    %c0_i32_1 = arith.constant 0 : i32
    return %arg0, %c0_i32, %c0_i32_0 : i32, i32, i32
  }
  func.func @transform_5(%arg0: i32) -> (i32, i32, i32) {
    %c0_i32 = arith.constant 0 : i32
    %c0_i32_0 = arith.constant 0 : i32
    %c0_i32_1 = arith.constant 0 : i32
    return %arg0, %c0_i32, %c0_i32_0 : i32, i32, i32
  }
  func.func @transform_6(%arg0: i32) -> (i32, i32) {
    %c0_i32 = arith.constant 0 : i32
    %c0_i32_0 = arith.constant 0 : i32
    %c0_i32_1 = arith.constant 0 : i32
    return %c0_i32, %c0_i32_0 : i32, i32
  }
  func.func @transform_7(%arg0: i32) -> (i32, i32) {
    %c0_i32 = arith.constant 0 : i32
    %c0_i32_0 = arith.constant 0 : i32
    %c0_i32_1 = arith.constant 0 : i32
    return %c0_i32, %c0_i32_0 : i32, i32
  }
  func.func @transform_8(%arg0: i32) -> (i32, i32) {
    %c0_i32 = arith.constant 0 : i32
    %c0_i32_0 = arith.constant 0 : i32
    %c0_i32_1 = arith.constant 0 : i32
    return %c0_i32, %c0_i32_0 : i32, i32
  }
  func.func @transform_9(%arg0: i32) -> (i32, i32) {
    %c0_i32 = arith.constant 0 : i32
    %c0_i32_0 = arith.constant 0 : i32
    %c0_i32_1 = arith.constant 0 : i32
    return %c0_i32, %c0_i32_0 : i32, i32
  }
  func.func @transform_10(%arg0: i32) -> (i32, i32) {
    %c0_i32 = arith.constant 0 : i32
    %c0_i32_0 = arith.constant 0 : i32
    %c0_i32_1 = arith.constant 0 : i32
    return %c0_i32, %c0_i32_0 : i32, i32
  }
  func.func @transform_11(%arg0: i32) -> (i32, i32) {
    %c0_i32 = arith.constant 0 : i32
    %c0_i32_0 = arith.constant 0 : i32
    %c0_i32_1 = arith.constant 0 : i32
    return %c0_i32, %c0_i32_0 : i32, i32
  }
  func.func @transform_12(%arg0: i32) -> (i32, i32) {
    %c0_i32 = arith.constant 0 : i32
    %c0_i32_0 = arith.constant 0 : i32
    %c0_i32_1 = arith.constant 0 : i32
    return %c0_i32, %c0_i32_0 : i32, i32
  }
  func.func @transform_13(%arg0: i32) -> (i32, i32) {
    %c0_i32 = arith.constant 0 : i32
    %c0_i32_0 = arith.constant 0 : i32
    %c0_i32_1 = arith.constant 0 : i32
    return %c0_i32, %c0_i32_0 : i32, i32
  }
  func.func @transform_14(%arg0: i32) -> (i32, i32) {
    %c0_i32 = arith.constant 0 : i32
    %c0_i32_0 = arith.constant 0 : i32
    %c0_i32_1 = arith.constant 0 : i32
    return %c0_i32, %c0_i32_0 : i32, i32
  }
  func.func @transform_15(%arg0: i32) -> (i32, i32) {
    %c0_i32 = arith.constant 0 : i32
    %c0_i32_0 = arith.constant 0 : i32
    %c0_i32_1 = arith.constant 0 : i32
    return %c0_i32, %c0_i32_0 : i32, i32
  }
  func.func @transform_16(%arg0: i32) -> (i32, i32) {
    %c0_i32 = arith.constant 0 : i32
    %c0_i32_0 = arith.constant 0 : i32
    %c0_i32_1 = arith.constant 0 : i32
    return %c0_i32, %c0_i32_0 : i32, i32
  }
  func.func @transform_17(%arg0: i32) -> (i32, i32) {
    %c0_i32 = arith.constant 0 : i32
    %c0_i32_0 = arith.constant 0 : i32
    %c0_i32_1 = arith.constant 0 : i32
    return %c0_i32, %c0_i32_0 : i32, i32
  }
  func.func @transform_18(%arg0: i32) -> (i32, i32) {
    %c0_i32 = arith.constant 0 : i32
    %c0_i32_0 = arith.constant 0 : i32
    %c0_i32_1 = arith.constant 0 : i32
    return %c0_i32, %c0_i32_0 : i32, i32
  }
  func.func @transform_19(%arg0: i32) -> (i32, i32) {
    %c0_i32 = arith.constant 0 : i32
    %c0_i32_0 = arith.constant 0 : i32
    %c0_i32_1 = arith.constant 0 : i32
    return %c0_i32, %c0_i32_0 : i32, i32
  }
  func.func @transform_20(%arg0: i32) -> (i32, i32) {
    %c0_i32 = arith.constant 0 : i32
    %c0_i32_0 = arith.constant 0 : i32
    %c0_i32_1 = arith.constant 0 : i32
    return %c0_i32, %c0_i32_0 : i32, i32
  }
  func.func @transform_21(%arg0: i32) -> (i32, i32) {
    %c0_i32 = arith.constant 0 : i32
    %c0_i32_0 = arith.constant 0 : i32
    %c0_i32_1 = arith.constant 0 : i32
    return %c0_i32, %c0_i32_0 : i32, i32
  }
  func.func @transform_22(%arg0: i32) -> (i32, i32) {
    %c0_i32 = arith.constant 0 : i32
    %c0_i32_0 = arith.constant 0 : i32
    %c0_i32_1 = arith.constant 0 : i32
    return %c0_i32, %c0_i32_0 : i32, i32
  }
  func.func @transform_23(%arg0: i32) -> (i32, i32) {
    %c0_i32 = arith.constant 0 : i32
    %c0_i32_0 = arith.constant 0 : i32
    %c0_i32_1 = arith.constant 0 : i32
    return %c0_i32, %c0_i32_0 : i32, i32
  }
  func.func @transform_24(%arg0: i32) -> (i32, i32, i32) {
    %c0_i32 = arith.constant 0 : i32
    %c0_i32_0 = arith.constant 0 : i32
    %c0_i32_1 = arith.constant 0 : i32
    return %arg0, %c0_i32, %c0_i32_0 : i32, i32, i32
  }
  func.func @transform_25(%arg0: i32) -> (i32, i32, i32) {
    %c0_i32 = arith.constant 0 : i32
    %c0_i32_0 = arith.constant 0 : i32
    %c0_i32_1 = arith.constant 0 : i32
    return %arg0, %c0_i32, %c0_i32_0 : i32, i32, i32
  }
  func.func @transform_26(%arg0: i32) -> (i32, i32, i32) {
    %c0_i32 = arith.constant 0 : i32
    %c0_i32_0 = arith.constant 0 : i32
    %c0_i32_1 = arith.constant 0 : i32
    return %arg0, %c0_i32, %c0_i32_0 : i32, i32, i32
  }
  func.func @transform_27(%arg0: i32) -> (i32, i32, i32) {
    %c0_i32 = arith.constant 0 : i32
    %c0_i32_0 = arith.constant 0 : i32
    %c0_i32_1 = arith.constant 0 : i32
    return %arg0, %c0_i32, %c0_i32_0 : i32, i32, i32
  }
}

</mosaic_0001>

<bundles_post_ra>
// kernel: rssm_rollout.1
= control target key start
LH: loop header
LB: loop body
LE: loop exit
PB: predicated region body
PF: predicated region fallthrough
CT: control target
= control target key end

     0   :  { %s9652_s0 = inlined_call_operand.vmem [shape: f32[8,32], index: 0, kind: input, shape index: {}]   ;;  %s9653_s1 = inlined_call_operand.hbm [shape: f32[8,128], index: 1, kind: input, shape index: {}]   ;;  %s9654_s2 = inlined_call_operand.hbm [shape: f32[4,8,128], index: 2, kind: input, shape index: {}]   ;;  %s9655_s3 = inlined_call_operand.vmem [shape: f32[4,8,4096], index: 3, kind: input, shape index: {}]   ;;  %s9656_s4 = inlined_call_operand.hbm [shape: f32[4,8,32], index: 4, kind: input, shape index: {}]   ;;  %s9657_s5 = inlined_call_operand.hbm [shape: f32[4,8,32], index: 5, kind: input, shape index: {}]   ;;  %s9658_s6 = inlined_call_operand.hbm [shape: bf16[32,128], index: 6, kind: input, shape index: {}]   ;;  %s9659_s7 = inlined_call_operand.hbm [shape: bf16[128,128], index: 7, kind: input, shape index: {}]   ;;  %s9660_s8 = inlined_call_operand.hbm [shape: f32[1,128], index: 8, kind: input, shape index: {}]   ;;  %s9661_s9 = inlined_call_operand.hbm [shape: bf16[128,128], index: 9, kind: input, shape index: {}]   ;;  %s9662_s10 = inlined_call_operand.hbm [shape: f32[1,128], index: 10, kind: input, shape index: {}]   ;;  %s9663_s11 = inlined_call_operand.vmem [shape: bf16[128,448], index: 11, kind: input, shape index: {}]   ;;  %s9664_s12 = inlined_call_operand.vmem [shape: f32[1,448], index: 12, kind: input, shape index: {}]   ;;  %s9665_s13 = inlined_call_operand.hbm [shape: bf16[4096,128], index: 13, kind: input, shape index: {}]   ;;  %s9666_s14 = inlined_call_operand.hbm [shape: f32[1,128], index: 14, kind: input, shape index: {}]   ;;  %s9667_s15 = inlined_call_operand.hbm [shape: bf16[128,128], index: 15, kind: input, shape index: {}]   ;;  %s9668_s16 = inlined_call_operand.hbm [shape: bf16[128,128], index: 16, kind: input, shape index: {}]   ;;  %s9669_s17 = inlined_call_operand.hbm [shape: f32[1,128], index: 17, kind: input, shape index: {}]   ;;  %s9670_s18 = inlined_call_operand.hbm [shape: bf16[128,128], index: 18, kind: input, shape index: {}]   ;;  %s9671_s19 = inlined_call_operand.hbm [shape: f32[1,128], index: 19, kind: input, shape index: {}]   ;;  %s9672_s20 = inlined_call_operand.vmem [shape: bf16[128,448], index: 20, kind: input, shape index: {}]   ;;  %s9673_s21 = inlined_call_operand.hbm [shape: f32[1,448], index: 21, kind: input, shape index: {}]   ;;  %s9674_s22 = inlined_call_operand.hbm [shape: bf16[128,384], index: 22, kind: input, shape index: {}]   ;;  %s9675_s23 = inlined_call_operand.vmem [shape: f32[1,384], index: 23, kind: input, shape index: {}]   ;;  %s9676_s24 = inlined_call_operand.vmem [shape: f32[4,8,96], index: 24, kind: output, shape index: {0}]   ;;  %s9677_s25 = inlined_call_operand.vmem [shape: f32[4,8,128], index: 25, kind: output, shape index: {1}]   ;;  %s9678_s26 = inlined_call_operand.vmem [shape: f32[4,8,96], index: 26, kind: output, shape index: {2}]   ;;  %s9679_s27 = inlined_call_operand.vmem [shape: f32[4,8,128], index: 27, kind: output, shape index: {3}]  }
   0x1   :  { %9718 = sst [smem:[#allocation46_spill]] %s9652_s0 }
   0x2   :  { %9719 = sst [smem:[#allocation47_spill]] %s9653_s1 }
   0x3   :  { %9720 = sst [smem:[#allocation48_spill]] %s9654_s2 }
   0x4   :  { %9721 = sst [smem:[#allocation49_spill]] %s9655_s3 }
   0x5   :  { %9722 = sst [smem:[#allocation50_spill]] %s9656_s4 }
   0x6   :  { %9723 = sst [smem:[#allocation51_spill]] %s9657_s5 }
   0x7   :  { %9724 = sst [smem:[#allocation52_spill]] %s9658_s6 }
   0x8   :  { %9725 = sst [smem:[#allocation53_spill]] %s9659_s7 }
   0x9   :  { %9726 = sst [smem:[#allocation54_spill]] %s9660_s8 }
   0xa   :  { %9727 = sst [smem:[#allocation55_spill]] %s9661_s9 }
   0xb   :  { %9728 = sst [smem:[#allocation56_spill]] %s9662_s10 }
   0xc   :  { %9729 = sst [smem:[#allocation57_spill]] %s9663_s11 }
   0xd   :  { %9730 = sst [smem:[#allocation58_spill]] %s9664_s12 }
   0xe   :  { %9731 = sst [smem:[#allocation59_spill]] %s9665_s13 }
   0xf   :  { %9732 = sst [smem:[#allocation60_spill]] %s9666_s14 }
  0x10   :  { %9733 = sst [smem:[#allocation61_spill]] %s9667_s15 }
  0x11   :  { %9734 = sst [smem:[#allocation62_spill]] %s9669_s17 }
  0x12   :  { %9735 = sst [smem:[#allocation63_spill]] %s9671_s19 }
  0x13   :  { %9736 = sst [smem:[#allocation64_spill]] %s9672_s20 }
  0x14   :  { %9737 = sst [smem:[#allocation65_spill]] %s9674_s22 }
  0x15   :  { %9738 = sst [smem:[#allocation66_spill]] %s9675_s23 }
  0x16   :  { %9739 = sst [smem:[#allocation67_spill]] %s9676_s24 }
  0x17   :  { %9740 = sst [smem:[#allocation68_spill]] %s9677_s25 }
  0x18   :  { %9741 = sst [smem:[#allocation69_spill]] %s9678_s26 }
  0x19   :  { %9742 = sst [smem:[#allocation70_spill]] %s9679_s27 }
  0x1a   :  { %33 = vsyncpa [#allocation5], 0 }
  0x1b   :  { %34 = vsyncpa [#allocation7], 0 }
  0x1c   :  { %36 = vsyncpa [#allocation7 + $0x1], 0 }
  0x1d   :  { %37 = vsyncpa [#allocation10], 0 }
  0x1e   :  { %39 = vsyncpa [#allocation10 + $0x1], 0 }
  0x1f   :  { %40 = vsyncpa [#allocation13], 0 }
  0x20   :  { %41 = vsyncpa [#allocation16], 0 }
  0x21   :  { %42 = vsyncpa [#allocation19], 0 }
  0x22   :  { %43 = vsyncpa [#allocation22], 0 }
  0x23   :  { %44 = vsyncpa [#allocation25], 0 }
  0x24   :  { %45 = vsyncpa [#allocation28], 0 }
  0x25   :  { %46 = vsyncpa [#allocation31], 0  ;;  %s8644_s7 = smov 0   ;;  %s8646_s4 = smov 0  }
  0x26   :  { %s8648_s8 = smov 0   ;;  %s8650_s30 = smov 0  }
  0x27 LB: > { %9743 = sst [smem:[#allocation43_spill]] %s8470_s8  ;;  %s8476_s9 = smov [#allocation11]   ;;  %s8474_s30 = sphi %s8650_s30, %s9821_s30   ;;  %s8470_s8 = sphi %s8648_s8, %s9818_s8   ;;  %s8466_s4 = sphi %s8646_s4, %s9820_s4   ;;  %s8462_s7 = sphi %s8644_s7, %s9819_s7  }
  0x28   : > { %s711_s5 = sshll.u32 %s8476_s9, 4  ;;  %s8665_s28 = sadd.s32 4294967295, %s8474_s30   ;;  %s8671_s5 = int_to_ptr.vmem [resolvable:$true] %s711_s5 }
  0x29   : > { %p6139_p0 = scmp.ge.s32.totalorder %s8474_s30, 1  ;;  %p9696_p1 = scmp.eq.s32.totalorder %s8665_s28, 0 }
  0x2a   : > { %p685_p2 = scmp.lt.s32.totalorder %s8474_s30, 5  ;;  %s8477_s10 = smov [#allocation12]  }
  0x2b   : > { %s724_s29 = sshll.u32 %s8477_s10, 4  ;;  %s8478_s6 = smov [#allocation15]   ;;  %s8685_s29 = int_to_ptr.vmem [resolvable:$true] %s724_s29 }
  0x2c   : > { %p8673_p4 = pnand %p6139_p0, %p685_p2  ;;  %s748_s11 = sshll.u32 %s8478_s6, 4  ;;  %s8687_s11 = int_to_ptr.vmem [resolvable:$true] %s748_s11 }
  0x2d   : > { %s9747_s9 = sld [smem:[#allocation52_spill]] }
  0x2e   : > { %s9744_s0 = scalar_select %p8673_p4, 1, 0 }
  0x2f   : > { %p7259_p5 = pneg %p8673_p4 }
  0x30   : > { %9745 = sst [smem:[#allocation44_spill]] %s9744_s0 }
  0x31   : > { %p8681_p6 = pnand %p7259_p5, %p9696_p1 }
  0x33   : > { %s9746_s1 = scalar_select %p8681_p6, 1, 0 }
  0x34   : > { %s7890_s20 = scalar_lea.hbm %s9747_s9, 256  ;;  %p8697_p8 = pneg %p8681_p6 }
  0x35   : > { %p7891_p7 = scmp.ne.s32.totalorder %s9747_s9, %s7890_s20  ;;  %p7897_p11 = scmp.lt.u32.totalorder %s7890_s20, %s9747_s9 }
  0x36   : > { %s9748_s10 = scalar_select %p8697_p8, 1, 0 }
  0x37   : > { %p7893_p9 = pnand %p8697_p8, %p7891_p7 }
  0x39   : > { %p7894_p10 = pneg %p7893_p9 }
  0x3b   : > { %p7899_p12 = pnand %p7897_p11, %p7894_p10 }
  0x3d   : > { %7902 = shalt.err (!%p7899_p12)
}
  0x3e   : > { %s7903_s12 = scalar_lea.vmem %s8671_s5, 256  ;;  %p7911_p5 = scmp.lt.s32.totalorder %s8671_s5, %s8671_s5 }
  0x3f   : > { %p7904_p13 = scmp.ne.s32.totalorder %s8671_s5, %s7903_s12  ;;  %p7912_p3 = scmp.lt.s32.totalorder %s7903_s12, %s7903_s12 }
  0x41   : > { %p7906_p0 = pnand %p7904_p13, %p8697_p8  ;;  %p7913_p7 = por %p7912_p3, %p7911_p5 }
  0x43   : > { %p7907_p2 = pneg %p7906_p0 }
  0x45   : > { %p7914_p9 = pnand %p7913_p7, %p7907_p2 }
  0x47   : > { %7917 = shalt.err (!%p7914_p9)
}
  0x48   : > { %s9698_s23 = smov 64   ;;  %s9700_s20 = smov 4  }
  0x49   : > { %7265 = dma.hbm_to_vmem [thread:$0]  (!%p8681_p6), %s9747_s9, 256, %s8671_s5, [#allocation10], %s9698_s23, %s9698_s23, %s9700_s20  }
  0x4a   : > { %s9749_s26 = sld [smem:[#allocation53_spill]] }
  0x50   : > { %s7918_s12 = scalar_lea.hbm %s9749_s26, 1024 }
  0x51   : > { %p7919_p3 = scmp.ne.s32.totalorder %s9749_s26, %s7918_s12  ;;  %p7925_p12 = scmp.lt.u32.totalorder %s7918_s12, %s9749_s26 }
  0x53   : > { %p7921_p10 = pnand %p7919_p3, %p8697_p8 }
  0x55   : > { %p7922_p11 = pneg %p7921_p10 }
  0x57   : > { %p7927_p13 = pnand %p7925_p12, %p7922_p11 }
  0x59   : > { %7930 = shalt.err (!%p7927_p13)
}
  0x5a   : > { %s7931_s5 = scalar_lea.vmem %s8685_s29, 1024  ;;  %p7939_p7 = scmp.lt.s32.totalorder %s8685_s29, %s8685_s29 }
  0x5b   : > { %p7932_p0 = scmp.ne.s32.totalorder %s8685_s29, %s7931_s5  ;;  %p7940_p9 = scmp.lt.s32.totalorder %s7931_s5, %s7931_s5 }
  0x5d   : > { %p7934_p2 = pnand %p7932_p0, %p8697_p8  ;;  %p7941_p3 = por %p7940_p9, %p7939_p7 }
  0x5f   : > { %p7935_p5 = pneg %p7934_p2 }
  0x61   : > { %p7942_p10 = pnand %p7941_p3, %p7935_p5 }
  0x63   : > { %7945 = shalt.err (!%p7942_p10)
}
  0x64   : > { %7268 = dma.hbm_to_vmem [thread:$0]  (!%p8681_p6), %s9749_s26, 1024, %s8685_s29, [#allocation13], %s9698_s23, %s9698_s23, %s9700_s20  }
  0x65   : > { %s9750_s27 = sld [smem:[#allocation55_spill]] }
  0x6b   : > { %s7946_s2 = scalar_lea.hbm %s9750_s27, 1024 }
  0x6c   : > { %p7947_p11 = scmp.ne.s32.totalorder %s9750_s27, %s7946_s2  ;;  %p7953_p0 = scmp.lt.u32.totalorder %s7946_s2, %s9750_s27 }
  0x6e   : > { %p7949_p12 = pnand %p7947_p11, %p8697_p8 }
  0x70   : > { %p7950_p13 = pneg %p7949_p12 }
  0x72   : > { %p7955_p2 = pnand %p7953_p0, %p7950_p13 }
  0x74   : > { %7958 = shalt.err (!%p7955_p2)
}
  0x75   : > { %s7959_s29 = scalar_lea.vmem %s8687_s11, 1024  ;;  %p7967_p3 = scmp.lt.s32.totalorder %s8687_s11, %s8687_s11 }
  0x76   : > { %p7960_p5 = scmp.ne.s32.totalorder %s8687_s11, %s7959_s29  ;;  %p7968_p10 = scmp.lt.s32.totalorder %s7959_s29, %s7959_s29 }
  0x78   : > { %p7962_p7 = pnand %p7960_p5, %p8697_p8  ;;  %p7969_p11 = por %p7968_p10, %p7967_p3 }
  0x7a   : > { %p7963_p9 = pneg %p7962_p7 }
  0x7c   : > { %p7970_p12 = pnand %p7969_p11, %p7963_p9 }
  0x7e   : > { %7973 = shalt.err (!%p7970_p12)
}
  0x7f   : > { %7274 = dma.hbm_to_vmem [thread:$0]  (!%p8681_p6), %s9750_s27, 1024, %s8687_s11, [#allocation16], %s9698_s23, %s9698_s23, %s9700_s20  }
  0x80   : > { %s8481_s25 = smov [#allocation18]   ;;  %s8482_s2 = smov [#allocation21]  }
  0x81   : > { %s778_s0 = sshll.u32 %s8481_s25, 4  ;;  %s802_s3 = sshll.u32 %s8482_s2, 4  ;;  %s779_s0 = int_to_ptr.vmem [resolvable:$true] %s778_s0  ;;  %s803_s3 = int_to_ptr.vmem [resolvable:$true] %s802_s3 }
  0x82   : > { %s9751_s13 = sld [smem:[#allocation59_spill]] }
  0x88   : > { %s7974_s5 = scalar_lea.hbm %s9751_s13, 32768 }
  0x89   : > { %p7975_p13 = scmp.ne.s32.totalorder %s9751_s13, %s7974_s5  ;;  %p7981_p5 = scmp.lt.u32.totalorder %s7974_s5, %s9751_s13 }
  0x8b   : > { %p7977_p0 = pnand %p7975_p13, %p8697_p8 }
  0x8d   : > { %p7978_p2 = pneg %p7977_p0 }
  0x8f   : > { %p7983_p7 = pnand %p7981_p5, %p7978_p2 }
  0x91   : > { %7986 = shalt.err (!%p7983_p7)
}
  0x92   : > { %s7987_s11 = scalar_lea.vmem %s779_s0, 32768  ;;  %p7995_p11 = scmp.lt.s32.totalorder %s779_s0, %s779_s0 }
  0x93   : > { %p7988_p9 = scmp.ne.s32.totalorder %s779_s0, %s7987_s11  ;;  %p7996_p12 = scmp.lt.s32.totalorder %s7987_s11, %s7987_s11 }
  0x95   : > { %p7990_p3 = pnand %p7988_p9, %p8697_p8  ;;  %p7997_p1 = por %p7996_p12, %p7995_p11 }
  0x97   : > { %p7991_p10 = pneg %p7990_p3 }
  0x99   : > { %p7998_p4 = pnand %p7997_p1, %p7991_p10 }
  0x9b   : > { %8001 = shalt.err (!%p7998_p4)
}
  0x9c   : > { %7280 = dma.hbm_to_vmem [thread:$0]  (!%p8681_p6), %s9751_s13, 32768, %s779_s0, [#allocation19], %s9698_s23, %s9698_s23, %s9700_s20  }
  0x9d   : > { %s9752_s15 = sld [smem:[#allocation61_spill]] }
  0xa3   : > { %s8002_s2 = scalar_lea.hbm %s9752_s15, 1024 }
  0xa4   : > { %p8003_p1 = scmp.ne.s32.totalorder %s9752_s15, %s8002_s2  ;;  %p8009_p0 = scmp.lt.u32.totalorder %s8002_s2, %s9752_s15 }
  0xa6   : > { %p8005_p4 = pnand %p8003_p1, %p8697_p8 }
  0xa8   : > { %p8006_p13 = pneg %p8005_p4 }
  0xaa   : > { %p8011_p2 = pnand %p8009_p0, %p8006_p13 }
  0xac   : > { %8014 = shalt.err (!%p8011_p2)
}
  0xad   : > { %s8015_s22 = scalar_lea.vmem %s803_s3, 1024  ;;  %p8023_p3 = scmp.lt.s32.totalorder %s803_s3, %s803_s3 }
  0xae   : > { %p8016_p5 = scmp.ne.s32.totalorder %s803_s3, %s8015_s22  ;;  %p8024_p10 = scmp.lt.s32.totalorder %s8015_s22, %s8015_s22 }
  0xb0   : > { %p8018_p7 = pnand %p8016_p5, %p8697_p8  ;;  %p8025_p11 = por %p8024_p10, %p8023_p3 }
  0xb2   : > { %p8019_p9 = pneg %p8018_p7 }
  0xb4   : > { %p8026_p12 = pnand %p8025_p11, %p8019_p9 }
  0xb6   : > { %8029 = shalt.err (!%p8026_p12)
}
  0xb7   : > { %7286 = dma.hbm_to_vmem [thread:$0]  (!%p8681_p6), %s9752_s15, 1024, %s803_s3, [#allocation22], %s9698_s23, %s9698_s23, %s9700_s20  }
  0xb8   : > { %s8483_s26 = smov [#allocation24]   ;;  %s8484_s24 = smov [#allocation27]  }
  0xb9   : > { %s829_s9 = sshll.u32 %s8483_s26, 4  ;;  %s853_s25 = sshll.u32 %s8484_s24, 4  ;;  %s830_s9 = int_to_ptr.vmem [resolvable:$true] %s829_s9  ;;  %s854_s25 = int_to_ptr.vmem [resolvable:$true] %s853_s25 }
  0xba   : > { %s9753_s17 = sld [smem:[#allocation62_spill]] }
  0xc0   : > { %s8030_s12 = scalar_lea.hbm %s9753_s17, 16 }
  0xc1   : > { %p8031_p1 = scmp.ne.s32.totalorder %s9753_s17, %s8030_s12  ;;  %p8037_p0 = scmp.lt.u32.totalorder %s8030_s12, %s9753_s17 }
  0xc3   : > { %p8033_p4 = pnand %p8031_p1, %p8697_p8 }
  0xc5   : > { %p8034_p13 = pneg %p8033_p4 }
  0xc7   : > { %p8039_p2 = pnand %p8037_p0, %p8034_p13 }
  0xc9   : > { %8042 = shalt.err (!%p8039_p2)
}
  0xca   : > { %s8043_s3 = scalar_lea.vmem %s830_s9, 16  ;;  %s8050_s11 = scalar_lea.vmem %s830_s9, 32 }
  0xcb   : > { %p8044_p5 = scmp.ne.s32.totalorder %s830_s9, %s8043_s3  ;;  %p8051_p3 = scmp.lt.s32.totalorder %s830_s9, %s830_s9 }
  0xcc   : > { %p8052_p10 = scmp.lt.s32.totalorder %s8050_s11, %s8043_s3 }
  0xcd   : > { %p8046_p7 = pnand %p8044_p5, %p8697_p8 }
  0xce   : > { %p8053_p11 = por %p8052_p10, %p8051_p3 }
  0xcf   : > { %p8047_p9 = pneg %p8046_p7 }
  0xd1   : > { %p8054_p12 = pnand %p8053_p11, %p8047_p9 }
  0xd3   : > { %8057 = shalt.err (!%p8054_p12)
}
  0xd4   : > { %7292 = dma.hbm_to_vmem [thread:$0]  (!%p8681_p6), %s9753_s17, 16, %s830_s9, [#allocation25]  }
  0xd5   : > { %s9754_s19 = sld [smem:[#allocation63_spill]] }
  0xdb   : > { %s8058_s12 = scalar_lea.hbm %s9754_s19, 16 }
  0xdc   : > { %p8059_p1 = scmp.ne.s32.totalorder %s9754_s19, %s8058_s12  ;;  %p8065_p0 = scmp.lt.u32.totalorder %s8058_s12, %s9754_s19 }
  0xde   : > { %p8061_p4 = pnand %p8059_p1, %p8697_p8 }
  0xe0   : > { %p8062_p13 = pneg %p8061_p4 }
  0xe2   : > { %p8067_p2 = pnand %p8065_p0, %p8062_p13 }
  0xe4   : > { %8070 = shalt.err (!%p8067_p2)
}
  0xe5   : > { %s8071_s3 = scalar_lea.vmem %s854_s25, 16  ;;  %s8078_s9 = scalar_lea.vmem %s854_s25, 32 }
  0xe6   : > { %p8072_p5 = scmp.ne.s32.totalorder %s854_s25, %s8071_s3  ;;  %p8079_p3 = scmp.lt.s32.totalorder %s854_s25, %s854_s25 }
  0xe7   : > { %p8080_p10 = scmp.lt.s32.totalorder %s8078_s9, %s8071_s3 }
  0xe8   : > { %p8074_p7 = pnand %p8072_p5, %p8697_p8 }
  0xe9   : > { %p8081_p11 = por %p8080_p10, %p8079_p3 }
  0xea   : > { %p8075_p9 = pneg %p8074_p7 }
  0xec   : > { %p8082_p12 = pnand %p8081_p11, %p8075_p9 }
  0xee   : > { %8085 = shalt.err (!%p8082_p12)
}
  0xef   : > { %7298 = dma.hbm_to_vmem [thread:$0]  (!%p8681_p6), %s9754_s19, 16, %s854_s25, [#allocation28]  }
  0xf0   : > { %s8852_s24 = sadd.s32 1, %s8474_s30   ;;  %s101_s6 = sadd.s32 1, %s8470_s8 }
  0xf1   : > { %s98_s2 = ssub.s32 %s8474_s30, %s8852_s24  ;;  %p108_p4 = scmp.ne.s32.totalorder %s8470_s8, %s8466_s4 }
  0xf2   : > { %p99_p1 = scmp.eq.s32.totalorder %s98_s2, 0  ;;  %p109_p13 = scmp.eq.s32.totalorder %s8474_s30, 0 }
  0xf3   : > { %p114_p0 = scmp.ne.s32.totalorder %s8466_s4, %s8462_s7  ;;  %p9756_p5 = scmp.eq.s32.totalorder %s8665_s28, 0 }
  0xf4   : > { %s8863_s12 = scalar_select %p99_p1, %s8470_s8, %s101_s6  }
  0xf5   : > { %p110_p2 = por %p109_p13, %p108_p4  ;;  %p8867_p7 = por %p9756_p5, %p114_p0 }
  0xf6   : > { %9755 = sst [smem:[#allocation45_spill]] %s8863_s12  ;;  %p7330_p9 = scmp.lt.s32.totalorder %s8474_s30, 4 }
  0xf7   : > { %s9757_s5 = scalar_select %p8867_p7, 1, 0 }
  0xf8   : > { %s9702_s25 = sand.u32 1, %s8474_s30   ;;  %s896_s29 = sand.u32 1, %s8470_s8  }
  0xf9   : > { %s8874_s22 = sshll.u32 %s896_s29, 3  ;;  %s8877_s0 = sshll.u32 %s8474_s30, 7 }
  0xfa   : > { %s9758_s7 = sld [smem:[#allocation48_spill]]  ;;  %s898_s2 = scalar_lea.vmem [#allocation6], %s8874_s22 }
  0xfb   : > { %s905_s6 = sshll.u32 %s898_s2, 4  ;;  %p8886_p3 = pnand %p7330_p9, %p110_p2  ;;  %s8890_s6 = int_to_ptr.vmem [resolvable:$true] %s905_s6 }
  0xfc   : > { %s8894_s29 = scalar_lea.sflag [#allocation7], %s9702_s25 }
  0xfd   : > { %s9760_s23 = scalar_select %p8886_p3, 1, 0 }
  0xfe   : > { %p8900_p11 = pneg %p8886_p3 }
 0x100   : > { %s9759_s11 = smov %s9758_s7  ;;  %s8883_s26 = scalar_lea.hbm %s9758_s7, %s8877_s0 }
 0x101   : > { %s8086_s20 = scalar_lea.hbm %s8883_s26, 128  ;;  %s8091_s2 = scalar_lea.hbm %s9759_s11, 512 }
 0x102   : > { %p8087_p10 = scmp.ne.s32.totalorder %s8883_s26, %s8086_s20  ;;  %p8092_p4 = scmp.lt.u32.totalorder %s8883_s26, %s9759_s11 }
 0x103   : > { %s9761_s3 = scalar_select %p8900_p11, 1, 0 }
 0x104   : > { %p8089_p12 = pnand %p8900_p11, %p8087_p10  ;;  %p8093_p13 = scmp.lt.u32.totalorder %s8091_s2, %s8086_s20 }
 0x105   : > { %p8095_p2 = scmp.lt.u32.totalorder %s8086_s20, %s8883_s26 }
 0x106   : > { %p8090_p1 = pneg %p8089_p12  ;;  %p8094_p0 = por %p8093_p13, %p8092_p4 }
 0x108   : > { %p8096_p5 = por %p8095_p2, %p8094_p0 }
 0x10a   : > { %p8097_p9 = pnand %p8096_p5, %p8090_p1 }
 0x10c   : > { %8100 = shalt.err (!%p8097_p9)
}
 0x10d   : > { %s8101_s25 = scalar_lea.vmem %s8890_s6, 128  ;;  %s8485_s9 = smov [#allocation6]  }
 0x10e   : > { %p8102_p10 = scmp.ne.s32.totalorder %s8890_s6, %s8101_s25  ;;  %s8106_s7 = sshll.u32 %s8485_s9, 4  ;;  %s8107_s7 = int_to_ptr.vmem [resolvable:$false] %s8106_s7 }
 0x10f   : > { %s8108_s13 = scalar_lea.vmem %s8107_s7, 256  ;;  %p8109_p6 = scmp.lt.s32.totalorder %s8890_s6, %s8107_s7 }
 0x110   : > { %p8104_p12 = pnand %p8102_p10, %p8900_p11  ;;  %p8110_p8 = scmp.lt.s32.totalorder %s8108_s13, %s8101_s25 }
 0x112   : > { %p8105_p7 = pneg %p8104_p12  ;;  %p8111_p4 = por %p8110_p8, %p8109_p6 }
 0x114   : > { %p8112_p13 = pnand %p8111_p4, %p8105_p7 }
 0x116   : > { %8115 = shalt.err (!%p8112_p13)
}
 0x117   : > { %7308 = dma.hbm_to_vmem [thread:$0]  (!%p8886_p3), %s8883_s26, 128, %s8890_s6, %s8894_s29  }
 0x118   : > { %s8486_s15 = smov [#allocation4]   ;;  %s8487_s2 = smov [#allocation14]  }
 0x119   : > { %s701_s20 = sshll.u32 %s8486_s15, 4  ;;  %s738_s11 = sshll.u32 %s8487_s2, 4  ;;  %s702_s20 = int_to_ptr.vmem [resolvable:$true] %s701_s20  ;;  %s739_s11 = int_to_ptr.vmem [resolvable:$true] %s738_s11 }
 0x11a   : > { %s9762_s19 = sld [smem:[#allocation47_spill]]  ;;  %p9763_p8 = scmp.ne.s32.totalorder %s9748_s10, 0 }
 0x120   : > { %s8116_s7 = scalar_lea.hbm %s9762_s19, 128 }
 0x121   : > { %p8117_p6 = scmp.ne.s32.totalorder %s9762_s19, %s8116_s7  ;;  %p8123_p0 = scmp.lt.u32.totalorder %s8116_s7, %s9762_s19 }
 0x123   : > { %p8119_p7 = pnand %p8117_p6, %p9763_p8 }
 0x125   : > { %p8120_p1 = pneg %p8119_p7 }
 0x127   : > { %p8125_p2 = pnand %p8123_p0, %p8120_p1 }
 0x129   : > { %8128 = shalt.err (!%p8125_p2)
}
 0x12a   : > { %s8129_s26 = scalar_lea.vmem %s702_s20, 128  ;;  %p8137_p12 = scmp.lt.s32.totalorder %s702_s20, %s702_s20 }
 0x12b   : > { %p8130_p5 = scmp.ne.s32.totalorder %s702_s20, %s8129_s26  ;;  %p8138_p4 = scmp.lt.s32.totalorder %s8129_s26, %s8129_s26 }
 0x12d   : > { %p8132_p9 = pnand %p8130_p5, %p9763_p8  ;;  %p8139_p13 = por %p8138_p4, %p8137_p12 }
 0x12f   : > { %p8133_p10 = pneg %p8132_p9 }
 0x131   : > { %p8140_p3 = pnand %p8139_p13, %p8133_p10 }
 0x133   : > { %8143 = shalt.err (!%p8140_p3)
}
 0x134   : > { %p9764_p6 = scmp.ne.s32.totalorder %s9746_s1, 0  ;;  %s9765_s15 = sld [smem:[#allocation54_spill]] }
 0x136   : > { %7262 = dma.hbm_to_vmem [thread:$0]  (!%p9764_p6), %s9762_s19, 128, %s702_s20, [#allocation5]  }
 0x13a   : > { %s8144_s2 = scalar_lea.hbm %s9765_s15, 16 }
 0x13b   : > { %p8145_p7 = scmp.ne.s32.totalorder %s9765_s15, %s8144_s2  ;;  %p8151_p3 = scmp.lt.u32.totalorder %s8144_s2, %s9765_s15 }
 0x13d   : > { %p8147_p1 = pnand %p8145_p7, %p9763_p8 }
 0x13f   : > { %p8148_p0 = pneg %p8147_p1 }
 0x141   : > { %p8153_p2 = pnand %p8151_p3, %p8148_p0 }
 0x143   : > { %8156 = shalt.err (!%p8153_p2)
}
 0x144   : > { %s8157_s26 = scalar_lea.vmem %s739_s11, 16  ;;  %s8164_s20 = scalar_lea.vmem %s739_s11, 32 }
 0x145   : > { %p8158_p5 = scmp.ne.s32.totalorder %s739_s11, %s8157_s26  ;;  %p8165_p12 = scmp.lt.s32.totalorder %s739_s11, %s739_s11 }
 0x146   : > { %p8166_p4 = scmp.lt.s32.totalorder %s8164_s20, %s8157_s26 }
 0x147   : > { %p8160_p9 = pnand %p8158_p5, %p9763_p8 }
 0x148   : > { %p8167_p13 = por %p8166_p4, %p8165_p12 }
 0x149   : > { %p8161_p10 = pneg %p8160_p9 }
 0x14b   : > { %p8168_p11 = pnand %p8167_p13, %p8161_p10 }
 0x14d   : > { %8171 = shalt.err (!%p8168_p11)
}
 0x14e   : > { %7271 = dma.hbm_to_vmem [thread:$0]  (!%p9764_p6), %s9765_s15, 16, %s739_s11, [#allocation13]  }
 0x14f   : > { %s8488_s27 = smov [#allocation17]   ;;  %s8489_s2 = smov [#allocation20]  }
 0x150   : > { %s762_s12 = sshll.u32 %s8488_s27, 4  ;;  %s792_s9 = sshll.u32 %s8489_s2, 4  ;;  %s763_s12 = int_to_ptr.vmem [resolvable:$true] %s762_s12  ;;  %s793_s9 = int_to_ptr.vmem [resolvable:$true] %s792_s9 }
 0x151   : > { %s9766_s13 = sld [smem:[#allocation56_spill]] }
 0x157   : > { %s8172_s19 = scalar_lea.hbm %s9766_s13, 16 }
 0x158   : > { %p8173_p11 = scmp.ne.s32.totalorder %s9766_s13, %s8172_s19  ;;  %p8179_p0 = scmp.lt.u32.totalorder %s8172_s19, %s9766_s13 }
 0x15a   : > { %p8175_p7 = pnand %p8173_p11, %p9763_p8 }
 0x15c   : > { %p8176_p1 = pneg %p8175_p7 }
 0x15e   : > { %p8181_p3 = pnand %p8179_p0, %p8176_p1 }
 0x160   : > { %8184 = shalt.err (!%p8181_p3)
}
 0x161   : > { %s8185_s11 = scalar_lea.vmem %s763_s12, 16  ;;  %s8192_s6 = scalar_lea.vmem %s763_s12, 32 }
 0x162   : > { %p8186_p2 = scmp.ne.s32.totalorder %s763_s12, %s8185_s11  ;;  %p8193_p10 = scmp.lt.s32.totalorder %s763_s12, %s763_s12 }
 0x163   : > { %p8194_p12 = scmp.lt.s32.totalorder %s8192_s6, %s8185_s11 }
 0x164   : > { %p8188_p5 = pnand %p8186_p2, %p9763_p8 }
 0x165   : > { %p8195_p4 = por %p8194_p12, %p8193_p10 }
 0x166   : > { %p8189_p9 = pneg %p8188_p5 }
 0x168   : > { %p8196_p13 = pnand %p8195_p4, %p8189_p9 }
 0x16a   : > { %8199 = shalt.err (!%p8196_p13)
}
 0x16b   : > { %7277 = dma.hbm_to_vmem [thread:$0]  (!%p9764_p6), %s9766_s13, 16, %s763_s12, [#allocation16]  }
 0x16c   : > { %s9767_s14 = sld [smem:[#allocation60_spill]] }
 0x172   : > { %s8200_s7 = scalar_lea.hbm %s9767_s14, 16 }
 0x173   : > { %p8201_p11 = scmp.ne.s32.totalorder %s9767_s14, %s8200_s7  ;;  %p8207_p0 = scmp.lt.u32.totalorder %s8200_s7, %s9767_s14 }
 0x175   : > { %p8203_p7 = pnand %p8201_p11, %p9763_p8 }
 0x177   : > { %p8204_p1 = pneg %p8203_p7 }
 0x179   : > { %p8209_p3 = pnand %p8207_p0, %p8204_p1 }
 0x17b   : > { %8212 = shalt.err (!%p8209_p3)
}
 0x17c   : > { %s8213_s11 = scalar_lea.vmem %s793_s9, 16  ;;  %s8220_s12 = scalar_lea.vmem %s793_s9, 32 }
 0x17d   : > { %p8214_p2 = scmp.ne.s32.totalorder %s793_s9, %s8213_s11  ;;  %p8221_p10 = scmp.lt.s32.totalorder %s793_s9, %s793_s9 }
 0x17e   : > { %p8222_p12 = scmp.lt.s32.totalorder %s8220_s12, %s8213_s11 }
 0x17f   : > { %p8216_p5 = pnand %p8214_p2, %p9763_p8 }
 0x180   : > { %p8223_p4 = por %p8222_p12, %p8221_p10 }
 0x181   : > { %p8217_p9 = pneg %p8216_p5 }
 0x183   : > { %p8224_p13 = pnand %p8223_p4, %p8217_p9 }
 0x185   : > { %8227 = shalt.err (!%p8224_p13)
}
 0x186   : > { %7283 = dma.hbm_to_vmem [thread:$0]  (!%p9764_p6), %s9767_s14, 16, %s793_s9, [#allocation19]  }
 0x187   : > { %s8490_s2 = smov [#allocation23]   ;;  %s8491_s8 = smov [#allocation26]  }
 0x188   : > { %s815_s19 = sshll.u32 %s8490_s2, 4  ;;  %s839_s7 = sshll.u32 %s8491_s8, 4  ;;  %s816_s19 = int_to_ptr.vmem [resolvable:$true] %s815_s19  ;;  %s840_s7 = int_to_ptr.vmem [resolvable:$true] %s839_s7 }
 0x189   : > { %s8228_s20 = scalar_lea.hbm %s9668_s16, 1024 }
 0x18a   : > { %p8229_p11 = scmp.ne.s32.totalorder %s9668_s16, %s8228_s20  ;;  %p8235_p0 = scmp.lt.u32.totalorder %s8228_s20, %s9668_s16 }
 0x18c   : > { %p8231_p7 = pnand %p8229_p11, %p9763_p8 }
 0x18e   : > { %p8232_p1 = pneg %p8231_p7 }
 0x190   : > { %p8237_p3 = pnand %p8235_p0, %p8232_p1 }
 0x192   : > { %8240 = shalt.err (!%p8237_p3)
}
 0x193   : > { %s8241_s9 = scalar_lea.vmem %s816_s19, 1024  ;;  %p8249_p10 = scmp.lt.s32.totalorder %s816_s19, %s816_s19 }
 0x194   : > { %p8242_p2 = scmp.ne.s32.totalorder %s816_s19, %s8241_s9  ;;  %p8250_p12 = scmp.lt.s32.totalorder %s8241_s9, %s8241_s9 }
 0x196   : > { %p8244_p5 = pnand %p8242_p2, %p9763_p8  ;;  %p8251_p4 = por %p8250_p12, %p8249_p10 }
 0x198   : > { %p8245_p9 = pneg %p8244_p5 }
 0x19a   : > { %p8252_p13 = pnand %p8251_p4, %p8245_p9 }
 0x19c   : > { %8255 = shalt.err (!%p8252_p13)
}
 0x19d   : > { %s9768_s27 = smov 4   ;;  %s9769_s2 = smov 64  }
 0x19e   : > { %7289 = dma.hbm_to_vmem [thread:$0]  (!%p9764_p6), %s9668_s16, 1024, %s816_s19, [#allocation22], %s9769_s2, %s9769_s2, %s9768_s27  }
 0x19f   : > { %s8256_s17 = scalar_lea.hbm %s9670_s18, 1024 }
 0x1a0   : > { %p8257_p11 = scmp.ne.s32.totalorder %s9670_s18, %s8256_s17  ;;  %p8263_p0 = scmp.lt.u32.totalorder %s8256_s17, %s9670_s18 }
 0x1a2   : > { %p8259_p7 = pnand %p8257_p11, %p9763_p8 }
 0x1a4   : > { %p8260_p1 = pneg %p8259_p7 }
 0x1a6   : > { %p8265_p3 = pnand %p8263_p0, %p8260_p1 }
 0x1a8   : > { %8268 = shalt.err (!%p8265_p3)
}
 0x1a9   : > { %s8269_s8 = scalar_lea.vmem %s840_s7, 1024  ;;  %p8277_p10 = scmp.lt.s32.totalorder %s840_s7, %s840_s7 }
 0x1aa   : > { %p8270_p2 = scmp.ne.s32.totalorder %s840_s7, %s8269_s8  ;;  %p8278_p12 = scmp.lt.s32.totalorder %s8269_s8, %s8269_s8 }
 0x1ac   : > { %p8272_p5 = pnand %p8270_p2, %p9763_p8  ;;  %p8279_p4 = por %p8278_p12, %p8277_p10 }
 0x1ae   : > { %p8273_p9 = pneg %p8272_p5 }
 0x1b0   : > { %p8280_p13 = pnand %p8279_p4, %p8273_p9 }
 0x1b2   : > { %8283 = shalt.err (!%p8280_p13)
}
 0x1b3   : > { %7295 = dma.hbm_to_vmem [thread:$0]  (!%p9764_p6), %s9670_s18, 1024, %s840_s7, [#allocation25], %s9769_s2, %s9769_s2, %s9768_s27  }
 0x1b4   : > { %s8492_s26 = smov [#allocation29]   ;;  %s8493_s17 = smov [#allocation30]  }
 0x1b5   : > { %s867_s20 = sshll.u32 %s8492_s26, 4  ;;  %s877_s11 = sshll.u32 %s8493_s17, 4  ;;  %s868_s20 = int_to_ptr.vmem [resolvable:$true] %s867_s20  ;;  %s878_s11 = int_to_ptr.vmem [resolvable:$true] %s877_s11 }
 0x1b6   : > { %s8284_s9 = scalar_lea.hbm %s9673_s21, 64 }
 0x1b7   : > { %p8285_p11 = scmp.ne.s32.totalorder %s9673_s21, %s8284_s9  ;;  %p8291_p0 = scmp.lt.u32.totalorder %s8284_s9, %s9673_s21 }
 0x1b9   : > { %p8287_p7 = pnand %p8285_p11, %p9763_p8 }
 0x1bb   : > { %p8288_p1 = pneg %p8287_p7 }
 0x1bd   : > { %p8293_p3 = pnand %p8291_p0, %p8288_p1 }
 0x1bf   : > { %8296 = shalt.err (!%p8293_p3)
}
 0x1c0   : > { %s8297_s7 = scalar_lea.vmem %s868_s20, 64  ;;  %p8305_p10 = scmp.lt.s32.totalorder %s868_s20, %s868_s20 }
 0x1c1   : > { %p8298_p2 = scmp.ne.s32.totalorder %s868_s20, %s8297_s7  ;;  %p8306_p12 = scmp.lt.s32.totalorder %s8297_s7, %s8297_s7 }
 0x1c3   : > { %p8300_p5 = pnand %p8298_p2, %p9763_p8  ;;  %p8307_p4 = por %p8306_p12, %p8305_p10 }
 0x1c5   : > { %p8301_p9 = pneg %p8300_p5 }
 0x1c7   : > { %p8308_p13 = pnand %p8307_p4, %p8301_p9 }
 0x1c9   : > { %8311 = shalt.err (!%p8308_p13)
}
 0x1ca   : > { %7301 = dma.hbm_to_vmem [thread:$0]  (!%p9764_p6), %s9673_s21, 64, %s868_s20, [#allocation28]  }
 0x1cb   : > { %s9770_s25 = sld [smem:[#allocation65_spill]] }
 0x1d1   : > { %s8312_s26 = scalar_lea.hbm %s9770_s25, 3072 }
 0x1d2   : > { %p8313_p11 = scmp.ne.s32.totalorder %s9770_s25, %s8312_s26  ;;  %p8319_p0 = scmp.lt.u32.totalorder %s8312_s26, %s9770_s25 }
 0x1d4   : > { %p8315_p7 = pnand %p8313_p11, %p9763_p8 }
 0x1d6   : > { %p8316_p1 = pneg %p8315_p7 }
 0x1d8   : > { %p8321_p3 = pnand %p8319_p0, %p8316_p1 }
 0x1da   : > { %8324 = shalt.err (!%p8321_p3)
}
 0x1db   : > { %s8325_s8 = scalar_lea.vmem %s878_s11, 3072  ;;  %p8333_p10 = scmp.lt.s32.totalorder %s878_s11, %s878_s11 }
 0x1dc   : > { %p8326_p2 = scmp.ne.s32.totalorder %s878_s11, %s8325_s8  ;;  %p8334_p12 = scmp.lt.s32.totalorder %s8325_s8, %s8325_s8 }
 0x1de   : > { %p8328_p5 = pnand %p8326_p2, %p9763_p8  ;;  %p8335_p4 = por %p8334_p12, %p8333_p10 }
 0x1e0   : > { %p8329_p9 = pneg %p8328_p5 }
 0x1e2   : > { %p8336_p13 = pnand %p8335_p4, %p8329_p9 }
 0x1e4   : > { %8339 = shalt.err (!%p8336_p13)
}
 0x1e5   : > { %s8494_s20 = smov 192   ;;  %s8495_s19 = smov 12  }
 0x1e6   : > { %7304 = dma.hbm_to_vmem [thread:$0]  (!%p9764_p6), %s9770_s25, 3072, %s878_s11, [#allocation31], %s8494_s20, %s8494_s20, %s8495_s19  }
 0x1e7   : > { %s9771_s14 = sld [smem:[#allocation50_spill]]  ;;  %s924_s26 = scalar_lea.vmem [#allocation8], %s8874_s22 }
 0x1e8   : > { %s931_s17 = sshll.u32 %s924_s26, 4  ;;  %p9772_p11 = scmp.ne.s32.totalorder %s9761_s3, 0  ;;  %s932_s17 = int_to_ptr.vmem [resolvable:$true] %s931_s17 }
 0x1ed   : > { %s9078_s2 = scalar_lea.hbm %s9771_s14, %s8877_s0  ;;  %s8345_s11 = scalar_lea.hbm %s9771_s14, 512 }
 0x1ee   : > { %s8340_s12 = scalar_lea.hbm %s9078_s2, 128  ;;  %p8346_p6 = scmp.lt.u32.totalorder %s9078_s2, %s9771_s14 }
 0x1ef   : > { %p8341_p8 = scmp.ne.s32.totalorder %s9078_s2, %s8340_s12  ;;  %p8347_p0 = scmp.lt.u32.totalorder %s8345_s11, %s8340_s12 }
 0x1f0   : > { %p8349_p2 = scmp.lt.u32.totalorder %s8340_s12, %s9078_s2 }
 0x1f1   : > { %p8343_p7 = pnand %p8341_p8, %p9772_p11  ;;  %p8348_p3 = por %p8347_p0, %p8346_p6 }
 0x1f3   : > { %p8344_p1 = pneg %p8343_p7  ;;  %p8350_p5 = por %p8349_p2, %p8348_p3 }
 0x1f5   : > { %p8351_p9 = pnand %p8350_p5, %p8344_p1 }
 0x1f7   : > { %8354 = shalt.err (!%p8351_p9)
}
 0x1f8   : > { %s8355_s20 = scalar_lea.vmem %s932_s17, 128  ;;  %s8496_s19 = smov [#allocation8]  }
 0x1f9   : > { %p8356_p10 = scmp.ne.s32.totalorder %s932_s17, %s8355_s20  ;;  %s8360_s7 = sshll.u32 %s8496_s19, 4  ;;  %s8361_s7 = int_to_ptr.vmem [resolvable:$false] %s8360_s7 }
 0x1fa   : > { %s8362_s13 = scalar_lea.vmem %s8361_s7, 256  ;;  %p8363_p13 = scmp.lt.s32.totalorder %s932_s17, %s8361_s7 }
 0x1fb   : > { %p8358_p12 = pnand %p8356_p10, %p9772_p11  ;;  %p8364_p8 = scmp.lt.s32.totalorder %s8362_s13, %s8355_s20 }
 0x1fd   : > { %p8359_p4 = pneg %p8358_p12  ;;  %p8365_p7 = por %p8364_p8, %p8363_p13 }
 0x1ff   : > { %p8366_p0 = pnand %p8365_p7, %p8359_p4 }
 0x201   : > { %8369 = shalt.err (!%p8366_p0)
}
 0x202   : > { %p9773_p6 = scmp.ne.s32.totalorder %s9760_s23, 0  ;;  %s9774_s26 = sld [smem:[#allocation51_spill]] }
 0x203   : > { %s942_s1 = scalar_lea.vmem [#allocation9], %s8874_s22  ;;  %s9775_s11 = sand.u32 1, %s8474_s30  }
 0x204   : > { %7311 = dma.hbm_to_vmem [thread:$0]  (!%p9773_p6), %s9078_s2, 128, %s932_s17, %s8894_s29  }
 0x205   : > { %s949_s6 = sshll.u32 %s942_s1, 4  ;;  %s939_s9 = scalar_lea.sflag [#allocation10], %s9775_s11  ;;  %s950_s6 = int_to_ptr.vmem [resolvable:$true] %s949_s6 }
 0x208   : > { %s9103_s12 = scalar_lea.hbm %s9774_s26, %s8877_s0  ;;  %s8375_s17 = scalar_lea.hbm %s9774_s26, 512 }
 0x209   : > { %s8370_s8 = scalar_lea.hbm %s9103_s12, 128  ;;  %p8376_p5 = scmp.lt.u32.totalorder %s9103_s12, %s9774_s26 }
 0x20a   : > { %p8371_p1 = scmp.ne.s32.totalorder %s9103_s12, %s8370_s8  ;;  %p8377_p9 = scmp.lt.u32.totalorder %s8375_s17, %s8370_s8 }
 0x20b   : > { %p8379_p12 = scmp.lt.u32.totalorder %s8370_s8, %s9103_s12 }
 0x20c   : > { %p8373_p3 = pnand %p8371_p1, %p9772_p11  ;;  %p8378_p10 = por %p8377_p9, %p8376_p5 }
 0x20e   : > { %p8374_p2 = pneg %p8373_p3  ;;  %p8380_p4 = por %p8379_p12, %p8378_p10 }
 0x210   : > { %p8381_p13 = pnand %p8380_p4, %p8374_p2 }
 0x212   : > { %8384 = shalt.err (!%p8381_p13)
}
 0x213   : > { %s8385_s30 = scalar_lea.vmem %s950_s6, 128  ;;  %s8497_s22 = smov [#allocation9]  }
 0x214   : > { %p8386_p8 = scmp.ne.s32.totalorder %s950_s6, %s8385_s30  ;;  %s8390_s19 = sshll.u32 %s8497_s22, 4  ;;  %s8391_s19 = int_to_ptr.vmem [resolvable:$false] %s8390_s19 }
 0x215   : > { %s8392_s7 = scalar_lea.vmem %s8391_s19, 256  ;;  %p8393_p1 = scmp.lt.s32.totalorder %s950_s6, %s8391_s19 }
 0x216   : > { %p8388_p7 = pnand %p8386_p8, %p9772_p11  ;;  %p8394_p3 = scmp.lt.s32.totalorder %s8392_s7, %s8385_s30 }
 0x218   : > { %p8389_p0 = pneg %p8388_p7  ;;  %p8395_p6 = por %p8394_p3, %p8393_p1 }
 0x21a   : > { %p8396_p5 = pnand %p8395_p6, %p8389_p0 }
 0x21c   : > { %8399 = shalt.err (!%p8396_p5)
}
 0x21d   : > { %p9776_p9 = scmp.ne.s32.totalorder %s9760_s23, 0  ;;  %s9777_s13 = sld [smem:[#allocation44_spill]] }
 0x21f   : > { %7314 = dma.hbm_to_vmem [thread:$0]  (!%p9776_p9), %s9103_s12, 128, %s950_s6, %s939_s9  }
 0x223   : > { %p9778_p2 = scmp.ne.s32.totalorder %s9777_s13, 0 }
 0x224   : > { %p9779_p10 = scmp.eq.s32.totalorder (!%p9778_p2), %s8665_s28, 0 }
 0x225   : > { %958 = sbr.rel (%p9778_p2) target bundleno = 2509 (0x9cd), region = 116 }
 0x22c   : > { %8417 = dma.done.wait (%p9779_p10), [#allocation5], 128   ;;  %p9780_p11 = pmov %p9779_p10 }
 0x22d   : > { %s964_s3 = sand.u32 1, %s8665_s28   ;;  %s966_s27 = sand.u32 1, %s8466_s4  }
 0x22e   : > { %8419 = vsyncadd (%p9780_p11), [#allocation5], 4294967168  ;;  %s9133_s10 = sshll.u32 %s966_s27, 3  ;;  %s965_s23 = scalar_lea.sflag [#allocation7], %s964_s3 }
 0x22f   : > { %p9781_p6 = scmp.ne.s32.totalorder %s9757_s5, 0 }
 0x231   : > { %8421 = dma.done.wait (%p9781_p6), %s965_s23, 256  }
 0x232   : > { %8423 = vsyncadd (%p9781_p6), %s965_s23, 4294967040  ;;  %s983_s6 = scalar_lea.sflag [#allocation10], %s964_s3 }
 0x233   : > { %8425 = dma.done.wait (%p9781_p6), %s983_s6, 128  }
 0x234   : > { %8427 = vsyncadd (%p9781_p6), %s983_s6, 4294967168  ;;  %p9782_p12 = pmov %p9779_p10 }
 0x235   : > { %p9783_p4 = pmov %p9779_p10 }
 0x236   : > { %8429 = dma.done.wait (%p9782_p12), [#allocation10], 256  }
 0x237   : > { %8431 = vsyncadd (%p9783_p4), [#allocation10], 4294967040  ;;  %p9784_p13 = pmov %p9783_p4 }
 0x238   : > { %p9785_p8 = pmov %p9783_p4 }
 0x239   : > { %8433 = dma.done.wait (%p9784_p13), [#allocation13], 1040  }
 0x23a   : > { %8435 = vsyncadd (%p9785_p8), [#allocation13], 4294966256  ;;  %p9786_p7 = pmov %p9783_p4 }
 0x23b   : > { %p9787_p0 = pmov %p9783_p4 }
 0x23c   : > { %8437 = dma.done.wait (%p9786_p7), [#allocation16], 1040  }
 0x23d   : > { %8439 = vsyncadd (%p9787_p0), [#allocation16], 4294966256  ;;  %p9788_p1 = pmov %p9787_p0 }
 0x23e   : > { %p9789_p3 = pmov %p9787_p0 }
 0x23f   : > { %8441 = dma.done.wait (%p9788_p1), [#allocation19], 32784  }
 0x240   : > { %8443 = vsyncadd (%p9789_p3), [#allocation19], 4294934512  ;;  %p9790_p5 = pmov %p9787_p0 }
 0x241   : > { %p9791_p9 = pmov %p9787_p0 }
 0x242   : > { %8445 = dma.done.wait (%p9790_p5), [#allocation22], 2048  }
 0x243   : > { %8447 = vsyncadd (%p9791_p9), [#allocation22], 4294965248  ;;  %p9792_p2 = pmov %p9787_p0 }
 0x244   : > { %p9793_p10 = pmov %p9787_p0 }
 0x245   : > { %8449 = dma.done.wait (%p9792_p2), [#allocation25], 1040  }
 0x246   : > { %8451 = vsyncadd (%p9793_p10), [#allocation25], 4294966256  ;;  %p9794_p11 = pmov %p9787_p0 }
 0x247   : > { %p9795_p6 = pmov %p9787_p0 }
 0x248   : > { %8453 = dma.done.wait (%p9794_p11), [#allocation28], 80  }
 0x249   : > { %8455 = vsyncadd (%p9795_p6), [#allocation28], 4294967216  ;;  %p9796_p12 = pmov %p9787_p0 }
 0x24a   : > { %p9797_p4 = pmov %p9787_p0 }
 0x24b   : > { %8457 = dma.done.wait (%p9796_p12), [#allocation31], 3072  }
 0x24c   : > { %8459 = vsyncadd (%p9797_p4), [#allocation31], 4294964224  ;;  %p1139_p13 = scmp.lt.s32.totalorder %s8665_s28, 3  ;;  %s9798_s17 = sld [smem:[#allocation49_spill]] }
 0x24d   : > { %s9799_s22 = sld [smem:[#allocation67_spill]]  ;;  %s9800_s3 = sld [smem:[#allocation68_spill]] }
 0x24e   : > { %s1140_s5 = scalar_select %p1139_p13, %s8665_s28, 3 }
 0x24f   : > { %s9802_s2 = sld [smem:[#allocation70_spill]]  ;;  %p9803_p8 = scmp.ne.s32.totalorder %s8665_s28, 0 }
 0x250   : > { %s6610_s9 = sshll.u32 %s1140_s5, 8  ;;  %s9180_s8 = sshll.u32 %s1140_s5, 3  ;;  %vm1166_vm0 = vcmask (!%p9803_p8), 261120   ;;  %v1168_v1 = vld [vmem:[#allocation4] sm:$0xff] (!%p9803_p8) }
 0x251   : > { %s9801_s5 = sld [smem:[#allocation69_spill]]  ;;  %1164 = sbr.rel (%p9803_p8) target bundleno = 602 (0x25a), region = 192  ;;  %1169 = vst [vmem:[#allocation3] sm:$0xff] (!%p9803_p8), %v1168_v1 }
 0x252   : > { %s9185_s0 = scalar_lea.vmem %s9798_s17, %s6610_s9  ;;  %s9804_s14 = sld [smem:[#allocation46_spill]] (!%p9803_p8) }
 0x253   : > { %s1147_s19 = scalar_lea.vmem %s9799_s22, %s9180_s8  ;;  %s1151_s27 = scalar_lea.vmem %s9800_s3, %s9180_s8 }
 0x255   : > { %s1159_s1 = scalar_lea.vmem %s9802_s2, %s9180_s8 }
 0x257   : > { %s1155_s11 = scalar_lea.vmem %s9801_s5, %s9180_s8 }
 0x258   : > { %v1165_v0 = vld [vmem:[%s9804_s14] sm:$0xff] }
 0x259   : > { %1167 = vst.msk [vmem:[#allocation2] sm:$0xff] %vm1166_vm0, %v1165_v0 }
 0x25a PF: > { %v7403_v2 = vld [vmem:[#allocation12] sm:$0xff]   ;;  %v8498_v3 = vmov 0.0   ;;  %v7404_v4 = vld [vmem:[#allocation12 + $0x8] sm:$0xff]   ;;  %vm8499_vm1 = vmmov 0   ;;  %v7405_v5 = vld [vmem:[#allocation12 + $0x10] sm:$0xff]   ;;  %vm1295_vm2 = vcmask 261120  }
 0x25b   : > { %7029 = vmatprep.subr.bf16.mxu0 %v8498_v3  ;;  %7049 = vmatprep.subr.bf16.mxu1 %v8498_v3  ;;  %v7409_v6 = vld [vmem:[#allocation11] sm:$0xff]   ;;  %v7411_v7 = vld [vmem:[#allocation11 + $0x8] sm:$0xff]   ;;  %v7413_v11 = vld [vmem:[#allocation15] sm:$0xff]   ;;  %s9805_s28 = scalar_lea.vmem [#allocation6], %s9133_s10  ;;  %s9806_s20 = sld [smem:[#allocation57_spill]]  ;;  %vm2070_vm5 = vcmask 523264  }
 0x25c   : > { %7030 = vmatpush3.bf16.msra.mxu0 %v7403_v2  ;;  %7053 = vmatprep.mubr.msk.bf16.mxu1 %vm8499_vm1, %v8498_v3  ;;  %v7406_v8 = vld [vmem:[#allocation12 + $0x18] sm:$0xff]   ;;  %v7407_v12 = vld [vmem:[#allocation12 + $0x20] sm:$0xff]   ;;  %v7414_v13 = vld [vmem:[#allocation15 + $0x8] sm:$0xff]   ;;  %s9807_s7 = scalar_lea.vmem [#allocation8], %s9133_s10  ;;  %s8501_s13 = smov 32   ;;  %vm2072_vm6 = vcmask 785408  }
 0x25d   : > { %7031 = vmatprep.subr.bf16.mxu0 %v8498_v3  ;;  %7045 = vmatprep.mubr.msk.bf16.mxu0 %vm8499_vm1, %v8498_v3  ;;  %v7408_v14 = vld [vmem:[#allocation12 + $0x28] sm:$0xff]   ;;  %v7415_v15 = vld [vmem:[#allocation15 + $0x10] sm:$0xff]   ;;  %v7416_v17 = vld [vmem:[#allocation15 + $0x18] sm:$0xff]   ;;  %s9808_s6 = sld [smem:[#allocation58_spill]]  ;;  %s9809_s5 = scalar_lea.vmem [#allocation9], %s9133_s10 }
 0x25e   : > { %7050 = vmatpush3.bf16.msra.mxu1 %v7409_v6  ;;  %v7410_v16 = vld [vmem:[#allocation12 + $0x30] sm:$0xff]   ;;  %v7412_v18 = vld [vmem:[#allocation12 + $0x38] sm:$0xff]   ;;  %v1172_v19 = vld [vmem:[%s9805_s28] sm:$0xff]  ;;  %s9810_s2 = sld [smem:[#allocation66_spill]]  ;;  %s8502_s9 = smov 96  }
 0x25f   : > { %7051 = vmatprep.subr.bf16.mxu1 %v8498_v3  ;;  %v7417_v20 = vld [vmem:[#allocation15 + $0x20] sm:$0xff]   ;;  %v1194_v21 = vpack.c.bf16 %v1172_v19, %v1172_v19  ;;  %v7418_v22 = vld [vmem:[#allocation15 + $0x28] sm:$0xff]   ;;  %v7419_v23 = vld [vmem:[#allocation15 + $0x30] sm:$0xff]  }
 0x260   : > { %7032 = vmatpush3.bf16.msra.mxu0 %v7404_v4  ;;  %v1170_v9 = vld [vmem:[#allocation2] sm:$0xff]  ;;  %v7420_v24 = vld [vmem:[#allocation15 + $0x38] sm:$0xff]  }
 0x261   : > { %7033 = vmatprep.subr.bf16.mxu0 %v8498_v3  ;;  %v1177_v10 = vpack.c.bf16 %v1170_v9, %v1170_v9  ;;  %v7421_v25 = vld [vmem:[%s9806_s20] ss:$16 sps:$4 sm:$0xff]   ;;  %v7423_v26 = vld [vmem:[%s9806_s20 + $0x4] ss:$16 sps:$4 sm:$0xff]   ;;  %v7426_v27 = vld [vmem:[%s9806_s20 + $0xc] ss:$16 sps:$4 sm:$0xff]  }
 0x262   : > { %7052 = vmatpush3.bf16.msra.mxu1 %v7411_v7  ;;  %v7429_v28 = vld [vmem:[%s9806_s20 + $0x24] ss:$16 sps:$4 sm:$0xff]   ;;  %v7427_v29 = vld [vmem:[%s9806_s20 + $0x20] ss:$16 sps:$4 sm:$0xff]   ;;  %v6199_v44 = vld [vmem:[#allocation14] ss:$0 sm:$0xff] }
 0x263   : > { %7057 = vmatprep.subr.bf16.mxu1 %v8498_v3  ;;  %v7435_v30 = vld [vmem:[%s9806_s20 + $0x44] ss:$16 sps:$4 sm:$0xff]   ;;  %v7433_v31 = vld [vmem:[%s9806_s20 + $0x40] ss:$16 sps:$4 sm:$0xff]   ;;  %v7424_v51 = vld [vmem:[%s9806_s20 + $0x8] ss:$16 sps:$4 sm:$0xff]  }
 0x264   : > { %7034 = vmatpush3.bf16.msra.mxu0 %v7405_v5  ;;  %v7441_v32 = vld [vmem:[%s9806_s20 + $0x64] ss:$16 sps:$4 sm:$0xff]   ;;  %v7439_v33 = vld [vmem:[%s9806_s20 + $0x60] ss:$16 sps:$4 sm:$0xff]   ;;  %v7432_v53 = vld [vmem:[%s9806_s20 + $0x2c] ss:$16 sps:$4 sm:$0xff]  }
 0x265   : > { %7035 = vmatprep.subr.bf16.mxu0 %v8498_v3  ;;  %7054 = vmatmul.mubr.msk.bf16.vlgmr.msra.gmra.mrb[0].mxu1 %vm1295_vm2, %v1177_v10  ;;  %v7447_v34 = vld [vmem:[%s9806_s20 + $0x84] ss:$16 sps:$4 sm:$0xff]   ;;  %v7445_v35 = vld [vmem:[%s9806_s20 + $0x80] ss:$16 sps:$4 sm:$0xff]   ;;  %v7430_v55 = vld [vmem:[%s9806_s20 + $0x28] ss:$16 sps:$4 sm:$0xff]  }
 0x266   : > { %7058 = vmatpush3.bf16.msra.mxu1 %v7413_v11  ;;  %7073 = vmatprep.mubr.msk.bf16.mxu1 %vm8499_vm1, %v8498_v3  ;;  %v7453_v36 = vld [vmem:[%s9806_s20 + $0xa4] ss:$16 sps:$4 sm:$0xff]   ;;  %v7451_v37 = vld [vmem:[%s9806_s20 + $0xa0] ss:$16 sps:$4 sm:$0xff]   ;;  %v7438_v56 = vld [vmem:[%s9806_s20 + $0x4c] ss:$16 sps:$4 sm:$0xff]  }
 0x267   : > { %7059 = vmatprep.subr.bf16.mxu1 %v8498_v3  ;;  %v7459_v38 = vld [vmem:[%s9806_s20 + $0xc4] ss:$16 sps:$4 sm:$0xff]   ;;  %v7457_v39 = vld [vmem:[%s9806_s20 + $0xc0] ss:$16 sps:$4 sm:$0xff]   ;;  %v7436_v57 = vld [vmem:[%s9806_s20 + $0x48] ss:$16 sps:$4 sm:$0xff]  }
 0x268   : > { %7036 = vmatpush3.bf16.msra.mxu0 %v7406_v8  ;;  %v7444_v58 = vld [vmem:[%s9806_s20 + $0x6c] ss:$16 sps:$4 sm:$0xff]   ;;  %v7442_v59 = vld [vmem:[%s9806_s20 + $0x68] ss:$16 sps:$4 sm:$0xff]   ;;  %v7465_v2 = vld [vmem:[%s9806_s20 + $0xe4] ss:$16 sps:$4 sm:$0xff]  }
 0x269   : > { %7037 = vmatprep.subr.bf16.mxu0 %v8498_v3  ;;  %v7450_v60 = vld [vmem:[%s9806_s20 + $0x8c] ss:$16 sps:$4 sm:$0xff]   ;;  %v7448_v61 = vld [vmem:[%s9806_s20 + $0x88] ss:$16 sps:$4 sm:$0xff]   ;;  %v7463_v5 = vld [vmem:[%s9806_s20 + $0xe0] ss:$16 sps:$4 sm:$0xff]  }
 0x26a   : > { %7060 = vmatpush3.bf16.msra.mxu1 %v7414_v13  ;;  %v7456_v62 = vld [vmem:[%s9806_s20 + $0xac] ss:$16 sps:$4 sm:$0xff]   ;;  %v7454_v63 = vld [vmem:[%s9806_s20 + $0xa8] ss:$16 sps:$4 sm:$0xff]   ;;  %v8500_v8 = vmov 0  }
 0x26b   : > { %7061 = vmatprep.subr.bf16.mxu1 %v8498_v3  ;;  %v7462_v0 = vld [vmem:[%s9806_s20 + $0xcc] ss:$16 sps:$4 sm:$0xff]   ;;  %v7460_v1 = vld [vmem:[%s9806_s20 + $0xc8] ss:$16 sps:$4 sm:$0xff]  }
 0x26c   : > { %7038 = vmatpush3.bf16.msra.mxu0 %v7407_v12  ;;  %v7468_v4 = vld [vmem:[%s9806_s20 + $0xec] ss:$16 sps:$4 sm:$0xff]   ;;  %v7466_v6 = vld [vmem:[%s9806_s20 + $0xe8] ss:$16 sps:$4 sm:$0xff]  }
 0x26d   : > { %7039 = vmatprep.subr.bf16.mxu0 %v8498_v3  ;;  %v7471_v7 = vld [vmem:[#allocation30 + $0x4] ss:$12 sps:$4 sm:$0xff]   ;;  %v6200_v9 = vld [vmem:[#allocation17] ss:$0 sm:$0xff]  ;;  %v7475_v19 = vld [vmem:[#allocation30 + $0x1c] ss:$12 sps:$4 sm:$0xff]  }
 0x26e   : > { %7062 = vmatpush3.bf16.msra.mxu1 %v7415_v15 }
 0x26f   : > { %7063 = vmatprep.subr.bf16.mxu1 %v8498_v3 }
 0x270   : > { %7040 = vmatpush3.bf16.msra.mxu0 %v7408_v14 }
 0x271   : > { %7041 = vmatprep.subr.bf16.mxu0 %v8498_v3 }
 0x272   : > { %7064 = vmatpush3.bf16.msra.mxu1 %v7416_v17  ;;  %v7472_v17 = vld [vmem:[#allocation30 + $0x8] ss:$12 sps:$4 sm:$0xff]  }
 0x273   : > { %7065 = vmatprep.subr.bf16.mxu1 %v8498_v3 }
 0x274   : > { %7042 = vmatpush3.bf16.msra.mxu0 %v7410_v16  ;;  %v7469_v16 = vld [vmem:[#allocation30] ss:$12 sps:$4 sm:$0xff]  }
 0x275   : > { %7043 = vmatprep.subr.bf16.mxu0 %v8498_v3 }
 0x276   : > { %7066 = vmatpush3.bf16.msra.mxu1 %v7417_v20  ;;  %v7473_v20 = vld [vmem:[#allocation30 + $0x18] ss:$12 sps:$4 sm:$0xff]  }
 0x277   : > { %7067 = vmatprep.subr.bf16.mxu1 %v8498_v3 }
 0x278   : > { %7044 = vmatpush3.bf16.msra.mxu0 %v7412_v18 }
 0x279   : > { %1676 = vmatprep.subr.bf16.mxu0 %v7423_v26  ;;  %v1774_v26 = vld [vmem:[%s9807_s7] sm:$0xff]  ;;  %s9813_s7 = sld [smem:[#allocation64_spill]] }
 0x27a   : > { %7068 = vmatpush3.bf16.msra.mxu1 %v7418_v22  ;;  %v7479_v22 = vld [vmem:[#allocation30 + $0x34] ss:$12 sps:$4 sm:$0xff]   ;;  %1776 = vrot.lane.b32.xlu0 %v1774_v26, %s8501_s13 }
 0x27b   : > { %7046 = vmatmul.mubr.bf16.vlgmr.msra.gmra.mrb[0].mxu0 %v1194_v21  ;;  %7069 = vmatprep.subr.bf16.mxu1 %v8498_v3  ;;  %v7476_v21 = vld [vmem:[#allocation30 + $0x20] ss:$12 sps:$4 sm:$0xff]   ;;  %v7536_v26 = vld [vmem:[#allocation18 + $0x180] sm:$0xff]  }
 0x27c   : > { %1677 = vmatpush1.bf16.msra.mxu0 %v7421_v25  ;;  %1708 = vmatprep.mubr.bf16.mxu0 %v8500_v8  ;;  %v7483_v25 = vld [vmem:[#allocation30 + $0x4c] ss:$12 sps:$4 sm:$0xff]  }
 0x27d   : > { %1678 = vmatprep.subr.bf16.mxu0 %v7429_v28  ;;  %v7484_v28 = vld [vmem:[#allocation30 + $0x50] ss:$12 sps:$4 sm:$0xff]  }
 0x27e   : > { %7070 = vmatpush3.bf16.msra.mxu1 %v7419_v23  ;;  %v7477_v23 = vld [vmem:[#allocation30 + $0x30] ss:$12 sps:$4 sm:$0xff]  }
 0x27f   : > { %7071 = vmatprep.subr.bf16.mxu1 %v8498_v3 }
 0x280   : > { %1679 = vmatpush1.bf16.msra.mxu0 %v7427_v29  ;;  %v7487_v29 = vld [vmem:[#allocation30 + $0x64] ss:$12 sps:$4 sm:$0xff]  }
 0x281   : > { %1680 = vmatprep.subr.bf16.mxu0 %v7435_v30  ;;  %v7485_v30 = vld [vmem:[#allocation30 + $0x60] ss:$12 sps:$4 sm:$0xff]  }
 0x282   : > { %7072 = vmatpush3.bf16.msra.mxu1 %v7420_v24  ;;  %v7480_v24 = vld [vmem:[#allocation30 + $0x38] ss:$12 sps:$4 sm:$0xff]  }
 0x283   : > { %1717 = vmatprep.subr.bf16.mxu1 %v7426_v27  ;;  %v7481_v27 = vld [vmem:[#allocation30 + $0x48] ss:$12 sps:$4 sm:$0xff]  }
 0x284   : > { %1681 = vmatpush1.bf16.msra.mxu0 %v7433_v31  ;;  %v7488_v31 = vld [vmem:[#allocation30 + $0x68] ss:$12 sps:$4 sm:$0xff]  }
 0x285   : > { %1682 = vmatprep.subr.bf16.mxu0 %v7441_v32  ;;  %v7491_v32 = vld [vmem:[#allocation30 + $0x7c] ss:$12 sps:$4 sm:$0xff]  }
 0x288   : > { %1683 = vmatpush1.bf16.msra.mxu0 %v7439_v33  ;;  %v7489_v33 = vld [vmem:[#allocation30 + $0x78] ss:$12 sps:$4 sm:$0xff]  }
 0x289   : > { %1684 = vmatprep.subr.bf16.mxu0 %v7447_v34  ;;  %v7492_v34 = vld [vmem:[#allocation30 + $0x80] ss:$12 sps:$4 sm:$0xff]  }
 0x28c   : > { %1685 = vmatpush1.bf16.msra.mxu0 %v7445_v35  ;;  %v7495_v35 = vld [vmem:[#allocation30 + $0x94] ss:$12 sps:$4 sm:$0xff]  }
 0x28d   : > { %1686 = vmatprep.subr.bf16.mxu0 %v7453_v36  ;;  %v7493_v36 = vld [vmem:[#allocation30 + $0x90] ss:$12 sps:$4 sm:$0xff]  }
 0x290   : > { %1687 = vmatpush1.bf16.msra.mxu0 %v7451_v37  ;;  %v7496_v37 = vld [vmem:[#allocation30 + $0x98] ss:$12 sps:$4 sm:$0xff]  }
 0x291   : > { %1688 = vmatprep.subr.bf16.mxu0 %v7459_v38  ;;  %v7499_v38 = vld [vmem:[#allocation30 + $0xac] ss:$12 sps:$4 sm:$0xff]  }
 0x294   : > { %1689 = vmatpush1.bf16.msra.mxu0 %v7457_v39  ;;  %v7497_v39 = vld [vmem:[#allocation30 + $0xa8] ss:$12 sps:$4 sm:$0xff]  }
 0x295   : > { %1690 = vmatprep.subr.bf16.mxu0 %v7465_v2  ;;  %v7520_v2 = vld [vmem:[#allocation18 + $0xa0] sm:$0xff]  }
 0x298   : > { %1691 = vmatpush1.bf16.msra.mxu0 %v7463_v5  ;;  %v7522_v5 = vld [vmem:[#allocation18 + $0xe8] sm:$0xff]  }
 0x299   : > { %1963 = vmatprep.subr.bf16.mxu0 %v7471_v7  ;;  %v7524_v7 = vld [vmem:[#allocation18 + $0xa8] sm:$0xff]  }
 0x338   : > { %v1333_v40 = vpop.f32.mrb[0].mxu1 }
 0x339   : > { %v7055_v41 = vpop.f32.mrb[1].mxu1 }
 0x33a   : > { %v1336_v42 = vpop.f32.mrb[2].mxu1  ;;  %v1171_v41 = vld [vmem:[#allocation3] sm:$0xff] }
 0x33b   : > { %v7056_v43 = vpop.f32.mrb[3].mxu1  ;;  %v7501_v42 = vld [vmem:[#allocation18 + $0x40] sm:$0xff]  }
 0x33c   : > { %v7502_v43 = vld [vmem:[#allocation18 + $0xc0] sm:$0xff]  }
 0x34e   : > { %v1277_v45 = vpop.f32.mrb[0].mxu0 }
 0x34f   : > { %v1334_v46 = vadd.f32 %v1333_v40, %v1277_v45  ;;  %v7047_v47 = vpop.f32.mrb[1].mxu0  ;;  %v7500_v40 = vld [vmem:[#allocation30 + $0xb0] ss:$12 sps:$4 sm:$0xff]   ;;  %v2076_v45 = vld [vmem:[%s9185_s0 + $0x8] sm:$0xff] }
 0x350   : > { %v1280_v48 = vpop.f32.mrb[2].mxu0  ;;  %v7503_v47 = vld [vmem:[#allocation18] sm:$0xff]  }
 0x351   : > { %v1346_v49 = vadd.f32 %v6199_v44, %v1334_v46  ;;  %v7048_v50 = vpop.f32.mrb[3].mxu0  ;;  %v1817_v44 = vpack.c.bf16 %v1171_v41, %v1171_v41  ;;  %v2078_v46 = vld [vmem:[%s9185_s0 + $0x18] sm:$0xff] }
 0x352   : > { %v7504_v48 = vld [vmem:[#allocation18 + $0x80] sm:$0xff]   ;;  %v7506_v50 = vld [vmem:[#allocation18 + $0xc8] sm:$0xff]  }
 0x353   : > { %v1347_v52 = vmax.f32 %v1346_v49, 0.0  ;;  %v7505_v49 = vld [vmem:[#allocation18 + $0x48] sm:$0xff]   ;;  %v7549_v41 = vld [vmem:[#allocation18 + $0x160] sm:$0xff]  }
 0x355   : > { %v1364_v54 = vpack.c.bf16 %v1347_v52, %v1347_v52  ;;  %v2622_v52 = vpack.c.bf16 %v2078_v46, %v2078_v46  ;;  %v7554_v46 = vld [vmem:[#allocation18 + $0x1e8] sm:$0xff]  }
 0x357   : > { %7074 = vmatmul.mubr.bf16.vlgmr.msra.gmra.mrb[4].mxu1 %v1364_v54  ;;  %v7508_v54 = vld [vmem:[#allocation18 + $0x88] sm:$0xff]  }
 0x358   : > { %1718 = vmatpush1.bf16.msra.mxu1 %v7424_v51  ;;  %1749 = vmatprep.mubr.bf16.mxu1 %v8500_v8  ;;  %v2620_v51 = vpack.c.bf16 %v2076_v45, %v2076_v45  ;;  %v7553_v45 = vld [vmem:[#allocation18 + $0x168] sm:$0xff]  }
 0x359   : > { %1719 = vmatprep.subr.bf16.mxu1 %v7432_v53  ;;  %v7507_v53 = vld [vmem:[#allocation18 + $0x8] sm:$0xff]  }
 0x35c   : > { %1720 = vmatpush1.bf16.msra.mxu1 %v7430_v55  ;;  %v7509_v55 = vld [vmem:[#allocation18 + $0x50] sm:$0xff]  }
 0x35d   : > { %1721 = vmatprep.subr.bf16.mxu1 %v7438_v56  ;;  %v7510_v56 = vld [vmem:[#allocation18 + $0xd0] sm:$0xff]  }
 0x360   : > { %1722 = vmatpush1.bf16.msra.mxu1 %v7436_v57  ;;  %v7511_v57 = vld [vmem:[#allocation18 + $0x10] sm:$0xff]  }
 0x361   : > { %1723 = vmatprep.subr.bf16.mxu1 %v7444_v58  ;;  %v7512_v58 = vld [vmem:[#allocation18 + $0x90] sm:$0xff]  }
 0x364   : > { %1724 = vmatpush1.bf16.msra.mxu1 %v7442_v59  ;;  %v7513_v59 = vld [vmem:[#allocation18 + $0x58] sm:$0xff]  }
 0x365   : > { %1725 = vmatprep.subr.bf16.mxu1 %v7450_v60  ;;  %v7514_v60 = vld [vmem:[#allocation18 + $0xd8] sm:$0xff]  }
 0x368   : > { %1726 = vmatpush1.bf16.msra.mxu1 %v7448_v61  ;;  %v7515_v61 = vld [vmem:[#allocation18 + $0x18] sm:$0xff]  }
 0x369   : > { %1727 = vmatprep.subr.bf16.mxu1 %v7456_v62  ;;  %v7516_v62 = vld [vmem:[#allocation18 + $0x98] sm:$0xff]  }
 0x36c   : > { %1728 = vmatpush1.bf16.msra.mxu1 %v7454_v63  ;;  %v7517_v63 = vld [vmem:[#allocation18 + $0x60] sm:$0xff]  }
 0x36d   : > { %1729 = vmatprep.subr.bf16.mxu1 %v7462_v0  ;;  %v7518_v0 = vld [vmem:[#allocation18 + $0xe0] sm:$0xff]  }
 0x370   : > { %1730 = vmatpush1.bf16.msra.mxu1 %v7460_v1  ;;  %v7519_v1 = vld [vmem:[#allocation18 + $0x20] sm:$0xff]  }
 0x371   : > { %1731 = vmatprep.subr.bf16.mxu1 %v7468_v4  ;;  %v7521_v4 = vld [vmem:[#allocation18 + $0x68] sm:$0xff]  }
 0x374   : > { %1732 = vmatpush1.bf16.msra.mxu1 %v7466_v6  ;;  %v7523_v6 = vld [vmem:[#allocation18 + $0x28] sm:$0xff]  }
 0x375   : > { %7077 = vmatprep.subr.bf16.mxu1 %v8498_v3 }
 0x42a   : > { %v1454_v10 = vpop.f32.mrb[4].mxu1 }
 0x42b   : > { %v1455_v11 = vadd.f32 %v6200_v9, %v1454_v10  ;;  %v7075_v12 = vpop.f32.mrb[5].mxu1  ;;  %v7525_v9 = vld [vmem:[#allocation18 + $0x70] sm:$0xff]  }
 0x42c   : > { %v1457_v13 = vpop.f32.mrb[6].mxu1  ;;  %v7526_v10 = vld [vmem:[#allocation18 + $0xf0] sm:$0xff]  }
 0x42d   : > { %v1460_v14 = vmax.f32 %v1455_v11, 0.0  ;;  %v7076_v15 = vpop.f32.mrb[7].mxu1  ;;  %v7527_v11 = vld [vmem:[#allocation18 + $0x30] sm:$0xff]   ;;  %v7529_v13 = vld [vmem:[#allocation18 + $0x78] sm:$0xff]  }
 0x42e   : > { %v7528_v12 = vld [vmem:[#allocation18 + $0xb0] sm:$0xff]   ;;  %v7531_v15 = vld [vmem:[#allocation18 + $0x38] sm:$0xff]  }
 0x42f   : > { %v1493_v18 = vpack.c.bf16 %v1460_v14, %v1460_v14  ;;  %v7530_v14 = vld [vmem:[#allocation18 + $0xf8] sm:$0xff]  }
 0x431   : > { %1709 = vmatmul.mubr.bf16.vlgmr.msra.gmra.mrb[4].mxu0 %v1493_v18  ;;  %1750 = vmatmul.mubr.bf16.vlgmr.msra.gmra.mrb[8].mxu1 %v1493_v18  ;;  %v2077_v18 = vld [vmem:[%s9185_s0 + $0x10] sm:$0xff] }
 0x432   : > { %1964 = vmatpush1.bf16.msra.mxu0 %v7469_v16  ;;  %7078 = vmatpush3.bf16.msra.mxu1 %v7472_v17  ;;  %v7532_v16 = vld [vmem:[#allocation18 + $0xb8] sm:$0xff]   ;;  %v2075_v17 = vld [vmem:[%s9185_s0] sm:$0xff] }
 0x433   : > { %1965 = vmatprep.subr.bf16.mxu0 %v7475_v19  ;;  %7079 = vmatprep.subr.bf16.mxu1 %v8498_v3  ;;  %v7533_v19 = vld [vmem:[#allocation18 + $0x140] sm:$0xff]  }
 0x434   : > { %1995 = vmatprep.mubr.bf16.mxu0 %v8500_v8  ;;  %7093 = vmatprep.mubr.msk.bf16.mxu1 %vm8499_vm1, %v8498_v3 }
 0x436   : > { %1966 = vmatpush1.bf16.msra.mxu0 %v7473_v20  ;;  %7080 = vmatpush3.bf16.msra.mxu1 %v7476_v21  ;;  %v7534_v20 = vld [vmem:[#allocation18 + $0x1c0] sm:$0xff]   ;;  %v2619_v21 = vpack.c.bf16 %v2075_v17, %v2075_v17  ;;  %v7579_v17 = vld [vmem:[#allocation18 + $0x218] sm:$0xff]  }
 0x437   : > { %1967 = vmatprep.subr.bf16.mxu0 %v7479_v22  ;;  %7081 = vmatprep.subr.bf16.mxu1 %v8498_v3  ;;  %v2621_v22 = vpack.c.bf16 %v2077_v18, %v2077_v18  ;;  %v7580_v18 = vld [vmem:[#allocation18 + $0x298] sm:$0xff]  }
 0x43a   : > { %1968 = vmatpush1.bf16.msra.mxu0 %v7477_v23  ;;  %7082 = vmatpush3.bf16.msra.mxu1 %v7480_v24  ;;  %v2080_v23 = vld [vmem:[%s9185_s0 + $0x28] sm:$0xff]  ;;  %v2082_v24 = vld [vmem:[%s9185_s0 + $0x38] sm:$0xff] }
 0x43b   : > { %1969 = vmatprep.subr.bf16.mxu0 %v7483_v25  ;;  %7083 = vmatprep.subr.bf16.mxu1 %v8498_v3  ;;  %v7535_v25 = vld [vmem:[#allocation18 + $0x100] sm:$0xff]  }
 0x43e   : > { %1970 = vmatpush1.bf16.msra.mxu0 %v7481_v27  ;;  %7084 = vmatpush3.bf16.msra.mxu1 %v7484_v28  ;;  %v7537_v27 = vld [vmem:[#allocation18 + $0x148] sm:$0xff]  }
 0x43f   : > { %1971 = vmatprep.subr.bf16.mxu0 %v7487_v29  ;;  %7085 = vmatprep.subr.bf16.mxu1 %v8498_v3  ;;  %v7538_v28 = vld [vmem:[#allocation18 + $0x1c8] sm:$0xff]   ;;  %v2624_v29 = vpack.c.bf16 %v2080_v23, %v2080_v23 }
 0x440   : > { %v7585_v23 = vld [vmem:[#allocation18 + $0x268] sm:$0xff]  }
 0x442   : > { %1972 = vmatpush1.bf16.msra.mxu0 %v7485_v30  ;;  %7086 = vmatpush3.bf16.msra.mxu1 %v7488_v31  ;;  %v2626_v30 = vpack.c.bf16 %v2082_v24, %v2082_v24  ;;  %v7539_v31 = vld [vmem:[#allocation18 + $0x108] sm:$0xff]  }
 0x443   : > { %1973 = vmatprep.subr.bf16.mxu0 %v7491_v32  ;;  %7087 = vmatprep.subr.bf16.mxu1 %v8498_v3  ;;  %v7540_v32 = vld [vmem:[#allocation18 + $0x188] sm:$0xff]  }
 0x444   : > { %v7586_v24 = vld [vmem:[#allocation18 + $0x2e8] sm:$0xff]  }
 0x446   : > { %1974 = vmatpush1.bf16.msra.mxu0 %v7489_v33  ;;  %7088 = vmatpush3.bf16.msra.mxu1 %v7492_v34  ;;  %v7541_v33 = vld [vmem:[#allocation18 + $0x150] sm:$0xff]  }
 0x447   : > { %1975 = vmatprep.subr.bf16.mxu0 %v7495_v35  ;;  %7089 = vmatprep.subr.bf16.mxu1 %v8498_v3  ;;  %v7542_v34 = vld [vmem:[#allocation18 + $0x1d0] sm:$0xff]  }
 0x448   : > { %v7543_v35 = vld [vmem:[#allocation18 + $0x110] sm:$0xff]  }
 0x44a   : > { %1976 = vmatpush1.bf16.msra.mxu0 %v7493_v36  ;;  %7090 = vmatpush3.bf16.msra.mxu1 %v7496_v37  ;;  %v7544_v36 = vld [vmem:[#allocation18 + $0x190] sm:$0xff]   ;;  %v7545_v37 = vld [vmem:[#allocation18 + $0x158] sm:$0xff]  }
 0x44b   : > { %1977 = vmatprep.subr.bf16.mxu0 %v7499_v38  ;;  %7091 = vmatprep.subr.bf16.mxu1 %v8498_v3  ;;  %v7546_v38 = vld [vmem:[#allocation18 + $0x1d8] sm:$0xff]  }
 0x44e   : > { %1978 = vmatpush1.bf16.msra.mxu0 %v7497_v39  ;;  %7092 = vmatpush3.bf16.msra.mxu1 %v7500_v40  ;;  %v7547_v39 = vld [vmem:[#allocation18 + $0x118] sm:$0xff]  }
 0x44f   : > { %6641 = vmatprep.subr.bf16.mxu0 %v7501_v42  ;;  %6663 = vmatprep.subr.bf16.mxu1 %v7502_v43  ;;  %v7548_v40 = vld [vmem:[#allocation18 + $0x198] sm:$0xff]   ;;  %v7550_v42 = vld [vmem:[#allocation18 + $0x1e0] sm:$0xff]  }
 0x450   : > { %v7551_v43 = vld [vmem:[#allocation18 + $0x120] sm:$0xff]  }
 0x451   : > { %1996 = vmatmul.mubr.bf16.vlgmr.msra.gmra.mrb[4].mxu0 %v1817_v44  ;;  %7094 = vmatmul.mubr.bf16.vlgmr.msra.gmra.mrb[12].mxu1 %v1817_v44  ;;  %v7552_v44 = vld [vmem:[#allocation18 + $0x1a0] sm:$0xff]  }
 0x452   : > { %6642 = vmatpush3.bf16.msra.mxu0 %v7503_v47  ;;  %6664 = vmatpush3.bf16.msra.mxu1 %v7504_v48  ;;  %v7555_v47 = vld [vmem:[#allocation18 + $0x128] sm:$0xff]  }
 0x453   : > { %6643 = vmatprep.subr.bf16.mxu0 %v7505_v49  ;;  %6665 = vmatprep.subr.bf16.mxu1 %v7506_v50  ;;  %v7556_v48 = vld [vmem:[#allocation18 + $0x1a8] sm:$0xff]   ;;  %v7557_v49 = vld [vmem:[#allocation18 + $0x170] sm:$0xff]  }
 0x454   : > { %4226 = vmatprep.mubr.bf16.mxu0 %v2620_v51  ;;  %4266 = vmatprep.mubr.bf16.mxu1 %v2622_v52  ;;  %v7558_v50 = vld [vmem:[#allocation18 + $0x1f0] sm:$0xff]  }
 0x455   : > { %v7559_v51 = vld [vmem:[#allocation18 + $0x130] sm:$0xff]  }
 0x456   : > { %6644 = vmatpush3.bf16.msra.mxu0 %v7507_v53  ;;  %6666 = vmatpush3.bf16.msra.mxu1 %v7508_v54  ;;  %v7560_v52 = vld [vmem:[#allocation18 + $0x1b0] sm:$0xff]   ;;  %v7561_v53 = vld [vmem:[#allocation18 + $0x178] sm:$0xff]  }
 0x457   : > { %6645 = vmatprep.subr.bf16.mxu0 %v7509_v55  ;;  %6667 = vmatprep.subr.bf16.mxu1 %v7510_v56  ;;  %v7562_v54 = vld [vmem:[#allocation18 + $0x1f8] sm:$0xff]  }
 0x458   : > { %v7563_v55 = vld [vmem:[#allocation18 + $0x138] sm:$0xff]  }
 0x459   : > { %v7564_v56 = vld [vmem:[#allocation18 + $0x1b8] sm:$0xff]  }
 0x45a   : > { %6646 = vmatpush3.bf16.msra.mxu0 %v7511_v57  ;;  %6668 = vmatpush3.bf16.msra.mxu1 %v7512_v58  ;;  %v2079_v57 = vld [vmem:[%s9185_s0 + $0x20] sm:$0xff]  ;;  %v2081_v58 = vld [vmem:[%s9185_s0 + $0x30] sm:$0xff] }
 0x45b   : > { %6647 = vmatprep.subr.bf16.mxu0 %v7513_v59  ;;  %6669 = vmatprep.subr.bf16.mxu1 %v7514_v60  ;;  %v7565_v59 = vld [vmem:[#allocation18 + $0x240] sm:$0xff]  }
 0x45c   : > { %v7566_v60 = vld [vmem:[#allocation18 + $0x2c0] sm:$0xff]  }
 0x45e   : > { %6648 = vmatpush3.bf16.msra.mxu0 %v7515_v61  ;;  %6670 = vmatpush3.bf16.msra.mxu1 %v7516_v62  ;;  %v2623_v61 = vpack.c.bf16 %v2079_v57, %v2079_v57  ;;  %v2625_v62 = vpack.c.bf16 %v2081_v58, %v2081_v58  ;;  %v7611_v57 = vld [vmem:[#allocation18 + $0x318] sm:$0xff]  }
 0x45f   : > { %6649 = vmatprep.subr.bf16.mxu0 %v7517_v63  ;;  %6671 = vmatprep.subr.bf16.mxu1 %v7518_v0  ;;  %v2084_v63 = vld [vmem:[%s9185_s0 + $0x48] sm:$0xff]  ;;  %v2086_v0 = vld [vmem:[%s9185_s0 + $0x58] sm:$0xff] }
 0x460   : > { %v7612_v58 = vld [vmem:[#allocation18 + $0x398] sm:$0xff]  }
 0x462   : > { %6650 = vmatpush3.bf16.msra.mxu0 %v7519_v1  ;;  %6672 = vmatpush3.bf16.msra.mxu1 %v7520_v2  ;;  %v7567_v1 = vld [vmem:[#allocation18 + $0x200] sm:$0xff]  }
 0x463   : > { %6651 = vmatprep.subr.bf16.mxu0 %v7521_v4  ;;  %6673 = vmatprep.subr.bf16.mxu1 %v7522_v5  ;;  %v7568_v2 = vld [vmem:[#allocation18 + $0x280] sm:$0xff]   ;;  %v7569_v4 = vld [vmem:[#allocation18 + $0x248] sm:$0xff]  }
 0x464   : > { %v7570_v5 = vld [vmem:[#allocation18 + $0x2c8] sm:$0xff]  }
 0x466   : > { %6652 = vmatpush3.bf16.msra.mxu0 %v7523_v6  ;;  %6674 = vmatpush3.bf16.msra.mxu1 %v7524_v7  ;;  %v2628_v6 = vpack.c.bf16 %v2084_v63, %v2084_v63  ;;  %v2630_v7 = vpack.c.bf16 %v2086_v0, %v2086_v0  ;;  %v7617_v63 = vld [vmem:[#allocation18 + $0x368] sm:$0xff]  }
 0x467   : > { %6653 = vmatprep.subr.bf16.mxu0 %v7525_v9  ;;  %6675 = vmatprep.subr.bf16.mxu1 %v7526_v10  ;;  %v7571_v9 = vld [vmem:[#allocation18 + $0x208] sm:$0xff]  }
 0x468   : > { %v7572_v10 = vld [vmem:[#allocation18 + $0x288] sm:$0xff]  }
 0x469   : > { %v7618_v0 = vld [vmem:[#allocation18 + $0x3e8] sm:$0xff]  }
 0x46a   : > { %6654 = vmatpush3.bf16.msra.mxu0 %v7527_v11  ;;  %6676 = vmatpush3.bf16.msra.mxu1 %v7528_v12  ;;  %v7573_v11 = vld [vmem:[#allocation18 + $0x250] sm:$0xff]  }
 0x46b   : > { %6655 = vmatprep.subr.bf16.mxu0 %v7529_v13  ;;  %6677 = vmatprep.subr.bf16.mxu1 %v7530_v14  ;;  %v7574_v12 = vld [vmem:[#allocation18 + $0x2d0] sm:$0xff]  }
 0x46c   : > { %v7575_v13 = vld [vmem:[#allocation18 + $0x210] sm:$0xff]  }
 0x46d   : > { %v7576_v14 = vld [vmem:[#allocation18 + $0x290] sm:$0xff]  }
 0x46e   : > { %6656 = vmatpush3.bf16.msra.mxu0 %v7531_v15  ;;  %6678 = vmatpush3.bf16.msra.mxu1 %v7532_v16  ;;  %v7577_v15 = vld [vmem:[#allocation18 + $0x258] sm:$0xff]  }
 0x46f   : > { %6685 = vmatprep.subr.bf16.mxu0 %v7533_v19  ;;  %6707 = vmatprep.subr.bf16.mxu1 %v7534_v20  ;;  %v7578_v16 = vld [vmem:[#allocation18 + $0x2d8] sm:$0xff]   ;;  %v7581_v19 = vld [vmem:[#allocation18 + $0x260] sm:$0xff]  }
 0x470   : > { %v7582_v20 = vld [vmem:[#allocation18 + $0x2e0] sm:$0xff]  }
 0x471   : > { %4227 = vmatmul.mubr.bf16.vlgmr.msra.gmra.mrb[8].mxu0 %v2619_v21  ;;  %4267 = vmatmul.mubr.bf16.vlgmr.msra.gmra.mrb[16].mxu1 %v2621_v22  ;;  %v7583_v21 = vld [vmem:[#allocation18 + $0x220] sm:$0xff]  }
 0x472   : > { %6686 = vmatpush3.bf16.msra.mxu0 %v7535_v25  ;;  %6708 = vmatpush3.bf16.msra.mxu1 %v7536_v26  ;;  %v7584_v22 = vld [vmem:[#allocation18 + $0x2a0] sm:$0xff]   ;;  %v7587_v25 = vld [vmem:[#allocation18 + $0x228] sm:$0xff]  }
 0x473   : > { %6687 = vmatprep.subr.bf16.mxu0 %v7537_v27  ;;  %6709 = vmatprep.subr.bf16.mxu1 %v7538_v28  ;;  %v7588_v26 = vld [vmem:[#allocation18 + $0x2a8] sm:$0xff]   ;;  %v7589_v27 = vld [vmem:[#allocation18 + $0x270] sm:$0xff]  }
 0x474   : > { %4306 = vmatprep.mubr.bf16.mxu0 %v2624_v29  ;;  %4346 = vmatprep.mubr.bf16.mxu1 %v2626_v30  ;;  %v7590_v28 = vld [vmem:[#allocation18 + $0x2f0] sm:$0xff]  }
 0x475   : > { %v7591_v29 = vld [vmem:[#allocation18 + $0x230] sm:$0xff]  }
 0x476   : > { %6688 = vmatpush3.bf16.msra.mxu0 %v7539_v31  ;;  %6710 = vmatpush3.bf16.msra.mxu1 %v7540_v32  ;;  %v7592_v30 = vld [vmem:[#allocation18 + $0x2b0] sm:$0xff]   ;;  %v7593_v31 = vld [vmem:[#allocation18 + $0x278] sm:$0xff]  }
 0x477   : > { %6689 = vmatprep.subr.bf16.mxu0 %v7541_v33  ;;  %6711 = vmatprep.subr.bf16.mxu1 %v7542_v34  ;;  %v7594_v32 = vld [vmem:[#allocation18 + $0x2f8] sm:$0xff]  }
 0x478   : > { %v7595_v33 = vld [vmem:[#allocation18 + $0x238] sm:$0xff]  }
 0x479   : > { %v7596_v34 = vld [vmem:[#allocation18 + $0x2b8] sm:$0xff]  }
 0x47a   : > { %6690 = vmatpush3.bf16.msra.mxu0 %v7543_v35  ;;  %6712 = vmatpush3.bf16.msra.mxu1 %v7544_v36  ;;  %v2083_v35 = vld [vmem:[%s9185_s0 + $0x40] sm:$0xff]  ;;  %v2085_v36 = vld [vmem:[%s9185_s0 + $0x50] sm:$0xff] }
 0x47b   : > { %6691 = vmatprep.subr.bf16.mxu0 %v7545_v37  ;;  %6713 = vmatprep.subr.bf16.mxu1 %v7546_v38  ;;  %v7597_v37 = vld [vmem:[#allocation18 + $0x340] sm:$0xff]  }
 0x47c   : > { %v7598_v38 = vld [vmem:[#allocation18 + $0x3c0] sm:$0xff]  }
 0x47e   : > { %6692 = vmatpush3.bf16.msra.mxu0 %v7547_v39  ;;  %6714 = vmatpush3.bf16.msra.mxu1 %v7548_v40  ;;  %v2627_v39 = vpack.c.bf16 %v2083_v35, %v2083_v35  ;;  %v2629_v40 = vpack.c.bf16 %v2085_v36, %v2085_v36  ;;  %v7643_v35 = vld [vmem:[#allocation18 + $0x418] sm:$0xff]  }
 0x47f   : > { %6693 = vmatprep.subr.bf16.mxu0 %v7549_v41  ;;  %6715 = vmatprep.subr.bf16.mxu1 %v7550_v42  ;;  %v2088_v41 = vld [vmem:[%s9185_s0 + $0x68] sm:$0xff]  ;;  %v2090_v42 = vld [vmem:[%s9185_s0 + $0x78] sm:$0xff] }
 0x480   : > { %v7644_v36 = vld [vmem:[#allocation18 + $0x498] sm:$0xff]  }
 0x482   : > { %6694 = vmatpush3.bf16.msra.mxu0 %v7551_v43  ;;  %6716 = vmatpush3.bf16.msra.mxu1 %v7552_v44  ;;  %v7599_v43 = vld [vmem:[#allocation18 + $0x300] sm:$0xff]  }
 0x483   : > { %6695 = vmatprep.subr.bf16.mxu0 %v7553_v45  ;;  %6717 = vmatprep.subr.bf16.mxu1 %v7554_v46  ;;  %v7600_v44 = vld [vmem:[#allocation18 + $0x380] sm:$0xff]   ;;  %v7601_v45 = vld [vmem:[#allocation18 + $0x348] sm:$0xff]  }
 0x484   : > { %v7602_v46 = vld [vmem:[#allocation18 + $0x3c8] sm:$0xff]  }
 0x486   : > { %6696 = vmatpush3.bf16.msra.mxu0 %v7555_v47  ;;  %6718 = vmatpush3.bf16.msra.mxu1 %v7556_v48  ;;  %v2632_v47 = vpack.c.bf16 %v2088_v41, %v2088_v41  ;;  %v2634_v48 = vpack.c.bf16 %v2090_v42, %v2090_v42  ;;  %v7649_v41 = vld [vmem:[#allocation18 + $0x468] sm:$0xff]  }
 0x487   : > { %6697 = vmatprep.subr.bf16.mxu0 %v7557_v49  ;;  %6719 = vmatprep.subr.bf16.mxu1 %v7558_v50  ;;  %v7603_v49 = vld [vmem:[#allocation18 + $0x308] sm:$0xff]  }
 0x488   : > { %v7604_v50 = vld [vmem:[#allocation18 + $0x388] sm:$0xff]  }
 0x489   : > { %v7650_v42 = vld [vmem:[#allocation18 + $0x4e8] sm:$0xff]  }
 0x48a   : > { %6698 = vmatpush3.bf16.msra.mxu0 %v7559_v51  ;;  %6720 = vmatpush3.bf16.msra.mxu1 %v7560_v52  ;;  %v7605_v51 = vld [vmem:[#allocation18 + $0x350] sm:$0xff]  }
 0x48b   : > { %6699 = vmatprep.subr.bf16.mxu0 %v7561_v53  ;;  %6721 = vmatprep.subr.bf16.mxu1 %v7562_v54  ;;  %v7606_v52 = vld [vmem:[#allocation18 + $0x3d0] sm:$0xff]  }
 0x48c   : > { %v7607_v53 = vld [vmem:[#allocation18 + $0x310] sm:$0xff]  }
 0x48d   : > { %v7608_v54 = vld [vmem:[#allocation18 + $0x390] sm:$0xff]  }
 0x48e   : > { %6700 = vmatpush3.bf16.msra.mxu0 %v7563_v55  ;;  %6722 = vmatpush3.bf16.msra.mxu1 %v7564_v56  ;;  %v7609_v55 = vld [vmem:[#allocation18 + $0x358] sm:$0xff]  }
 0x48f   : > { %6729 = vmatprep.subr.bf16.mxu0 %v7565_v59  ;;  %6751 = vmatprep.subr.bf16.mxu1 %v7566_v60  ;;  %v7610_v56 = vld [vmem:[#allocation18 + $0x3d8] sm:$0xff]   ;;  %v7613_v59 = vld [vmem:[#allocation18 + $0x360] sm:$0xff]  }
 0x490   : > { %v7614_v60 = vld [vmem:[#allocation18 + $0x3e0] sm:$0xff]  }
 0x491   : > { %4307 = vmatmul.mubr.bf16.vlgmr.msra.gmra.mrb[12].mxu0 %v2623_v61  ;;  %4347 = vmatmul.mubr.bf16.vlgmr.msra.gmra.mrb[20].mxu1 %v2625_v62  ;;  %v7615_v61 = vld [vmem:[#allocation18 + $0x320] sm:$0xff]  }
 0x492   : > { %6730 = vmatpush3.bf16.msra.mxu0 %v7567_v1  ;;  %6752 = vmatpush3.bf16.msra.mxu1 %v7568_v2  ;;  %v7616_v62 = vld [vmem:[#allocation18 + $0x3a0] sm:$0xff]   ;;  %v7619_v1 = vld [vmem:[#allocation18 + $0x328] sm:$0xff]  }
 0x493   : > { %6731 = vmatprep.subr.bf16.mxu0 %v7569_v4  ;;  %6753 = vmatprep.subr.bf16.mxu1 %v7570_v5  ;;  %v7620_v2 = vld [vmem:[#allocation18 + $0x3a8] sm:$0xff]   ;;  %v7621_v4 = vld [vmem:[#allocation18 + $0x370] sm:$0xff]  }
 0x494   : > { %4386 = vmatprep.mubr.bf16.mxu0 %v2628_v6  ;;  %4426 = vmatprep.mubr.bf16.mxu1 %v2630_v7  ;;  %v7622_v5 = vld [vmem:[#allocation18 + $0x3f0] sm:$0xff]  }
 0x495   : > { %v7623_v6 = vld [vmem:[#allocation18 + $0x330] sm:$0xff]  }
 0x496   : > { %6732 = vmatpush3.bf16.msra.mxu0 %v7571_v9  ;;  %6754 = vmatpush3.bf16.msra.mxu1 %v7572_v10  ;;  %v7624_v7 = vld [vmem:[#allocation18 + $0x3b0] sm:$0xff]   ;;  %v7625_v9 = vld [vmem:[#allocation18 + $0x378] sm:$0xff]  }
 0x497   : > { %6733 = vmatprep.subr.bf16.mxu0 %v7573_v11  ;;  %6755 = vmatprep.subr.bf16.mxu1 %v7574_v12  ;;  %v7626_v10 = vld [vmem:[#allocation18 + $0x3f8] sm:$0xff]  }
 0x498   : > { %v7627_v11 = vld [vmem:[#allocation18 + $0x338] sm:$0xff]  }
 0x499   : > { %v7628_v12 = vld [vmem:[#allocation18 + $0x3b8] sm:$0xff]  }
 0x49a   : > { %6734 = vmatpush3.bf16.msra.mxu0 %v7575_v13  ;;  %6756 = vmatpush3.bf16.msra.mxu1 %v7576_v14  ;;  %v2087_v13 = vld [vmem:[%s9185_s0 + $0x60] sm:$0xff]  ;;  %v2089_v14 = vld [vmem:[%s9185_s0 + $0x70] sm:$0xff] }
 0x49b   : > { %6735 = vmatprep.subr.bf16.mxu0 %v7577_v15  ;;  %6757 = vmatprep.subr.bf16.mxu1 %v7578_v16  ;;  %v7629_v15 = vld [vmem:[#allocation18 + $0x440] sm:$0xff]  }
 0x49c   : > { %v7630_v16 = vld [vmem:[#allocation18 + $0x4c0] sm:$0xff]  }
 0x49e   : > { %6736 = vmatpush3.bf16.msra.mxu0 %v7579_v17  ;;  %6758 = vmatpush3.bf16.msra.mxu1 %v7580_v18  ;;  %v2631_v17 = vpack.c.bf16 %v2087_v13, %v2087_v13  ;;  %v2633_v18 = vpack.c.bf16 %v2089_v14, %v2089_v14  ;;  %v7674_v13 = vld [vmem:[#allocation18 + $0x5d8] sm:$0xff]  }
 0x49f   : > { %6737 = vmatprep.subr.bf16.mxu0 %v7581_v19  ;;  %6759 = vmatprep.subr.bf16.mxu1 %v7582_v20  ;;  %v2092_v19 = vld [vmem:[%s9185_s0 + $0x88] sm:$0xff]  ;;  %v2094_v20 = vld [vmem:[%s9185_s0 + $0x98] sm:$0xff] }
 0x4a0   : > { %v7675_v14 = vld [vmem:[#allocation18 + $0x518] sm:$0xff]  }
 0x4a2   : > { %6738 = vmatpush3.bf16.msra.mxu0 %v7583_v21  ;;  %6760 = vmatpush3.bf16.msra.mxu1 %v7584_v22  ;;  %v7631_v21 = vld [vmem:[#allocation18 + $0x400] sm:$0xff]  }
 0x4a3   : > { %6739 = vmatprep.subr.bf16.mxu0 %v7585_v23  ;;  %6761 = vmatprep.subr.bf16.mxu1 %v7586_v24  ;;  %v7632_v22 = vld [vmem:[#allocation18 + $0x480] sm:$0xff]   ;;  %v7633_v23 = vld [vmem:[#allocation18 + $0x448] sm:$0xff]  }
 0x4a4   : > { %v7634_v24 = vld [vmem:[#allocation18 + $0x4c8] sm:$0xff]  }
 0x4a6   : > { %6740 = vmatpush3.bf16.msra.mxu0 %v7587_v25  ;;  %6762 = vmatpush3.bf16.msra.mxu1 %v7588_v26  ;;  %v2636_v25 = vpack.c.bf16 %v2092_v19, %v2092_v19  ;;  %v2638_v26 = vpack.c.bf16 %v2094_v20, %v2094_v20  ;;  %v7679_v19 = vld [vmem:[#allocation18 + $0x520] sm:$0xff]  }
 0x4a7   : > { %6741 = vmatprep.subr.bf16.mxu0 %v7589_v27  ;;  %6763 = vmatprep.subr.bf16.mxu1 %v7590_v28  ;;  %v7635_v27 = vld [vmem:[#allocation18 + $0x408] sm:$0xff]   ;;  %v7680_v20 = vld [vmem:[#allocation18 + $0x5a0] sm:$0xff]  }
 0x4a8   : > { %v7636_v28 = vld [vmem:[#allocation18 + $0x488] sm:$0xff]  }
 0x4aa   : > { %6742 = vmatpush3.bf16.msra.mxu0 %v7591_v29  ;;  %6764 = vmatpush3.bf16.msra.mxu1 %v7592_v30  ;;  %v7637_v29 = vld [vmem:[#allocation18 + $0x450] sm:$0xff]  }
 0x4ab   : > { %6743 = vmatprep.subr.bf16.mxu0 %v7593_v31  ;;  %6765 = vmatprep.subr.bf16.mxu1 %v7594_v32  ;;  %v7638_v30 = vld [vmem:[#allocation18 + $0x4d0] sm:$0xff]  }
 0x4ac   : > { %v7639_v31 = vld [vmem:[#allocation18 + $0x410] sm:$0xff]  }
 0x4ad   : > { %v7640_v32 = vld [vmem:[#allocation18 + $0x490] sm:$0xff]  }
 0x4ae   : > { %6744 = vmatpush3.bf16.msra.mxu0 %v7595_v33  ;;  %6766 = vmatpush3.bf16.msra.mxu1 %v7596_v34  ;;  %v7641_v33 = vld [vmem:[#allocation18 + $0x458] sm:$0xff]  }
 0x4af   : > { %6773 = vmatprep.subr.bf16.mxu0 %v7597_v37  ;;  %6795 = vmatprep.subr.bf16.mxu1 %v7598_v38  ;;  %v7642_v34 = vld [vmem:[#allocation18 + $0x4d8] sm:$0xff]   ;;  %v7645_v37 = vld [vmem:[#allocation18 + $0x460] sm:$0xff]  }
 0x4b0   : > { %v7646_v38 = vld [vmem:[#allocation18 + $0x4e0] sm:$0xff]  }
 0x4b1   : > { %4387 = vmatmul.mubr.bf16.vlgmr.msra.gmra.mrb[16].mxu0 %v2627_v39  ;;  %4427 = vmatmul.mubr.bf16.vlgmr.msra.gmra.mrb[24].mxu1 %v2629_v40  ;;  %v7647_v39 = vld [vmem:[#allocation18 + $0x420] sm:$0xff]  }
 0x4b2   : > { %6774 = vmatpush3.bf16.msra.mxu0 %v7599_v43  ;;  %6796 = vmatpush3.bf16.msra.mxu1 %v7600_v44  ;;  %v7648_v40 = vld [vmem:[#allocation18 + $0x4a0] sm:$0xff]   ;;  %v7651_v43 = vld [vmem:[#allocation18 + $0x428] sm:$0xff]  }
 0x4b3   : > { %6775 = vmatprep.subr.bf16.mxu0 %v7601_v45  ;;  %6797 = vmatprep.subr.bf16.mxu1 %v7602_v46  ;;  %v7652_v44 = vld [vmem:[#allocation18 + $0x4a8] sm:$0xff]   ;;  %v7653_v45 = vld [vmem:[#allocation18 + $0x470] sm:$0xff]  }
 0x4b4   : > { %4466 = vmatprep.mubr.bf16.mxu0 %v2632_v47  ;;  %4506 = vmatprep.mubr.bf16.mxu1 %v2634_v48  ;;  %v7654_v46 = vld [vmem:[#allocation18 + $0x4f0] sm:$0xff]  }
 0x4b5   : > { %v7655_v47 = vld [vmem:[#allocation18 + $0x430] sm:$0xff]  }
 0x4b6   : > { %6776 = vmatpush3.bf16.msra.mxu0 %v7603_v49  ;;  %6798 = vmatpush3.bf16.msra.mxu1 %v7604_v50  ;;  %v7656_v48 = vld [vmem:[#allocation18 + $0x4b0] sm:$0xff]   ;;  %v7657_v49 = vld [vmem:[#allocation18 + $0x478] sm:$0xff]  }
 0x4b7   : > { %6777 = vmatprep.subr.bf16.mxu0 %v7605_v51  ;;  %6799 = vmatprep.subr.bf16.mxu1 %v7606_v52  ;;  %v7658_v50 = vld [vmem:[#allocation18 + $0x4f8] sm:$0xff]  }
 0x4b8   : > { %v7659_v51 = vld [vmem:[#allocation18 + $0x438] sm:$0xff]  }
 0x4b9   : > { %v7660_v52 = vld [vmem:[#allocation18 + $0x4b8] sm:$0xff]  }
 0x4ba   : > { %6778 = vmatpush3.bf16.msra.mxu0 %v7607_v53  ;;  %6800 = vmatpush3.bf16.msra.mxu1 %v7608_v54  ;;  %v2091_v53 = vld [vmem:[%s9185_s0 + $0x80] sm:$0xff]  ;;  %v2093_v54 = vld [vmem:[%s9185_s0 + $0x90] sm:$0xff] }
 0x4bb   : > { %6779 = vmatprep.subr.bf16.mxu0 %v7609_v55  ;;  %6801 = vmatprep.subr.bf16.mxu1 %v7610_v56  ;;  %v7661_v55 = vld [vmem:[#allocation18 + $0x540] sm:$0xff]  }
 0x4bc   : > { %v7662_v56 = vld [vmem:[#allocation18 + $0x5c0] sm:$0xff]  }
 0x4be   : > { %6780 = vmatpush3.bf16.msra.mxu0 %v7611_v57  ;;  %6802 = vmatpush3.bf16.msra.mxu1 %v7612_v58  ;;  %v2635_v57 = vpack.c.bf16 %v2091_v53, %v2091_v53  ;;  %v2637_v58 = vpack.c.bf16 %v2093_v54, %v2093_v54  ;;  %v7695_v53 = vld [vmem:[#allocation18 + $0x600] sm:$0xff]  }
 0x4bf   : > { %6781 = vmatprep.subr.bf16.mxu0 %v7613_v59  ;;  %6803 = vmatprep.subr.bf16.mxu1 %v7614_v60  ;;  %v2096_v59 = vld [vmem:[%s9185_s0 + $0xa8] sm:$0xff]  ;;  %v2098_v60 = vld [vmem:[%s9185_s0 + $0xb8] sm:$0xff] }
 0x4c0   : > { %v7696_v54 = vld [vmem:[#allocation18 + $0x680] sm:$0xff]  }
 0x4c2   : > { %6782 = vmatpush3.bf16.msra.mxu0 %v7615_v61  ;;  %6804 = vmatpush3.bf16.msra.mxu1 %v7616_v62  ;;  %v7663_v61 = vld [vmem:[#allocation18 + $0x500] sm:$0xff]  }
 0x4c3   : > { %6783 = vmatprep.subr.bf16.mxu0 %v7617_v63  ;;  %6805 = vmatprep.subr.bf16.mxu1 %v7618_v0  ;;  %v7664_v62 = vld [vmem:[#allocation18 + $0x580] sm:$0xff]   ;;  %v7665_v63 = vld [vmem:[#allocation18 + $0x548] sm:$0xff]  }
 0x4c4   : > { %v7666_v0 = vld [vmem:[#allocation18 + $0x5c8] sm:$0xff]  }
 0x4c6   : > { %6784 = vmatpush3.bf16.msra.mxu0 %v7619_v1  ;;  %6806 = vmatpush3.bf16.msra.mxu1 %v7620_v2  ;;  %v2640_v1 = vpack.c.bf16 %v2096_v59, %v2096_v59  ;;  %v2642_v2 = vpack.c.bf16 %v2098_v60, %v2098_v60  ;;  %v7699_v59 = vld [vmem:[#allocation18 + $0x608] sm:$0xff]  }
 0x4c7   : > { %6785 = vmatprep.subr.bf16.mxu0 %v7621_v4  ;;  %6807 = vmatprep.subr.bf16.mxu1 %v7622_v5  ;;  %v7667_v4 = vld [vmem:[#allocation18 + $0x508] sm:$0xff]  }
 0x4c8   : > { %v7668_v5 = vld [vmem:[#allocation18 + $0x588] sm:$0xff]  }
 0x4c9   : > { %v7700_v60 = vld [vmem:[#allocation18 + $0x688] sm:$0xff]  }
 0x4ca   : > { %6786 = vmatpush3.bf16.msra.mxu0 %v7623_v6  ;;  %6808 = vmatpush3.bf16.msra.mxu1 %v7624_v7  ;;  %v7669_v6 = vld [vmem:[#allocation18 + $0x550] sm:$0xff]  }
 0x4cb   : > { %6787 = vmatprep.subr.bf16.mxu0 %v7625_v9  ;;  %6809 = vmatprep.subr.bf16.mxu1 %v7626_v10  ;;  %v7670_v7 = vld [vmem:[#allocation18 + $0x5d0] sm:$0xff]  }
 0x4cc   : > { %v7671_v9 = vld [vmem:[#allocation18 + $0x510] sm:$0xff]  }
 0x4cd   : > { %v7672_v10 = vld [vmem:[#allocation18 + $0x590] sm:$0xff]  }
 0x4ce   : > { %6788 = vmatpush3.bf16.msra.mxu0 %v7627_v11  ;;  %6810 = vmatpush3.bf16.msra.mxu1 %v7628_v12  ;;  %v1496_v11 = vlaneseq  ;;  %v7673_v12 = vld [vmem:[#allocation18 + $0x558] sm:$0xff]  }
 0x4cf   : > { %6817 = vmatprep.subr.bf16.mxu0 %v7629_v15  ;;  %6839 = vmatprep.subr.bf16.mxu1 %v7630_v16  ;;  %v7676_v15 = vld [vmem:[#allocation18 + $0x598] sm:$0xff]  }
 0x4d0   : > { %v9369_v16 = vshrl.u32 %v1496_v11, 7  ;;  %v7709_v11 = vld [vmem:[#allocation18 + $0x660] sm:$0xff]  }
 0x4d1   : > { %4467 = vmatmul.mubr.bf16.vlgmr.msra.gmra.mrb[20].mxu0 %v2631_v17  ;;  %4507 = vmatmul.mubr.bf16.vlgmr.msra.gmra.mrb[28].mxu1 %v2633_v18  ;;  %v7677_v17 = vld [vmem:[#allocation18 + $0x560] sm:$0xff]  }
 0x4d2   : > { %6818 = vmatpush3.bf16.msra.mxu0 %v7631_v21  ;;  %6840 = vmatpush3.bf16.msra.mxu1 %v7632_v22  ;;  %v7678_v18 = vld [vmem:[#allocation18 + $0x5e0] sm:$0xff]   ;;  %v1510_v21 = vsub.s32 3, %v9369_v16 }
 0x4d3   : > { %6819 = vmatprep.subr.bf16.mxu0 %v7633_v23  ;;  %6841 = vmatprep.subr.bf16.mxu1 %v7634_v24  ;;  %v9375_v22 = vld [vmem:[%s9808_s6] sm:$0xf]  ;;  %v7681_v23 = vld [vmem:[#allocation18 + $0x568] sm:$0xff]  }
 0x4d4   : > { %4546 = vmatprep.mubr.bf16.mxu0 %v2636_v25  ;;  %4586 = vmatprep.mubr.bf16.mxu1 %v2638_v26  ;;  %v7682_v24 = vld [vmem:[#allocation18 + $0x5e8] sm:$0xff]   ;;  %v1511_v25 = vrot.slane %v9375_v22, %v1510_v21 }
 0x4d5   : > { %v7683_v26 = vld [vmem:[#allocation18 + $0x528] sm:$0xff]  }
 0x4d6   : > { %6820 = vmatpush3.bf16.msra.mxu0 %v7635_v27  ;;  %6842 = vmatpush3.bf16.msra.mxu1 %v7636_v28  ;;  %v7684_v27 = vld [vmem:[#allocation18 + $0x5a8] sm:$0xff]   ;;  %v7685_v28 = vld [vmem:[#allocation18 + $0x570] sm:$0xff]  }
 0x4d7   : > { %6821 = vmatprep.subr.bf16.mxu0 %v7637_v29  ;;  %6843 = vmatprep.subr.bf16.mxu1 %v7638_v30  ;;  %v7686_v29 = vld [vmem:[#allocation18 + $0x5f0] sm:$0xff]  }
 0x4da   : > { %6822 = vmatpush3.bf16.msra.mxu0 %v7639_v31  ;;  %6844 = vmatpush3.bf16.msra.mxu1 %v7640_v32 }
 0x4db   : > { %6823 = vmatprep.subr.bf16.mxu0 %v7641_v33  ;;  %6845 = vmatprep.subr.bf16.mxu1 %v7642_v34  ;;  %v7687_v34 = vld [vmem:[#allocation18 + $0x530] sm:$0xff]  }
 0x4de   : > { %6824 = vmatpush3.bf16.msra.mxu0 %v7643_v35  ;;  %6846 = vmatpush3.bf16.msra.mxu1 %v7644_v36  ;;  %v7688_v35 = vld [vmem:[#allocation18 + $0x5b0] sm:$0xff]  }
 0x4df   : > { %6825 = vmatprep.subr.bf16.mxu0 %v7645_v37  ;;  %6847 = vmatprep.subr.bf16.mxu1 %v7646_v38  ;;  %v7689_v37 = vld [vmem:[#allocation18 + $0x578] sm:$0xff]  }
 0x4e0   : > { %v7690_v38 = vld [vmem:[#allocation18 + $0x5f8] sm:$0xff]  }
 0x4e2   : > { %6826 = vmatpush3.bf16.msra.mxu0 %v7647_v39  ;;  %6848 = vmatpush3.bf16.msra.mxu1 %v7648_v40  ;;  %v7691_v40 = vld [vmem:[#allocation18 + $0x538] sm:$0xff]  }
 0x4e3   : > { %6827 = vmatprep.subr.bf16.mxu0 %v7649_v41  ;;  %6849 = vmatprep.subr.bf16.mxu1 %v7650_v42  ;;  %v7692_v41 = vld [vmem:[#allocation18 + $0x5b8] sm:$0xff]  }
 0x4e6   : > { %6828 = vmatpush3.bf16.msra.mxu0 %v7651_v43  ;;  %6850 = vmatpush3.bf16.msra.mxu1 %v7652_v44  ;;  %v2095_v43 = vld [vmem:[%s9185_s0 + $0xa0] sm:$0xff]  ;;  %v2097_v44 = vld [vmem:[%s9185_s0 + $0xb0] sm:$0xff] }
 0x4e7   : > { %6829 = vmatprep.subr.bf16.mxu0 %v7653_v45  ;;  %6851 = vmatprep.subr.bf16.mxu1 %v7654_v46  ;;  %v5480_v45 = vld [vmem:[%s9809_s5] sm:$0xff] }
 0x4e8   : > { %v7693_v46 = vld [vmem:[#allocation18 + $0x640] sm:$0xff]   ;;  %5482 = vrot.lane.b32.xlu0 %v5480_v45, %s8501_s13  ;;  %s9814_s13 = smov %s9813_s7 }
 0x4ea   : > { %6830 = vmatpush3.bf16.msra.mxu0 %v7655_v47  ;;  %6852 = vmatpush3.bf16.msra.mxu1 %v7656_v48  ;;  %v7694_v47 = vld [vmem:[#allocation18 + $0x6c0] sm:$0xff]  }
 0x4eb   : > { %6831 = vmatprep.subr.bf16.mxu0 %v7657_v49  ;;  %6853 = vmatprep.subr.bf16.mxu1 %v7658_v50  ;;  %v2639_v49 = vpack.c.bf16 %v2095_v43, %v2095_v43  ;;  %v2641_v50 = vpack.c.bf16 %v2097_v44, %v2097_v44  ;;  %v7719_v43 = vld [vmem:[#allocation18 + $0x630] sm:$0xff]  }
 0x4ec   : > { %v7720_v44 = vld [vmem:[#allocation18 + $0x6b0] sm:$0xff]  }
 0x4ee   : > { %6832 = vmatpush3.bf16.msra.mxu0 %v7659_v51  ;;  %6854 = vmatpush3.bf16.msra.mxu1 %v7660_v52  ;;  %v2100_v51 = vld [vmem:[%s9185_s0 + $0xc8] sm:$0xff]  ;;  %v2102_v52 = vld [vmem:[%s9185_s0 + $0xd8] sm:$0xff] }
 0x4ef   : > { %6861 = vmatprep.subr.bf16.mxu0 %v7661_v55  ;;  %6883 = vmatprep.subr.bf16.mxu1 %v7662_v56  ;;  %v7697_v55 = vld [vmem:[#allocation18 + $0x648] sm:$0xff]  }
 0x4f0   : > { %v7698_v56 = vld [vmem:[#allocation18 + $0x6c8] sm:$0xff]  }
 0x4f1   : > { %4547 = vmatmul.mubr.bf16.vlgmr.msra.gmra.mrb[24].mxu0 %v2635_v57  ;;  %4587 = vmatmul.mubr.bf16.vlgmr.msra.gmra.mrb[32].mxu1 %v2637_v58  ;;  %v2644_v57 = vpack.c.bf16 %v2100_v51, %v2100_v51  ;;  %v2646_v58 = vpack.c.bf16 %v2102_v52, %v2102_v52 }
 0x4f2   : > { %6862 = vmatpush3.bf16.msra.mxu0 %v7663_v61  ;;  %6884 = vmatpush3.bf16.msra.mxu1 %v7664_v62  ;;  %v7701_v61 = vld [vmem:[#allocation18 + $0x650] sm:$0xff]  }
 0x4f3   : > { %6863 = vmatprep.subr.bf16.mxu0 %v7665_v63  ;;  %6885 = vmatprep.subr.bf16.mxu1 %v7666_v0  ;;  %v7702_v62 = vld [vmem:[#allocation18 + $0x6d0] sm:$0xff]  }
 0x4f4   : > { %4626 = vmatprep.mubr.bf16.mxu0 %v2640_v1  ;;  %4666 = vmatprep.mubr.bf16.mxu1 %v2642_v2  ;;  %v7703_v63 = vld [vmem:[#allocation18 + $0x610] sm:$0xff]   ;;  %v7705_v1 = vld [vmem:[#allocation18 + $0x658] sm:$0xff]  }
 0x4f5   : > { %v7704_v0 = vld [vmem:[#allocation18 + $0x690] sm:$0xff]   ;;  %v7706_v2 = vld [vmem:[#allocation18 + $0x6d8] sm:$0xff]  }
 0x4f6   : > { %6864 = vmatpush3.bf16.msra.mxu0 %v7667_v4  ;;  %6886 = vmatpush3.bf16.msra.mxu1 %v7668_v5  ;;  %v9396_v5 = vsub.s32 0, %v9369_v16 }
 0x4f7   : > { %6865 = vmatprep.subr.bf16.mxu0 %v7669_v6  ;;  %6887 = vmatprep.subr.bf16.mxu1 %v7670_v7  ;;  %v7707_v7 = vld [vmem:[#allocation18 + $0x618] sm:$0xff]  }
 0x4fa   : > { %6866 = vmatpush3.bf16.msra.mxu0 %v7671_v9  ;;  %6888 = vmatpush3.bf16.msra.mxu1 %v7672_v10  ;;  %v7708_v9 = vld [vmem:[#allocation18 + $0x698] sm:$0xff]   ;;  %v9401_v10 = vld [vmem:[%s9810_s2] sm:$0x7] }
 0x4fb   : > { %6867 = vmatprep.subr.bf16.mxu0 %v7673_v12  ;;  %6889 = vmatprep.subr.bf16.mxu1 %v7674_v13  ;;  %v7710_v12 = vld [vmem:[#allocation18 + $0x6e0] sm:$0xff]   ;;  %v9404_v13 = vsub.s32 1, %v9369_v16 }
 0x4fe   : > { %6868 = vmatpush3.bf16.msra.mxu0 %v7675_v14  ;;  %6890 = vmatpush3.bf16.msra.mxu1 %v7676_v15  ;;  %v1499_v14 = vrot.slane %v9375_v22, %v9396_v5  ;;  %v1823_v15 = vrot.slane %v9401_v10, %v9396_v5 }
 0x4ff   : > { %6869 = vmatprep.subr.bf16.mxu0 %v7677_v17  ;;  %6891 = vmatprep.subr.bf16.mxu1 %v7678_v18  ;;  %v7711_v17 = vld [vmem:[#allocation18 + $0x620] sm:$0xff]  }
 0x500   : > { %v7712_v18 = vld [vmem:[#allocation18 + $0x6a0] sm:$0xff]  }
 0x502   : > { %6870 = vmatpush3.bf16.msra.mxu0 %v7679_v19  ;;  %6892 = vmatpush3.bf16.msra.mxu1 %v7680_v20  ;;  %v7713_v20 = vld [vmem:[#allocation18 + $0x668] sm:$0xff]  }
 0x503   : > { %6871 = vmatprep.subr.bf16.mxu0 %v7681_v23  ;;  %6893 = vmatprep.subr.bf16.mxu1 %v7682_v24  ;;  %v7714_v23 = vld [vmem:[#allocation18 + $0x6e8] sm:$0xff]   ;;  %v1503_v24 = vrot.slane %v9375_v22, %v9404_v13 }
 0x504   : > { %v9380_v30 = vpop.f32.mrb[8].mxu1 }
 0x505   : > { %v1753_v31 = vpop.f32.mrb[9].mxu1 }
 0x506   : > { %v9382_v32 = vadd.f32 %v1753_v31, %v1511_v25  ;;  %6872 = vmatpush3.bf16.msra.mxu0 %v7683_v26  ;;  %6894 = vmatpush3.bf16.msra.mxu1 %v7684_v27  ;;  %v1755_v33 = vpop.f32.mrb[10].mxu1  ;;  %v1827_v25 = vrot.slane %v9401_v10, %v9404_v13  ;;  %v7177_v26 = vadd.f32 %v1823_v15, %v1499_v14  ;;  %v7715_v27 = vld [vmem:[#allocation18 + $0x628] sm:$0xff]   ;;  %v7717_v31 = vld [vmem:[#allocation18 + $0x670] sm:$0xff]  }
 0x507   : > { %v1756_v36 = vpop.f32.mrb[11].mxu1  ;;  %6873 = vmatprep.subr.bf16.mxu0 %v7685_v28  ;;  %6895 = vmatprep.subr.bf16.mxu1 %v7686_v29  ;;  %v7716_v28 = vld [vmem:[#allocation18 + $0x6a8] sm:$0xff]   ;;  %v7718_v33 = vld [vmem:[#allocation18 + $0x6f0] sm:$0xff]  }
 0x508   : > { %v9385_v39 = vadd.f32 0.54, %v9382_v32  ;;  %v7730_v14 = vld [vmem:[#allocation18 + $0x7c8] sm:$0xff]  }
 0x50a   : > { %v1760_v42 = vmin.f32 %v9385_v39, 20.0  ;;  %6874 = vmatpush3.bf16.msra.mxu0 %v7687_v34  ;;  %6896 = vmatpush3.bf16.msra.mxu1 %v7688_v35  ;;  %vm1759_vm4 = vcmp.gt.f32.partialorder %v9385_v39, 20.0 }
 0x50b   : > { %6875 = vmatprep.subr.bf16.mxu0 %v7689_v37  ;;  %6897 = vmatprep.subr.bf16.mxu1 %v7690_v38  ;;  %v7179_v37 = vadd.f32 %v1827_v25, %v1503_v24  ;;  %v7734_v24 = vld [vmem:[#allocation18 + $0x7d0] sm:$0xff]  }
 0x50c   : > { %v1761_v48 = vmul.f32 1.442695, %v1760_v42 }
 0x50e   : > { %7861 = vpow2.f32 %v1761_v48  ;;  %6876 = vmatpush3.bf16.msra.mxu0 %v7691_v40  ;;  %6898 = vmatpush3.bf16.msra.mxu1 %v7692_v41 }
 0x50f   : > { %6905 = vmatprep.subr.bf16.mxu0 %v7693_v46  ;;  %6927 = vmatprep.subr.bf16.mxu1 %v7694_v47 }
 0x511   : > { %4627 = vmatmul.mubr.bf16.vlgmr.msra.gmra.mrb[28].mxu0 %v2639_v49  ;;  %4667 = vmatmul.mubr.bf16.vlgmr.msra.gmra.mrb[36].mxu1 %v2641_v50  ;;  %v7721_v49 = vld [vmem:[#allocation18 + $0x678] sm:$0xff]  }
 0x512   : > { %6906 = vmatpush3.bf16.msra.mxu0 %v7695_v53  ;;  %6928 = vmatpush3.bf16.msra.mxu1 %v7696_v54  ;;  %v7722_v50 = vld [vmem:[#allocation18 + $0x6f8] sm:$0xff]  }
 0x513   : > { %6907 = vmatprep.subr.bf16.mxu0 %v7697_v55  ;;  %6929 = vmatprep.subr.bf16.mxu1 %v7698_v56  ;;  %v1777_v56 = vpop.permute.xlu0 %1776 }
 0x514   : > { %4706 = vmatprep.mubr.bf16.mxu0 %v2644_v57  ;;  %4746 = vmatprep.mubr.bf16.mxu1 %v2646_v58  ;;  %v7723_v58 = vld [vmem:[#allocation18 + $0x638] sm:$0xff]  }
 0x516   : > { %6908 = vmatpush3.bf16.msra.mxu0 %v7699_v59  ;;  %6930 = vmatpush3.bf16.msra.mxu1 %v7700_v60  ;;  %v7724_v60 = vld [vmem:[#allocation18 + $0x6b8] sm:$0xff]  }
 0x517   : > { %6909 = vmatprep.subr.bf16.mxu0 %v7701_v61  ;;  %6931 = vmatprep.subr.bf16.mxu1 %v7702_v62  ;;  %v2099_v61 = vld [vmem:[%s9185_s0 + $0xc0] sm:$0xff]  ;;  %v2101_v62 = vld [vmem:[%s9185_s0 + $0xd0] sm:$0xff] }
 0x518   : > { %v7862_v4 = vpop.eup %7861 }
 0x519   : > { %v1763_v6 = vadd.f32 1.0, %v7862_v4  ;;  %v1766_v19 = vmul.f32 -0.5, %v7862_v4  ;;  %v1769_v34 = vand.u32 2147483647, %v7862_v4 }
 0x51a   : > { %6910 = vmatpush3.bf16.msra.mxu0 %v7703_v63  ;;  %6932 = vmatpush3.bf16.msra.mxu1 %v7704_v0  ;;  %v7725_v63 = vld [vmem:[#allocation18 + $0x740] sm:$0xff]  }
 0x51b   : > { %6911 = vmatprep.subr.bf16.mxu0 %v7705_v1  ;;  %6933 = vmatprep.subr.bf16.mxu1 %v7706_v2  ;;  %7863 = vlog2.f32 %v1763_v6  ;;  %v1767_v29 = vadd.f32 1.0, %v1766_v19  ;;  %vm1770_vm3 = vcmp.lt.f32.partialorder %v1769_v34, 0.0004427343  ;;  %v7726_v2 = vld [vmem:[#allocation18 + $0x7c0] sm:$0xff]   ;;  %v2645_v6 = vpack.c.bf16 %v2101_v62, %v2101_v62  ;;  %v7732_v19 = vld [vmem:[#allocation18 + $0x788] sm:$0xff]   ;;  %v7739_v34 = vld [vmem:[#allocation18 + $0x718] sm:$0xff]  }
 0x51c   : > { %v7751_v62 = vld [vmem:[#allocation18 + $0x730] sm:$0xff]  }
 0x51d   : > { %v1768_v48 = vmul.f32 %v7862_v4, %v1767_v29  ;;  %v2643_v4 = vpack.c.bf16 %v2099_v61, %v2099_v61  ;;  %v7738_v29 = vld [vmem:[#allocation18 + $0x7d8] sm:$0xff]  }
 0x51e   : > { %6912 = vmatpush3.bf16.msra.mxu0 %v7707_v7  ;;  %6934 = vmatpush3.bf16.msra.mxu1 %v7708_v9  ;;  %v2106_v7 = vld [vmem:[%s9185_s0 + $0xf8] sm:$0xff] }
 0x51f   : > { %6913 = vmatprep.subr.bf16.mxu0 %v7709_v11  ;;  %6935 = vmatprep.subr.bf16.mxu1 %v7710_v12  ;;  %v7727_v9 = vld [vmem:[#allocation18 + $0x700] sm:$0xff]   ;;  %v7729_v12 = vld [vmem:[#allocation18 + $0x748] sm:$0xff]  }
 0x520   : > { %v7728_v11 = vld [vmem:[#allocation18 + $0x780] sm:$0xff]  }
 0x522   : > { %6914 = vmatpush3.bf16.msra.mxu0 %v7711_v17  ;;  %6936 = vmatpush3.bf16.msra.mxu1 %v7712_v18  ;;  %v2650_v17 = vpack.c.bf16 %v2106_v7, %v2106_v7  ;;  %v7731_v18 = vld [vmem:[#allocation18 + $0x708] sm:$0xff]  }
 0x523   : > { %6915 = vmatprep.subr.bf16.mxu0 %v7713_v20  ;;  %6937 = vmatprep.subr.bf16.mxu1 %v7714_v23  ;;  %v7733_v23 = vld [vmem:[#allocation18 + $0x750] sm:$0xff]  }
 0x524   : > { %v1997_v35 = vpop.f32.mrb[4].mxu0  ;;  %v9414_v36 = vpop.f32.mrb[12].mxu1 }
 0x525   : > { %v7864_v38 = vpop.eup %7863  ;;  %v7178_v40 = vadd.f32 %v7177_v26, %v1997_v35  ;;  %v1999_v41 = vpop.f32.mrb[5].mxu0  ;;  %v7735_v26 = vld [vmem:[#allocation18 + $0x710] sm:$0xff]   ;;  %v7740_v35 = vld [vmem:[#allocation18 + $0x798] sm:$0xff]  }
 0x526   : > { %v7095_v42 = vpop.f32.mrb[13].mxu1  ;;  %v2001_v45 = vpop.f32.mrb[6].mxu0  ;;  %6916 = vmatpush3.bf16.msra.mxu0 %v7715_v27  ;;  %6938 = vmatpush3.bf16.msra.mxu1 %v7716_v28  ;;  %v1765_v47 = vmul.f32 0.6931472, %v7864_v38  ;;  %v7180_v54 = vadd.f32 %v7179_v37, %v1999_v41  ;;  %v7736_v27 = vld [vmem:[#allocation18 + $0x790] sm:$0xff]   ;;  %v7737_v28 = vld [vmem:[#allocation18 + $0x758] sm:$0xff]  }
 0x527   : > { %v2041_v46 = vpop.f32.mrb[14].mxu1  ;;  %v6265_v51 = vmul.f32 -1.442695, %v7178_v40  ;;  %v2002_v52 = vpop.f32.mrb[7].mxu0  ;;  %6917 = vmatprep.subr.bf16.mxu0 %v7717_v31  ;;  %6939 = vmatprep.subr.bf16.mxu1 %v7718_v33  ;;  %v9427_v31 = vsub.s32 2, %v9369_v16  ;;  %v7741_v38 = vld [vmem:[#allocation18 + $0x760] sm:$0xff]  }
 0x528   : > { %v7096_v53 = vpop.f32.mrb[15].mxu1  ;;  %v1771_v55 = vsel %vm1770_vm3, %v1768_v48, %v1765_v47  ;;  %v6266_v0 = vmul.f32 -1.442695, %v7180_v54  ;;  %v7742_v40 = vld [vmem:[#allocation18 + $0x7e0] sm:$0xff]   ;;  %v7745_v46 = vld [vmem:[#allocation18 + $0x768] sm:$0xff]   ;;  %v7749_v52 = vld [vmem:[#allocation18 + $0x770] sm:$0xff]  }
 0x529   : > { %7865 = vpow2.f32 %v6265_v51  ;;  %v1772_v57 = vsel %vm1759_vm4, %v9385_v39, %v1771_v55  ;;  %v2104_v39 = vld [vmem:[%s9185_s0 + $0xe8] sm:$0xff]  ;;  %v1831_v37 = vrot.slane %v9401_v10, %v9427_v31  ;;  %v1507_v41 = vrot.slane %v9375_v22, %v9427_v31  ;;  %v6267_v55 = vld [vmem:[#allocation20] ss:$0 sm:$0xff] }
 0x52a   : > { %6918 = vmatpush3.bf16.msra.mxu0 %v7719_v43  ;;  %6940 = vmatpush3.bf16.msra.mxu1 %v7720_v44  ;;  %v9418_v59 = vadd.f32 0.0001, %v1772_v57  ;;  %7867 = vpow2.f32 %v6266_v0  ;;  %v2648_v15 = vpack.c.bf16 %v2104_v39, %v2104_v39  ;;  %v7743_v43 = vld [vmem:[#allocation18 + $0x720] sm:$0xff]   ;;  %v7746_v47 = vld [vmem:[#allocation18 + $0x7e8] sm:$0xff]   ;;  %v7750_v53 = vld [vmem:[#allocation18 + $0x7f0] sm:$0xff]  }
 0x52b   : > { %6919 = vmatprep.subr.bf16.mxu0 %v7721_v49  ;;  %6941 = vmatprep.subr.bf16.mxu1 %v7722_v50  ;;  %v7744_v44 = vld [vmem:[#allocation18 + $0x7a0] sm:$0xff]   ;;  %v2039_v45 = vadd.f32 %v9414_v36, %v1831_v37  ;;  %v1752_v10 = vadd.f32 %v9380_v30, %v1507_v41  ;;  %v7747_v50 = vld [vmem:[#allocation18 + $0x728] sm:$0xff]   ;;  %v7755_v39 = vld [vmem:[#allocation18 + $0x738] sm:$0xff]  }
 0x52c   : > { %v1779_v1 = vmul.f32 %v1777_v56, %v9418_v59  ;;  %v7748_v22 = vld [vmem:[#allocation18 + $0x7a8] sm:$0xff]  }
 0x52e   : > { %6920 = vmatpush3.bf16.msra.mxu0 %v7723_v58  ;;  %6942 = vmatpush3.bf16.msra.mxu1 %v7724_v60 }
 0x52f   : > { %1781 = vrot.lane.b32.xlu1 %v1779_v1, %s8502_s9  ;;  %6949 = vmatprep.subr.bf16.mxu0 %v7725_v63  ;;  %v7752_v63 = vld [vmem:[#allocation18 + $0x7b0] sm:$0xff]  }
 0x530   : > { %6971 = vmatprep.subr.bf16.mxu1 %v7726_v2  ;;  %v7753_v2 = vld [vmem:[#allocation18 + $0x778] sm:$0xff]  }
 0x531   : > { %4707 = vmatmul.mubr.bf16.vlgmr.msra.gmra.mrb[32].mxu0 %v2643_v4  ;;  %4747 = vmatmul.mubr.bf16.vlgmr.msra.gmra.mrb[40].mxu1 %v2645_v6  ;;  %v7754_v4 = vld [vmem:[#allocation18 + $0x7f8] sm:$0xff]  }
 0x532   : > { %6950 = vmatpush3.bf16.msra.mxu0 %v7727_v9  ;;  %6972 = vmatpush3.bf16.msra.mxu1 %v7728_v11  ;;  %v7756_v9 = vld [vmem:[#allocation18 + $0x7b8] sm:$0xff]   ;;  %v2103_v11 = vld [vmem:[%s9185_s0 + $0xe0] sm:$0xff] }
 0x533   : > { %v7866_v20 = vpop.eup %7865  ;;  %6951 = vmatprep.subr.bf16.mxu0 %v7729_v12  ;;  %6973 = vmatprep.subr.bf16.mxu1 %v7730_v14  ;;  %v2105_v12 = vld [vmem:[%s9185_s0 + $0xf0] sm:$0xff] }
 0x534   : > { %v2048_v25 = vadd.f32 1.0, %v7866_v20  ;;  %4786 = vmatprep.mubr.bf16.mxu0 %v2648_v15  ;;  %4826 = vmatprep.mubr.bf16.mxu1 %v2650_v17  ;;  %v7868_v33 = vpop.eup %7867  ;;  %v2647_v15 = vpack.c.bf16 %v2103_v11, %v2103_v11  ;;  %v2649_v17 = vpack.c.bf16 %v2105_v12, %v2105_v12 }
 0x535   : > { %v2055_v42 = vadd.f32 1.0, %v7868_v33  ;;  %v7761_v33 = vld [vmem:[#allocation21 + $0x20] sm:$0xff]  }
 0x536   : > { %7869 = vrcp.f32 %v2048_v25  ;;  %6952 = vmatpush3.bf16.msra.mxu0 %v7731_v18  ;;  %6974 = vmatpush3.bf16.msra.mxu1 %v7732_v19  ;;  %v7757_v19 = vld [vmem:[#allocation21] sm:$0xff]  }
 0x537   : > { %6953 = vmatprep.subr.bf16.mxu0 %v7733_v23  ;;  %6975 = vmatprep.subr.bf16.mxu1 %v7734_v24  ;;  %7871 = vrcp.f32 %v2055_v42  ;;  %v7889_v24 = vld [vmem:[#allocation3] sm:$0xff] }
 0x53a   : > { %6954 = vmatpush3.bf16.msra.mxu0 %v7735_v26  ;;  %6976 = vmatpush3.bf16.msra.mxu1 %v7736_v27  ;;  %v7758_v26 = vld [vmem:[#allocation21 + $0x8] sm:$0xff]  }
 0x53b   : > { %6955 = vmatprep.subr.bf16.mxu0 %v7737_v28  ;;  %6977 = vmatprep.subr.bf16.mxu1 %v7738_v29  ;;  %v7759_v28 = vld [vmem:[#allocation21 + $0x10] sm:$0xff]   ;;  %v7760_v29 = vld [vmem:[#allocation21 + $0x18] sm:$0xff]  }
 0x53e   : > { %6956 = vmatpush3.bf16.msra.mxu0 %v7739_v34  ;;  %6978 = vmatpush3.bf16.msra.mxu1 %v7740_v35  ;;  %v7762_v34 = vld [vmem:[#allocation21 + $0x28] sm:$0xff]  }
 0x53f   : > { %6957 = vmatprep.subr.bf16.mxu0 %v7741_v38  ;;  %6979 = vmatprep.subr.bf16.mxu1 %v7742_v40 }
 0x540   : > { %v7870_v48 = vpop.eup %7869 }
 0x541   : > { %v2058_v49 = vmul.f32 %v7870_v48, %v2039_v45  ;;  %v7872_v14 = vpop.eup %7871  ;;  %v7763_v45 = vld [vmem:[#allocation21 + $0x30] sm:$0xff]  }
 0x542   : > { %6958 = vmatpush3.bf16.msra.mxu0 %v7743_v43  ;;  %6980 = vmatpush3.bf16.msra.mxu1 %v7744_v44  ;;  %v2061_v18 = vsub.f32 1.0, %v7872_v14  ;;  %v2063_v25 = vmul.f32 %v7889_v24, %v7872_v14 }
 0x543   : > { %v2059_v51 = vadd.f32 %v2058_v49, %v1752_v10  ;;  %6959 = vmatprep.subr.bf16.mxu0 %v7745_v46  ;;  %6981 = vmatprep.subr.bf16.mxu1 %v7746_v47  ;;  %v7764_v49 = vld [vmem:[#allocation21 + $0x38] sm:$0xff]  }
 0x544   : > { %v6657_v54 = vpop.f32.mrb[8].mxu0  ;;  %v6679_v36 = vpop.f32.mrb[16].mxu1 }
 0x545   : > { %7873 = vtanh.f32 %v2059_v51  ;;  %v6658_v56 = vpop.f32.mrb[9].mxu0  ;;  %v6680_v57 = vpop.f32.mrb[17].mxu1 }
 0x546   : > { %v6659_v58 = vadd.f32 %v6658_v56, %v6657_v54  ;;  %v6681_v60 = vadd.f32 %v6680_v57, %v6679_v36  ;;  %v6660_v30 = vpop.f32.mrb[10].mxu0  ;;  %v6682_v61 = vpop.f32.mrb[18].mxu1  ;;  %6960 = vmatpush3.bf16.msra.mxu0 %v7747_v50  ;;  %6982 = vmatpush3.bf16.msra.mxu1 %v7748_v22 }
 0x547   : > { %v6661_v0 = vpop.f32.mrb[11].mxu0  ;;  %v6683_v1 = vpop.f32.mrb[19].mxu1  ;;  %6961 = vmatprep.subr.bf16.mxu0 %v7749_v52  ;;  %6983 = vmatprep.subr.bf16.mxu1 %v7750_v53  ;;  %v7765_v61 = vld [vmem:[#allocation23] sm:$0xff]  }
 0x548   : > { %v4229_v6 = vadd.f32 %v6659_v58, %v6267_v55  ;;  %v7768_v0 = vld [vmem:[#allocation23 + $0x18] sm:$0xff]   ;;  %v7769_v1 = vld [vmem:[#allocation23 + $0x20] sm:$0xff]  }
 0x54a   : > { %v4269_v7 = vadd.f32 %v6681_v60, %v4229_v6  ;;  %6962 = vmatpush3.bf16.msra.mxu0 %v7751_v62  ;;  %6984 = vmatpush3.bf16.msra.mxu1 %v7752_v63  ;;  %v7766_v62 = vld [vmem:[#allocation23 + $0x8] sm:$0xff]   ;;  %v7767_v63 = vld [vmem:[#allocation23 + $0x10] sm:$0xff]  }
 0x54b   : > { %6963 = vmatprep.subr.bf16.mxu0 %v7753_v2  ;;  %6985 = vmatprep.subr.bf16.mxu1 %v7754_v4  ;;  %v7770_v6 = vld [vmem:[#allocation23 + $0x28] sm:$0xff]  }
 0x54e   : > { %6964 = vmatpush3.bf16.msra.mxu0 %v7755_v39  ;;  %6986 = vmatpush3.bf16.msra.mxu1 %v7756_v9 }
 0x54f   : > { %v7874_v20 = vpop.eup %7873  ;;  %7117 = vmatprep.subr.bf16.mxu1 %v8498_v3  ;;  %7097 = vmatprep.subr.bf16.mxu0 %v8498_v3 }
 0x550   : > { %v2062_v23 = vmul.f32 %v7874_v20, %v2061_v18  ;;  %v7771_v20 = vld [vmem:[#allocation23 + $0x30] sm:$0xff]  }
 0x551   : > { %4787 = vmatmul.mubr.bf16.vlgmr.msra.gmra.mrb[36].mxu0 %v2647_v15  ;;  %4827 = vmatmul.mubr.bf16.vlgmr.msra.gmra.mrb[44].mxu1 %v2649_v17 }
 0x552   : > { %7118 = vmatpush3.bf16.msra.mxu1 %v7757_v19  ;;  %7133 = vmatprep.mubr.msk.bf16.mxu1 %vm8499_vm1, %v8498_v3  ;;  %v9441_v27 = vadd.f32 %v2063_v25, %v2062_v23  ;;  %v7772_v25 = vld [vmem:[#allocation23 + $0x38] sm:$0xff]  }
 0x553   : > { %7119 = vmatprep.subr.bf16.mxu1 %v8498_v3  ;;  %7113 = vmatprep.mubr.msk.bf16.mxu0 %vm8499_vm1, %v8498_v3 }
 0x554   : > { %2074 = vst [vmem:[%s1151_s27] sm:$0xff] %v9441_v27  ;;  %v9460_v50 = vpack.c.bf16 %v9441_v27, %v9441_v27  ;;  %7098 = vmatpush3.bf16.msra.mxu0 %v7765_v61  ;;  %s8503_s27 = smov 64  }
 0x555   : > { %7099 = vmatprep.subr.bf16.mxu0 %v8498_v3 }
 0x556   : > { %7120 = vmatpush3.bf16.msra.mxu1 %v7758_v26 }
 0x557   : > { %7121 = vmatprep.subr.bf16.mxu1 %v8498_v3 }
 0x558   : > { %7100 = vmatpush3.bf16.msra.mxu0 %v7766_v62 }
 0x559   : > { %7101 = vmatprep.subr.bf16.mxu0 %v8498_v3 }
 0x55a   : > { %7122 = vmatpush3.bf16.msra.mxu1 %v7759_v28 }
 0x55b   : > { %7123 = vmatprep.subr.bf16.mxu1 %v8498_v3 }
 0x55c   : > { %7102 = vmatpush3.bf16.msra.mxu0 %v7767_v63 }
 0x55d   : > { %7103 = vmatprep.subr.bf16.mxu0 %v8498_v3 }
 0x55e   : > { %7124 = vmatpush3.bf16.msra.mxu1 %v7760_v29 }
 0x55f   : > { %7125 = vmatprep.subr.bf16.mxu1 %v8498_v3 }
 0x560   : > { %7104 = vmatpush3.bf16.msra.mxu0 %v7768_v0 }
 0x561   : > { %7105 = vmatprep.subr.bf16.mxu0 %v8498_v3 }
 0x562   : > { %7126 = vmatpush3.bf16.msra.mxu1 %v7761_v33 }
 0x563   : > { %7127 = vmatprep.subr.bf16.mxu1 %v8498_v3 }
 0x564   : > { %v6701_v35 = vpop.f32.mrb[12].mxu0  ;;  %v6723_v37 = vpop.f32.mrb[20].mxu1  ;;  %7106 = vmatpush3.bf16.msra.mxu0 %v7769_v1 }
 0x565   : > { %v6702_v38 = vpop.f32.mrb[13].mxu0  ;;  %v6724_v40 = vpop.f32.mrb[21].mxu1  ;;  %7107 = vmatprep.subr.bf16.mxu0 %v8498_v3 }
 0x566   : > { %v6703_v41 = vadd.f32 %v6702_v38, %v6701_v35  ;;  %v6725_v42 = vadd.f32 %v6724_v40, %v6723_v37  ;;  %v6704_v43 = vpop.f32.mrb[14].mxu0  ;;  %v6726_v44 = vpop.f32.mrb[22].mxu1  ;;  %7128 = vmatpush3.bf16.msra.mxu1 %v7762_v34 }
 0x567   : > { %v6705_v46 = vpop.f32.mrb[15].mxu0  ;;  %v6727_v47 = vpop.f32.mrb[23].mxu1  ;;  %7129 = vmatprep.subr.bf16.mxu1 %v8498_v3 }
 0x568   : > { %v4309_v48 = vadd.f32 %v6703_v41, %v4269_v7  ;;  %7108 = vmatpush3.bf16.msra.mxu0 %v7770_v6 }
 0x569   : > { %7109 = vmatprep.subr.bf16.mxu0 %v8498_v3 }
 0x56a   : > { %v4349_v10 = vadd.f32 %v6725_v42, %v4309_v48  ;;  %7130 = vmatpush3.bf16.msra.mxu1 %v7763_v45 }
 0x56b   : > { %7131 = vmatprep.subr.bf16.mxu1 %v8498_v3 }
 0x56c   : > { %7110 = vmatpush3.bf16.msra.mxu0 %v7771_v20 }
 0x56d   : > { %7111 = vmatprep.subr.bf16.mxu0 %v8498_v3 }
 0x56e   : > { %7132 = vmatpush3.bf16.msra.mxu1 %v7764_v49 }
 0x570   : > { %7112 = vmatpush3.bf16.msra.mxu0 %v7772_v25 }
 0x571   : > { %7134 = vmatmul.mubr.bf16.vlgmr.msra.gmra.mrb[48].mxu1 %v9460_v50  ;;  %7137 = vmatprep.subr.bf16.mxu0 %v8498_v3 }
 0x572   : > { %5414 = vmatprep.mubr.bf16.mxu1 %v8500_v8 }
 0x584   : > { %v6745_v22 = vpop.f32.mrb[16].mxu0  ;;  %v6767_v51 = vpop.f32.mrb[24].mxu1 }
 0x585   : > { %v6746_v52 = vpop.f32.mrb[17].mxu0  ;;  %v6768_v53 = vpop.f32.mrb[25].mxu1 }
 0x586   : > { %v6747_v54 = vadd.f32 %v6746_v52, %v6745_v22  ;;  %v6769_v36 = vadd.f32 %v6768_v53, %v6767_v51  ;;  %v6748_v55 = vpop.f32.mrb[18].mxu0  ;;  %v6770_v56 = vpop.f32.mrb[26].mxu1 }
 0x587   : > { %v6749_v57 = vpop.f32.mrb[19].mxu0  ;;  %v6771_v58 = vpop.f32.mrb[27].mxu1 }
 0x588   : > { %v4389_v60 = vadd.f32 %v6747_v54, %v4349_v10 }
 0x58a   : > { %v4429_v30 = vadd.f32 %v6769_v36, %v4389_v60 }
 0x5a1   : > { %v1782_v2 = vpop.permute.xlu1 %1781 }
 0x5a2   : > { %v1784_v4 = vadd.f32 %v1782_v2, %v9382_v32  ;;  %v9474_v2 = vpop.permute.xlu0 %5482 }
 0x5a4   : > { %v6789_v39 = vpop.f32.mrb[20].mxu0  ;;  %v6811_v7 = vpop.f32.mrb[28].mxu1  ;;  %2066 = vrot.lane.b32.xlu0 %v1784_v4, %s8503_s27  ;;  %v2069_v4 = vsel %vm1295_vm2, %v9382_v32, %v9418_v59 }
 0x5a5   : > { %v6790_v9 = vpop.f32.mrb[21].mxu0  ;;  %v6812_v11 = vpop.f32.mrb[29].mxu1 }
 0x5a6   : > { %v6791_v12 = vadd.f32 %v6790_v9, %v6789_v39  ;;  %v6813_v14 = vadd.f32 %v6812_v11, %v6811_v7  ;;  %v6792_v15 = vpop.f32.mrb[22].mxu0  ;;  %v6814_v17 = vpop.f32.mrb[30].mxu1 }
 0x5a7   : > { %v6793_v18 = vpop.f32.mrb[23].mxu0  ;;  %v6815_v19 = vpop.f32.mrb[31].mxu1 }
 0x5a8   : > { %v4469_v23 = vadd.f32 %v6791_v12, %v4429_v30 }
 0x5aa   : > { %v4509_v24 = vadd.f32 %v6813_v14, %v4469_v23 }
 0x5c4   : > { %v6833_v26 = vpop.f32.mrb[24].mxu0  ;;  %v6855_v28 = vpop.f32.mrb[32].mxu1 }
 0x5c5   : > { %v6834_v29 = vpop.f32.mrb[25].mxu0  ;;  %v6856_v33 = vpop.f32.mrb[33].mxu1 }
 0x5c6   : > { %v6835_v34 = vadd.f32 %v6834_v29, %v6833_v26  ;;  %v6857_v35 = vadd.f32 %v6856_v33, %v6855_v28  ;;  %v6836_v37 = vpop.f32.mrb[26].mxu0  ;;  %v6858_v38 = vpop.f32.mrb[34].mxu1  ;;  %v7774_v26 = vld [vmem:[#allocation26 + $0x8] sm:$0xff]   ;;  %v7775_v28 = vld [vmem:[#allocation26 + $0x10] sm:$0xff]   ;;  %v7776_v29 = vld [vmem:[#allocation26 + $0x18] sm:$0xff]  }
 0x5c7   : > { %v6837_v40 = vpop.f32.mrb[27].mxu0  ;;  %v6859_v41 = vpop.f32.mrb[35].mxu1  ;;  %v7777_v33 = vld [vmem:[#allocation26 + $0x20] sm:$0xff]  }
 0x5c8   : > { %v4549_v42 = vadd.f32 %v6835_v34, %v4509_v24  ;;  %v7773_v24 = vld [vmem:[#allocation26] sm:$0xff]   ;;  %v7778_v34 = vld [vmem:[#allocation26 + $0x28] sm:$0xff]   ;;  %v7779_v41 = vld [vmem:[#allocation26 + $0x30] sm:$0xff]  }
 0x5ca   : > { %v4589_v43 = vadd.f32 %v6857_v35, %v4549_v42  ;;  %v7780_v42 = vld [vmem:[#allocation26 + $0x38] sm:$0xff]  }
 0x5e4   : > { %v6877_v44 = vpop.f32.mrb[28].mxu0  ;;  %v6899_v45 = vpop.f32.mrb[36].mxu1 }
 0x5e5   : > { %v6878_v46 = vpop.f32.mrb[29].mxu0  ;;  %v6900_v47 = vpop.f32.mrb[37].mxu1 }
 0x5e6   : > { %v6879_v48 = vadd.f32 %v6878_v46, %v6877_v44  ;;  %v6901_v10 = vadd.f32 %v6900_v47, %v6899_v45  ;;  %v6880_v49 = vpop.f32.mrb[30].mxu0  ;;  %v6902_v22 = vpop.f32.mrb[38].mxu1  ;;  %v7783_v44 = vld [vmem:[%s9814_s13 + $0x4] ss:$16 sps:$4 sm:$0xff]   ;;  %v7786_v45 = vld [vmem:[%s9814_s13 + $0xc] ss:$16 sps:$4 sm:$0xff]  }
 0x5e7   : > { %v6881_v51 = vpop.f32.mrb[31].mxu0  ;;  %v6903_v52 = vpop.f32.mrb[39].mxu1  ;;  %v7789_v46 = vld [vmem:[%s9814_s13 + $0x24] ss:$16 sps:$4 sm:$0xff]   ;;  %5382 = vmatprep.subr.bf16.mxu1 %v7783_v44  ;;  %v7787_v47 = vld [vmem:[%s9814_s13 + $0x20] ss:$16 sps:$4 sm:$0xff]  }
 0x5e8   : > { %v4629_v53 = vadd.f32 %v6879_v48, %v4589_v43  ;;  %v7781_v43 = vld [vmem:[%s9813_s7] ss:$16 sps:$4 sm:$0xff]   ;;  %v7795_v48 = vld [vmem:[%s9814_s13 + $0x44] ss:$16 sps:$4 sm:$0xff]  }
 0x5e9   : > { %5383 = vmatpush1.bf16.msra.mxu1 %v7781_v43  ;;  %v7801_v49 = vld [vmem:[%s9814_s13 + $0x64] ss:$16 sps:$4 sm:$0xff]   ;;  %v7799_v22 = vld [vmem:[%s9814_s13 + $0x60] ss:$16 sps:$4 sm:$0xff]  }
 0x5ea   : > { %v4669_v54 = vadd.f32 %v6901_v10, %v4629_v53  ;;  %5384 = vmatprep.subr.bf16.mxu1 %v7789_v46  ;;  %v7793_v10 = vld [vmem:[%s9814_s13 + $0x40] ss:$16 sps:$4 sm:$0xff]   ;;  %v7807_v51 = vld [vmem:[%s9814_s13 + $0x84] ss:$16 sps:$4 sm:$0xff]  }
 0x5eb   : > { %v7805_v52 = vld [vmem:[%s9814_s13 + $0x80] ss:$16 sps:$4 sm:$0xff]   ;;  %v7813_v53 = vld [vmem:[%s9814_s13 + $0xa4] ss:$16 sps:$4 sm:$0xff]  }
 0x5ec   : > { %v7836_v43 = vld [vmem:[#allocation30 + $0x20] ss:$12 sps:$4 sm:$0xff]   ;;  %v7840_v46 = vld [vmem:[#allocation30 + $0x38] ss:$12 sps:$4 sm:$0xff]  }
 0x5ed   : > { %5385 = vmatpush1.bf16.msra.mxu1 %v7787_v47  ;;  %v7839_v44 = vld [vmem:[#allocation30 + $0x34] ss:$12 sps:$4 sm:$0xff]   ;;  %v7843_v47 = vld [vmem:[#allocation30 + $0x4c] ss:$12 sps:$4 sm:$0xff]  }
 0x5ee   : > { %5386 = vmatprep.subr.bf16.mxu1 %v7795_v48  ;;  %v7841_v48 = vld [vmem:[#allocation30 + $0x48] ss:$12 sps:$4 sm:$0xff]  }
 0x5f1   : > { %5387 = vmatpush1.bf16.msra.mxu1 %v7793_v10  ;;  %v7844_v10 = vld [vmem:[#allocation30 + $0x50] ss:$12 sps:$4 sm:$0xff]  }
 0x5f2   : > { %5388 = vmatprep.subr.bf16.mxu1 %v7801_v49  ;;  %v7847_v49 = vld [vmem:[#allocation30 + $0x64] ss:$12 sps:$4 sm:$0xff]  }
 0x5f5   : > { %5389 = vmatpush1.bf16.msra.mxu1 %v7799_v22  ;;  %v7848_v22 = vld [vmem:[#allocation30 + $0x68] ss:$12 sps:$4 sm:$0xff]  }
 0x5f6   : > { %5390 = vmatprep.subr.bf16.mxu1 %v7807_v51  ;;  %v7851_v51 = vld [vmem:[#allocation30 + $0x7c] ss:$12 sps:$4 sm:$0xff]  }
 0x5f9   : > { %5391 = vmatpush1.bf16.msra.mxu1 %v7805_v52  ;;  %v7849_v52 = vld [vmem:[#allocation30 + $0x78] ss:$12 sps:$4 sm:$0xff]  }
 0x5fa   : > { %5392 = vmatprep.subr.bf16.mxu1 %v7813_v53  ;;  %v7852_v53 = vld [vmem:[#allocation30 + $0x80] ss:$12 sps:$4 sm:$0xff]  }
 0x604   : > { %v6921_v36 = vpop.f32.mrb[32].mxu0  ;;  %v6943_v55 = vpop.f32.mrb[40].mxu1 }
 0x605   : > { %v6922_v56 = vpop.f32.mrb[33].mxu0  ;;  %v6944_v57 = vpop.f32.mrb[41].mxu1 }
 0x606   : > { %v6923_v58 = vadd.f32 %v6922_v56, %v6921_v36  ;;  %v6945_v60 = vadd.f32 %v6944_v57, %v6943_v55  ;;  %v6924_v30 = vpop.f32.mrb[34].mxu0  ;;  %v6946_v61 = vpop.f32.mrb[42].mxu1  ;;  %v7819_v36 = vld [vmem:[%s9814_s13 + $0xc4] ss:$16 sps:$4 sm:$0xff]   ;;  %v7817_v55 = vld [vmem:[%s9814_s13 + $0xc0] ss:$16 sps:$4 sm:$0xff]  }
 0x607   : > { %v6925_v62 = vpop.f32.mrb[35].mxu0  ;;  %v6947_v63 = vpop.f32.mrb[43].mxu1  ;;  %v6540_v57 = vld [vmem:[#allocation24] ss:$0 sm:$0xff] }
 0x608   : > { %v4709_v0 = vadd.f32 %v6923_v58, %v4669_v54  ;;  %v7811_v54 = vld [vmem:[%s9814_s13 + $0xa0] ss:$16 sps:$4 sm:$0xff]  }
 0x609   : > { %5393 = vmatpush1.bf16.msra.mxu1 %v7811_v54  ;;  %v7855_v54 = vld [vmem:[#allocation30 + $0x94] ss:$12 sps:$4 sm:$0xff]  }
 0x60a   : > { %v4749_v1 = vadd.f32 %v6945_v60, %v4709_v0  ;;  %5394 = vmatprep.subr.bf16.mxu1 %v7819_v36  ;;  %v7784_v0 = vld [vmem:[%s9814_s13 + $0x8] ss:$16 sps:$4 sm:$0xff]  }
 0x60b   : > { %v7853_v36 = vld [vmem:[#allocation30 + $0x90] ss:$12 sps:$4 sm:$0xff]  }
 0x60d   : > { %5395 = vmatpush1.bf16.msra.mxu1 %v7817_v55  ;;  %v7856_v55 = vld [vmem:[#allocation30 + $0x98] ss:$12 sps:$4 sm:$0xff]  }
 0x616   : > { %v2067_v6 = vpop.permute.xlu0 %2066 }
 0x617   : > { %v2071_v39 = vsel %vm2070_vm5, %v2069_v4, %v2067_v6  ;;  %v7792_v4 = vld [vmem:[%s9814_s13 + $0x2c] ss:$16 sps:$4 sm:$0xff]   ;;  %v7790_v6 = vld [vmem:[%s9814_s13 + $0x28] ss:$16 sps:$4 sm:$0xff]  }
 0x618   : > { %2073 = vst.msk [vmem:[%s1147_s19] sm:$0xff] %vm2072_vm6, %v2071_v39  ;;  %v7798_v39 = vld [vmem:[%s9814_s13 + $0x4c] ss:$16 sps:$4 sm:$0xff]  }
 0x624   : > { %v6965_v7 = vpop.f32.mrb[36].mxu0  ;;  %v6987_v9 = vpop.f32.mrb[44].mxu1 }
 0x625   : > { %v6966_v11 = vpop.f32.mrb[37].mxu0  ;;  %v6988_v12 = vpop.f32.mrb[45].mxu1 }
 0x626   : > { %v6967_v14 = vadd.f32 %v6966_v11, %v6965_v7  ;;  %v6989_v15 = vadd.f32 %v6988_v12, %v6987_v9  ;;  %v6968_v17 = vpop.f32.mrb[38].mxu0  ;;  %v6990_v18 = vpop.f32.mrb[46].mxu1  ;;  %v7796_v7 = vld [vmem:[%s9814_s13 + $0x48] ss:$16 sps:$4 sm:$0xff]   ;;  %v7804_v9 = vld [vmem:[%s9814_s13 + $0x6c] ss:$16 sps:$4 sm:$0xff]  }
 0x627   : > { %v6969_v19 = vpop.f32.mrb[39].mxu0  ;;  %v6991_v20 = vpop.f32.mrb[47].mxu1  ;;  %v7802_v11 = vld [vmem:[%s9814_s13 + $0x68] ss:$16 sps:$4 sm:$0xff]   ;;  %v7810_v12 = vld [vmem:[%s9814_s13 + $0x8c] ss:$16 sps:$4 sm:$0xff]  }
 0x628   : > { %v4789_v32 = vadd.f32 %v6967_v14, %v4749_v1  ;;  %v7808_v14 = vld [vmem:[%s9814_s13 + $0x88] ss:$16 sps:$4 sm:$0xff]   ;;  %v7822_v18 = vld [vmem:[%s9814_s13 + $0xcc] ss:$16 sps:$4 sm:$0xff]   ;;  %v7825_v20 = vld [vmem:[%s9814_s13 + $0xe4] ss:$16 sps:$4 sm:$0xff]  }
 0x629   : > { %v7814_v17 = vld [vmem:[%s9814_s13 + $0xa8] ss:$16 sps:$4 sm:$0xff]   ;;  %5396 = vmatprep.subr.bf16.mxu1 %v7825_v20 }
 0x62a   : > { %v4829_v59 = vadd.f32 %v6989_v15, %v4789_v32  ;;  %v7816_v15 = vld [vmem:[%s9814_s13 + $0xac] ss:$16 sps:$4 sm:$0xff]   ;;  %v7820_v19 = vld [vmem:[%s9814_s13 + $0xc8] ss:$16 sps:$4 sm:$0xff]  }
 0x62b   : > { %v7828_v32 = vld [vmem:[%s9814_s13 + $0xec] ss:$16 sps:$4 sm:$0xff]  }
 0x62c   : > { %v4834_v23 = vmax.f32 %v4829_v59, 0.0  ;;  %v7823_v59 = vld [vmem:[%s9814_s13 + $0xe0] ss:$16 sps:$4 sm:$0xff]  }
 0x62d   : > { %5397 = vmatpush1.bf16.msra.mxu1 %v7823_v59 }
 0x62e   : > { %v4868_v25 = vpack.c.bf16 %v4834_v23, %v4834_v23  ;;  %v7826_v23 = vld [vmem:[%s9814_s13 + $0xe8] ss:$16 sps:$4 sm:$0xff]  }
 0x630   : > { %7114 = vmatmul.mubr.bf16.vlgmr.msra.gmra.mrb[40].mxu0 %v4868_v25  ;;  %v6541_v25 = vld [vmem:[#allocation27] ss:$0 sm:$0xff] }
 0x631   : > { %7138 = vmatpush3.bf16.msra.mxu0 %v7773_v24  ;;  %7153 = vmatprep.mubr.msk.bf16.mxu0 %vm8499_vm1, %v8498_v3  ;;  %v7831_v24 = vld [vmem:[#allocation30 + $0x4] ss:$12 sps:$4 sm:$0xff]  }
 0x632   : > { %7139 = vmatprep.subr.bf16.mxu0 %v8498_v3  ;;  %5668 = vmatprep.subr.bf16.mxu1 %v7831_v24 }
 0x635   : > { %7140 = vmatpush3.bf16.msra.mxu0 %v7774_v26 }
 0x636   : > { %7141 = vmatprep.subr.bf16.mxu0 %v8498_v3 }
 0x639   : > { %7142 = vmatpush3.bf16.msra.mxu0 %v7775_v28 }
 0x63a   : > { %7143 = vmatprep.subr.bf16.mxu0 %v8498_v3 }
 0x63d   : > { %7144 = vmatpush3.bf16.msra.mxu0 %v7776_v29 }
 0x63e   : > { %7145 = vmatprep.subr.bf16.mxu0 %v8498_v3 }
 0x641   : > { %7146 = vmatpush3.bf16.msra.mxu0 %v7777_v33 }
 0x642   : > { %7147 = vmatprep.subr.bf16.mxu0 %v8498_v3 }
 0x644   : > { %v5039_v35 = vpop.f32.mrb[48].mxu1 }
 0x645   : > { %v7135_v37 = vpop.f32.mrb[49].mxu1  ;;  %7148 = vmatpush3.bf16.msra.mxu0 %v7778_v34 }
 0x646   : > { %v5042_v38 = vpop.f32.mrb[50].mxu1  ;;  %7149 = vmatprep.subr.bf16.mxu0 %v8498_v3  ;;  %v7829_v37 = vld [vmem:[#allocation30] ss:$12 sps:$4 sm:$0xff]  }
 0x647   : > { %v7136_v40 = vpop.f32.mrb[51].mxu1  ;;  %v7832_v38 = vld [vmem:[#allocation30 + $0x8] ss:$12 sps:$4 sm:$0xff]  }
 0x649   : > { %7150 = vmatpush3.bf16.msra.mxu0 %v7779_v41  ;;  %v7835_v41 = vld [vmem:[#allocation30 + $0x1c] ss:$12 sps:$4 sm:$0xff]  }
 0x64a   : > { %7151 = vmatprep.subr.bf16.mxu0 %v8498_v3 }
 0x64d   : > { %7152 = vmatpush3.bf16.msra.mxu0 %v7780_v42  ;;  %v7833_v42 = vld [vmem:[#allocation30 + $0x18] ss:$12 sps:$4 sm:$0xff]  }
 0x64e   : > { %5423 = vmatprep.subr.bf16.mxu0 %v7786_v45  ;;  %v7837_v45 = vld [vmem:[#allocation30 + $0x30] ss:$12 sps:$4 sm:$0xff]  }
 0x703   : > { %v4951_v56 = vpop.f32.mrb[40].mxu0 }
 0x704   : > { %v5040_v58 = vadd.f32 %v5039_v35, %v4951_v56  ;;  %v7115_v60 = vpop.f32.mrb[41].mxu0  ;;  %v7859_v56 = vld [vmem:[#allocation30 + $0xac] ss:$12 sps:$4 sm:$0xff]  }
 0x705   : > { %v4954_v30 = vpop.f32.mrb[42].mxu0  ;;  %v5200_v60 = vld [vmem:[#allocation29] sm:$0xf] }
 0x706   : > { %v5052_v61 = vadd.f32 %v6540_v57, %v5040_v58  ;;  %v7116_v62 = vpop.f32.mrb[43].mxu0  ;;  %v7857_v57 = vld [vmem:[#allocation30 + $0xa8] ss:$12 sps:$4 sm:$0xff]   ;;  %v7860_v58 = vld [vmem:[#allocation30 + $0xb0] ss:$12 sps:$4 sm:$0xff]   ;;  %v5217_v30 = vrot.slane %v5200_v60, %v1510_v21  ;;  %v5205_v16 = vrot.slane %v5200_v60, %v9396_v5 }
 0x708   : > { %v5053_v63 = vmax.f32 %v5052_v61, 0.0 }
 0x70a   : > { %v5070_v1 = vpack.c.bf16 %v5053_v63, %v5053_v63 }
 0x70c   : > { %7154 = vmatmul.mubr.bf16.vlgmr.msra.gmra.mrb[44].mxu0 %v5070_v1 }
 0x70d   : > { %5424 = vmatpush1.bf16.msra.mxu0 %v7784_v0  ;;  %5455 = vmatprep.mubr.bf16.mxu0 %v8500_v8 }
 0x70e   : > { %5425 = vmatprep.subr.bf16.mxu0 %v7792_v4 }
 0x711   : > { %5426 = vmatpush1.bf16.msra.mxu0 %v7790_v6 }
 0x712   : > { %5427 = vmatprep.subr.bf16.mxu0 %v7798_v39 }
 0x715   : > { %5428 = vmatpush1.bf16.msra.mxu0 %v7796_v7 }
 0x716   : > { %5429 = vmatprep.subr.bf16.mxu0 %v7804_v9 }
 0x719   : > { %5430 = vmatpush1.bf16.msra.mxu0 %v7802_v11  ;;  %v5209_v11 = vrot.slane %v5200_v60, %v9404_v13 }
 0x71a   : > { %5431 = vmatprep.subr.bf16.mxu0 %v7810_v12 }
 0x71d   : > { %5432 = vmatpush1.bf16.msra.mxu0 %v7808_v14 }
 0x71e   : > { %5433 = vmatprep.subr.bf16.mxu0 %v7816_v15 }
 0x721   : > { %5434 = vmatpush1.bf16.msra.mxu0 %v7814_v17 }
 0x722   : > { %5435 = vmatprep.subr.bf16.mxu0 %v7822_v18 }
 0x725   : > { %5436 = vmatpush1.bf16.msra.mxu0 %v7820_v19 }
 0x726   : > { %5437 = vmatprep.subr.bf16.mxu0 %v7828_v32 }
 0x729   : > { %5438 = vmatpush1.bf16.msra.mxu0 %v7826_v23 }
 0x72a   : > { %7157 = vmatprep.subr.bf16.mxu0 %v8498_v3 }
 0x7df   : > { %v5160_v26 = vpop.f32.mrb[44].mxu0 }
 0x7e0   : > { %v5161_v28 = vadd.f32 %v6541_v25, %v5160_v26  ;;  %v7155_v29 = vpop.f32.mrb[45].mxu0 }
 0x7e1   : > { %v5163_v33 = vpop.f32.mrb[46].mxu0 }
 0x7e2   : > { %v5166_v34 = vmax.f32 %v5161_v28, 0.0  ;;  %v7156_v35 = vpop.f32.mrb[47].mxu0 }
 0x7e4   : > { %v5199_v40 = vpack.c.bf16 %v5166_v34, %v5166_v34 }
 0x7e6   : > { %5415 = vmatmul.mubr.bf16.vlgmr.msra.gmra.mrb[52].mxu1 %v5199_v40  ;;  %5456 = vmatmul.mubr.bf16.vlgmr.msra.gmra.mrb[48].mxu0 %v5199_v40 }
 0x7e7   : > { %5669 = vmatpush1.bf16.msra.mxu1 %v7829_v37  ;;  %7158 = vmatpush3.bf16.msra.mxu0 %v7832_v38 }
 0x7e8   : > { %5670 = vmatprep.subr.bf16.mxu1 %v7835_v41  ;;  %7159 = vmatprep.subr.bf16.mxu0 %v8498_v3 }
 0x7e9   : > { %5700 = vmatprep.mubr.bf16.mxu1 %v8500_v8  ;;  %7173 = vmatprep.mubr.msk.bf16.mxu0 %vm8499_vm1, %v8498_v3  ;;  %v7845_v8 = vld [vmem:[#allocation30 + $0x60] ss:$12 sps:$4 sm:$0xff]  }
 0x7eb   : > { %5671 = vmatpush1.bf16.msra.mxu1 %v7833_v42  ;;  %7160 = vmatpush3.bf16.msra.mxu0 %v7836_v43 }
 0x7ec   : > { %5672 = vmatprep.subr.bf16.mxu1 %v7839_v44  ;;  %7161 = vmatprep.subr.bf16.mxu0 %v8498_v3 }
 0x7ef   : > { %5673 = vmatpush1.bf16.msra.mxu1 %v7837_v45  ;;  %7162 = vmatpush3.bf16.msra.mxu0 %v7840_v46  ;;  %v5213_v46 = vrot.slane %v5200_v60, %v9427_v31 }
 0x7f0   : > { %5674 = vmatprep.subr.bf16.mxu1 %v7843_v47  ;;  %7163 = vmatprep.subr.bf16.mxu0 %v8498_v3 }
 0x7f3   : > { %5675 = vmatpush1.bf16.msra.mxu1 %v7841_v48  ;;  %7164 = vmatpush3.bf16.msra.mxu0 %v7844_v10 }
 0x7f4   : > { %5676 = vmatprep.subr.bf16.mxu1 %v7847_v49  ;;  %7165 = vmatprep.subr.bf16.mxu0 %v8498_v3 }
 0x7f7   : > { %5677 = vmatpush1.bf16.msra.mxu1 %v7845_v8  ;;  %7166 = vmatpush3.bf16.msra.mxu0 %v7848_v22 }
 0x7f8   : > { %5678 = vmatprep.subr.bf16.mxu1 %v7851_v51  ;;  %7167 = vmatprep.subr.bf16.mxu0 %v8498_v3 }
 0x7fb   : > { %5679 = vmatpush1.bf16.msra.mxu1 %v7849_v52  ;;  %7168 = vmatpush3.bf16.msra.mxu0 %v7852_v53 }
 0x7fc   : > { %5680 = vmatprep.subr.bf16.mxu1 %v7855_v54  ;;  %7169 = vmatprep.subr.bf16.mxu0 %v8498_v3 }
 0x7ff   : > { %5681 = vmatpush1.bf16.msra.mxu1 %v7853_v36  ;;  %7170 = vmatpush3.bf16.msra.mxu0 %v7856_v55 }
 0x800   : > { %5682 = vmatprep.subr.bf16.mxu1 %v7859_v56  ;;  %7171 = vmatprep.subr.bf16.mxu0 %v8498_v3 }
 0x803   : > { %5683 = vmatpush1.bf16.msra.mxu1 %v7857_v57  ;;  %7172 = vmatpush3.bf16.msra.mxu0 %v7860_v58 }
 0x806   : > { %5701 = vmatmul.mubr.bf16.vlgmr.msra.gmra.mrb[52].mxu1 %v9460_v50  ;;  %7174 = vmatmul.mubr.bf16.vlgmr.msra.gmra.mrb[52].mxu0 %v9460_v50  ;;  %v5523_v50 = vld [vmem:[%s9810_s2] sm:$0x7] }
 0x807   : > { %v5528_v21 = vrot.slane %v5523_v50, %v9396_v5  ;;  %v5532_v12 = vrot.slane %v5523_v50, %v9404_v13  ;;  %v5536_v45 = vrot.slane %v5523_v50, %v9427_v31 }
 0x809   : > { %v7181_v14 = vadd.f32 %v5528_v21, %v5205_v16  ;;  %v7183_v20 = vadd.f32 %v5532_v12, %v5209_v11 }
 0x8b9   : > { %v5457_v61 = vpop.f32.mrb[48].mxu0 }
 0x8ba   : > { %v5459_v62 = vpop.f32.mrb[49].mxu0  ;;  %v5458_v49 = vadd.f32 %v5457_v61, %v5213_v46 }
 0x8bb   : > { %v9607_v63 = vadd.f32 %v5459_v62, %v5217_v30  ;;  %v5461_v0 = vpop.f32.mrb[50].mxu0 }
 0x8bc   : > { %v5462_v1 = vpop.f32.mrb[51].mxu0 }
 0x8bd   : > { %v5464_v4 = vadd.f32 0.54, %v9607_v63 }
 0x8bf   : > { %v5466_v6 = vmin.f32 %v5464_v4, 20.0  ;;  %vm5465_vm8 = vcmp.gt.f32.partialorder %v5464_v4, 20.0 }
 0x8c1   : > { %v5467_v3 = vmul.f32 1.442695, %v5466_v6 }
 0x8c3   : > { %7875 = vpow2.f32 %v5467_v3 }
 0x8cd   : > { %v7876_v39 = vpop.eup %7875 }
 0x8ce   : > { %v5469_v7 = vadd.f32 1.0, %v7876_v39  ;;  %v5472_v9 = vmul.f32 -0.5, %v7876_v39  ;;  %v5475_v17 = vand.u32 2147483647, %v7876_v39 }
 0x8d0   : > { %7877 = vlog2.f32 %v5469_v7  ;;  %v5473_v15 = vadd.f32 1.0, %v5472_v9  ;;  %vm5476_vm7 = vcmp.lt.f32.partialorder %v5475_v17, 0.0004427343 }
 0x8d2   : > { %v5474_v29 = vmul.f32 %v7876_v39, %v5473_v15 }
 0x8d9   : > { %v5702_v18 = vpop.f32.mrb[52].mxu1  ;;  %v5743_v19 = vpop.f32.mrb[52].mxu0 }
 0x8da   : > { %v7878_v32 = vpop.eup %7877  ;;  %v7182_v59 = vadd.f32 %v7181_v14, %v5702_v18  ;;  %v5704_v23 = vpop.f32.mrb[53].mxu1  ;;  %v5744_v48 = vadd.f32 %v5743_v19, %v5536_v45 }
 0x8db   : > { %v7175_v24 = vpop.f32.mrb[53].mxu0  ;;  %v5706_v25 = vpop.f32.mrb[54].mxu1  ;;  %v5471_v28 = vmul.f32 0.6931472, %v7878_v32  ;;  %v7184_v35 = vadd.f32 %v7183_v20, %v5704_v23 }
 0x8dc   : > { %v5746_v26 = vpop.f32.mrb[54].mxu0  ;;  %v6606_v5 = vmul.f32 -1.442695, %v7182_v59  ;;  %v5707_v33 = vpop.f32.mrb[55].mxu1 }
 0x8dd   : > { %v7176_v34 = vpop.f32.mrb[55].mxu0  ;;  %v5477_v13 = vsel %vm5476_vm7, %v5474_v29, %v5471_v28  ;;  %v6607_v40 = vmul.f32 -1.442695, %v7184_v35 }
 0x8de   : > { %7879 = vpow2.f32 %v6606_v5  ;;  %v5478_v37 = vsel %vm5465_vm8, %v5464_v4, %v5477_v13 }
 0x8df   : > { %v5479_v38 = vadd.f32 0.0001, %v5478_v37  ;;  %7881 = vpow2.f32 %v6607_v40 }
 0x8e1   : > { %v5485_v41 = vmul.f32 %v9474_v2, %v5479_v38  ;;  %v5774_v56 = vsel %vm1295_vm2, %v9607_v63, %v5479_v38 }
 0x8e3   : > { %5487 = vrot.lane.b32.xlu1 %v5485_v41, %s8502_s9 }
 0x8e8   : > { %v7880_v42 = vpop.eup %7879 }
 0x8e9   : > { %v5753_v43 = vadd.f32 1.0, %v7880_v42  ;;  %v7882_v44 = vpop.eup %7881 }
 0x8ea   : > { %v5760_v47 = vadd.f32 1.0, %v7882_v44 }
 0x8eb   : > { %7883 = vrcp.f32 %v5753_v43 }
 0x8ec   : > { %7885 = vrcp.f32 %v5760_v47 }
 0x8f5   : > { %v7884_v10 = vpop.eup %7883 }
 0x8f6   : > { %v5763_v8 = vmul.f32 %v7884_v10, %v5744_v48  ;;  %v7886_v2 = vpop.eup %7885 }
 0x8f7   : > { %v5766_v51 = vsub.f32 1.0, %v7886_v2  ;;  %v5768_v54 = vmul.f32 %v7886_v2, %v9441_v27 }
 0x8f8   : > { %v5764_v22 = vadd.f32 %v5763_v8, %v5458_v49 }
 0x8fa   : > { %7887 = vtanh.f32 %v5764_v22 }
 0x904   : > { %v7888_v52 = vpop.eup %7887 }
 0x905   : > { %v5767_v53 = vmul.f32 %v7888_v52, %v5766_v51 }
 0x907   : > { %v5769_v36 = vadd.f32 %v5768_v54, %v5767_v53 }
 0x909   : > { %5777 = vst [vmem:[%s1159_s1] sm:$0xff] %v5769_v36  ;;  %5779 = vst [vmem:[#allocation3] sm:$0xff] %v5769_v36 }
 0x955   : > { %v5488_v31 = vpop.permute.xlu1 %5487 }
 0x956   : > { %v5490_v55 = vadd.f32 %v5488_v31, %v9607_v63 }
 0x958   : > { %5778 = vst.msk [vmem:[#allocation2] sm:$0xff] %vm1295_vm2, %v5490_v55  ;;  %5771 = vrot.lane.b32.xlu1 %v5490_v55, %s8503_s27 }
 0x9ca   : > { %v5772_v57 = vpop.permute.xlu1 %5771 }
 0x9cb   : > { %v5775_v27 = vsel %vm2070_vm5, %v5774_v56, %v5772_v57 }
 0x9cc   : > { %5776 = vst.msk [vmem:[%s1155_s11] sm:$0xff] %vm2072_vm6, %v5775_v27 }
 0x9cd PF: > { %s9817_s1 = sld [smem:[#allocation43_spill]]  ;;  %s9818_s8 = sld [smem:[#allocation45_spill]] }
 0x9ce   : > { %p49_p7 = scmp.ge.s32.totalorder %s8852_s24, 6   ;;  %s9819_s7 = smov %s8466_s4 }
 0x9cf   : > { %s9821_s30 = smov %s8852_s24 }
 0x9d0   :  { %51 = sbr.rel (!%p49_p7) target bundleno = 39 (0x27), region = 284 }
 0x9d3   : > { %s9820_s4 = smov %s9817_s1 }
 0x9d7   :  { %5841 = vsyncpa [#allocation5], 1 }
 0x9d8   :  { %5843 = vsyncpa [#allocation5 + $0x1], 1 }
 0x9d9   :  { %5844 = vsyncpa [#allocation7], 1 }
 0x9da   :  { %5846 = vsyncpa [#allocation7 + $0x1], 1 }
 0x9db   :  { %5847 = vsyncpa [#allocation10], 1 }
 0x9dc   :  { %5849 = vsyncpa [#allocation10 + $0x1], 1 }
 0x9dd   :  { %5850 = vsyncpa [#allocation13], 1 }
 0x9de   :  { %5851 = vsyncpa [#allocation16], 1 }
 0x9df   :  { %5852 = vsyncpa [#allocation19], 1 }
 0x9e0   :  { %5853 = vsyncpa [#allocation22], 1 }
 0x9e1   :  { %5854 = vsyncpa [#allocation25], 1 }
 0x9e2   :  { %5855 = vsyncpa [#allocation28], 1 }
 0x9e3   :  { %5856 = vsyncpa [#allocation31], 1 }

</bundles_post_ra>
